<compile_context>
chip_gen: v7x
topology: tpu7x:2x2x1
jax: 0.10.0
libtpu: 0.0.40
codegen_flags: <defaults>
</compile_context>

<pallas_src>
import functools

import jax
import jax.numpy as jnp
from jax.experimental import pallas as pl
from jax.experimental.pallas import tpu as pltpu

UNITS = 100   # matches `units = 100` in the reference script
LANE = 128    # TPU lane width


def _round_up(a, m):
    return ((a + m - 1) // m) * m


def _mlp_kernel(xin_ref,
                w1_ref, b1_ref,
                w2_ref, b2_ref,
                w3_ref, b3_ref,
                w4_ref, b4_ref,
                w5_ref, b5_ref,
                w6_ref, b6_ref,
                out_ref):
    """One batch tile of the 6-layer tanh MLP (weights stored [in, out])."""
    xin = xin_ref[...]                                   # (tm, 3) f32
    xcol = xin[:, 0:1]                                   # (tm, 1)
    ycol = xin[:, 1:2]
    tcol = xin[:, 2:3]

    # Layer 1 on the VPU: a K=3 systolic matmul would waste ~97% of an MXU
    # pass; three broadcast FMAs overlap with the MXU work of later layers.
    h = jnp.tanh(xcol * w1_ref[0:1, :]
                 + ycol * w1_ref[1:2, :]
                 + tcol * w1_ref[2:3, :]
                 + b1_ref[...])                          # (tm, 128) f32

    def dense_tanh(h, w_ref, b_ref):
        # bf16 operands on the MXU, f32 accumulation; bias + tanh in f32.
        acc = jnp.dot(h.astype(jnp.bfloat16), w_ref[...],
                      preferred_element_type=jnp.float32)
        return jnp.tanh(acc + b_ref[...])

    # Layers 2-5: lane-aligned (tm,128)@(128,128) bf16 MXU matmuls.
    h = dense_tanh(h, w2_ref, b2_ref)
    h = dense_tanh(h, w3_ref, b3_ref)
    h = dense_tanh(h, w4_ref, b4_ref)
    h = dense_tanh(h, w5_ref, b5_ref)

    # Layer 6 (output width 1): f32 VPU multiply + XLU lane reduction, stored
    # as a (tm, 1) block -> no 128x-padded output writeback.
    out_ref[...] = (jnp.sum(h * w6_ref[...], axis=-1, keepdims=True)
                    + b6_ref[...])


def _pad_to(a, shape):
    """Zero-pad a 2-D array up to `shape` (no-op if already that shape)."""
    pads = [(0, s - d) for d, s in zip(a.shape, shape)]
    return jnp.pad(a, pads)


def prepare_params(params):
    """Pad hidden width 100 -> 128 and cast hidden weights to bf16, once.

    Padded rows/cols are zero, so results are numerically identical to the
    unpadded network (tanh(0) = 0 feeds zero weight columns).
    """
    (w1, b1), (w2, b2), (w3, b3), (w4, b4), (w5, b5), (w6, b6) = params
    in_feat, units = w1.shape
    hid = _round_up(units, LANE)                        # 100 -> 128

    w1p = _pad_to(w1, (in_feat, hid)).astype(jnp.float32)
    b1p = _pad_to(b1, (1, hid)).astype(jnp.float32)

    def hidden(w, b):
        return (_pad_to(w, (hid, hid)).astype(jnp.bfloat16),
                _pad_to(b, (1, hid)).astype(jnp.float32))

    w2p, b2p = hidden(w2, b2)
    w3p, b3p = hidden(w3, b3)
    w4p, b4p = hidden(w4, b4)
    w5p, b5p = hidden(w5, b5)

    w6p = _pad_to(w6.T, (1, hid)).astype(jnp.float32)   # (1, 128) row, f32
    b6p = b6.astype(jnp.float32)                        # (1, 1)
    return (w1p, b1p, w2p, b2p, w3p, b3p, w4p, b4p, w5p, b5p, w6p, b6p)


@functools.partial(jax.jit, static_argnames=("tile_m",))
def neural_network_forward(x, y, t, padded_params, *, tile_m=2048):
    """Pallas equivalent of NeuralNetwork.forward(x, y, t).

    x, y, t: float32 arrays of shape [N, 1]. padded_params: prepare_params()
    output. Returns float32 [N, 1].
    """
    xin = jnp.concatenate([x, y, t], axis=-1).astype(jnp.float32)   # (N, 3)
    n, in_feat = xin.shape

    (w1p, b1p, w2p, b2p, w3p, b3p,
     w4p, b4p, w5p, b5p, w6p, b6p) = padded_params
    hid = w1p.shape[1]

    # Tile rows: multiple of 16 (bf16 sublane packing), large tiles for the
    # serial single-TC grid on v5e/v6e, but never more than ceil(n/2) so the
    # grid always has >= 2 steps; padding N to an even step count keeps both
    # v7x TensorCores busy.
    tm = max(16, min(_round_up(tile_m, 16), _round_up(pl.cdiv(n, 2), 16)))
    n_pad = _round_up(n, 2 * tm)
    if n_pad != n:
        xin = jnp.pad(xin, ((0, n_pad - n), (0, 0)))
    grid = (n_pad // tm,)

    def const_spec(shape):
        # Whole array resident in VMEM; constant block index -> DMA'd once.
        return pl.BlockSpec(shape, lambda i: (0, 0))

    out = pl.pallas_call(
        _mlp_kernel,
        out_shape=jax.ShapeDtypeStruct((n_pad, 1), jnp.float32),
        grid_spec=pltpu.PrefetchScalarGridSpec(
            num_scalar_prefetch=0,
            grid=grid,
            in_specs=[
                pl.BlockSpec((tm, in_feat), lambda i: (i, 0)),      # xin tile
                const_spec((in_feat, hid)), const_spec((1, hid)),   # layer 1
                const_spec((hid, hid)),     const_spec((1, hid)),   # layer 2
                const_spec((hid, hid)),     const_spec((1, hid)),   # layer 3
                const_spec((hid, hid)),     const_spec((1, hid)),   # layer 4
                const_spec((hid, hid)),     const_spec((1, hid)),   # layer 5
                const_spec((1, hid)),       const_spec((1, 1)),     # layer 6
            ],
            out_specs=pl.BlockSpec((tm, 1), lambda i: (i, 0)),
        ),
        compiler_params=pltpu.CompilerParams(
            dimension_semantics=("parallel",),
            vmem_limit_bytes=24 << 20,
        ),
    )(xin, w1p, b1p, w2p, b2p, w3p, b3p, w4p, b4p, w5p, b5p, w6p, b6p)

    return out[:n]   # (N, 1), contiguous slice (no strided readback)


def init_params(key, units=UNITS):
    """Deterministic init mimicking nn.Linear shapes.

    PyTorch stores weight as [out, in]; here we store the transpose
    [in, out] so the kernel does x @ W + b directly. Biases are [1, out].
    """
    dims = [(3, units), (units, units), (units, units),
            (units, units), (units, units), (units, 1)]
    params = []
    for fan_in, fan_out in dims:
        kw, kb, key = jax.random.split(key, 3)
        bound = 1.0 / jnp.sqrt(fan_in)     # nn.Linear default init range
        w = jax.random.uniform(kw, (fan_in, fan_out), jnp.float32,
                               minval=-bound, maxval=bound)
        b = jax.random.uniform(kb, (1, fan_out), jnp.float32,
                               minval=-bound, maxval=bound)
        params.append((w, b))
    return params


def _reference_forward_f32(x, y, t, params):
    """Pure-JAX f32 reference of the PyTorch forward."""
    h = jnp.concatenate([x, y, t], axis=-1)
    for i, (w, b) in enumerate(params):
        h = jnp.dot(h, w, precision=jax.lax.Precision.HIGHEST) + b
        if i < len(params) - 1:
            h = jnp.tanh(h)
    return h


def _reference_forward_bf16(x, y, t, params):
    """Reference mirroring the kernel numerics (bf16 MXU operands)."""
    (w1, b1), (w2, b2), (w3, b3), (w4, b4), (w5, b5), (w6, b6) = params
    h = jnp.concatenate([x, y, t], axis=-1)
    h = jnp.tanh(jnp.dot(h, w1, precision=jax.lax.Precision.HIGHEST) + b1)
    for w, b in ((w2, b2), (w3, b3), (w4, b4), (w5, b5)):
        acc = jnp.dot(h.astype(jnp.bfloat16), w.astype(jnp.bfloat16),
                      preferred_element_type=jnp.float32)
        h = jnp.tanh(acc + b)
    return jnp.dot(h, w6, precision=jax.lax.Precision.HIGHEST) + b6


if __name__ == "__main__":
    key = jax.random.PRNGKey(0)
    kp, kx, ky, kt = jax.random.split(key, 4)

    params = init_params(kp, UNITS)
    padded_params = prepare_params(params)   # run once, outside the hot loop

    # 1000 is not a multiple of the tile size, so the batch-padding path is
    # exercised, and the resulting even 2-step grid shards across both v7x
    # TensorCores.
    N = 1000
    x = jax.random.normal(kx, (N, 1), jnp.float32)
    y = jax.random.normal(ky, (N, 1), jnp.float32)
    t = jax.random.normal(kt, (N, 1), jnp.float32)

    out = neural_network_forward(x, y, t, padded_params)
    out = jax.block_until_ready(out)
    assert out.shape == (N, 1)

    # Tight check vs. a JAX reference using the same bf16-operand numerics.
    ref_bf16 = _reference_forward_bf16(x, y, t, params)
    assert jnp.allclose(out, ref_bf16, atol=1e-4, rtol=1e-4), \
        "mismatch vs bf16-operand reference"

    # Looser check vs. the full-f32 PyTorch-equivalent reference (tolerance
    # re-tuned for bf16 MXU operands; tanh keeps activations bounded).
    ref_f32 = _reference_forward_f32(x, y, t, params)
    assert jnp.allclose(out, ref_f32, atol=2e-2, rtol=2e-2), \
        "mismatch vs f32 reference"

    print("KERNEL_OK")
</pallas_src>

<mosaic_0001>
module attributes {stable_mosaic.version = 11 : i64} {
  func.func @_mlp_kernel(%arg0: i32, %arg1: memref<512x3xf32, #tpu.memory_space<vmem>>, %arg2: memref<3x128xf32, #tpu.memory_space<vmem>>, %arg3: memref<1x128xf32, #tpu.memory_space<vmem>>, %arg4: memref<128x128xbf16, #tpu.memory_space<vmem>>, %arg5: memref<1x128xf32, #tpu.memory_space<vmem>>, %arg6: memref<128x128xbf16, #tpu.memory_space<vmem>>, %arg7: memref<1x128xf32, #tpu.memory_space<vmem>>, %arg8: memref<128x128xbf16, #tpu.memory_space<vmem>>, %arg9: memref<1x128xf32, #tpu.memory_space<vmem>>, %arg10: memref<128x128xbf16, #tpu.memory_space<vmem>>, %arg11: memref<1x128xf32, #tpu.memory_space<vmem>>, %arg12: memref<1x128xf32, #tpu.memory_space<vmem>>, %arg13: memref<1x1xf32, #tpu.memory_space<vmem>>, %arg14: memref<512x1xf32, #tpu.memory_space<vmem>>) attributes {dimension_semantics = [#tpu.dimension_semantics<parallel>], iteration_bounds = array<i64: 2>, scalar_prefetch = 0 : i64, scratch_operands = 0 : i64, tpu.core_type = #tpu.core_type<tc>, window_params = [{transform_indices = @transform_0, window_bounds = array<i64: 512, 3>}, {pipeline_mode = #tpu.pipeline_mode<synchronous>, transform_indices = @transform_1, window_bounds = array<i64: 3, 128>}, {pipeline_mode = #tpu.pipeline_mode<synchronous>, transform_indices = @transform_2, window_bounds = array<i64: 1, 128>}, {pipeline_mode = #tpu.pipeline_mode<synchronous>, transform_indices = @transform_3, window_bounds = array<i64: 128, 128>}, {pipeline_mode = #tpu.pipeline_mode<synchronous>, transform_indices = @transform_4, window_bounds = array<i64: 1, 128>}, {pipeline_mode = #tpu.pipeline_mode<synchronous>, transform_indices = @transform_5, window_bounds = array<i64: 128, 128>}, {pipeline_mode = #tpu.pipeline_mode<synchronous>, transform_indices = @transform_6, window_bounds = array<i64: 1, 128>}, {pipeline_mode = #tpu.pipeline_mode<synchronous>, transform_indices = @transform_7, window_bounds = array<i64: 128, 128>}, {pipeline_mode = #tpu.pipeline_mode<synchronous>, transform_indices = @transform_8, window_bounds = array<i64: 1, 128>}, {pipeline_mode = #tpu.pipeline_mode<synchronous>, transform_indices = @transform_9, window_bounds = array<i64: 128, 128>}, {pipeline_mode = #tpu.pipeline_mode<synchronous>, transform_indices = @transform_10, window_bounds = array<i64: 1, 128>}, {pipeline_mode = #tpu.pipeline_mode<synchronous>, transform_indices = @transform_11, window_bounds = array<i64: 1, 128>}, {pipeline_mode = #tpu.pipeline_mode<synchronous>, transform_indices = @transform_12, window_bounds = array<i64: 1, 1>}, {transform_indices = @transform_13, window_bounds = array<i64: 512, 1>}]} {
    %c0 = arith.constant 0 : index
    %c0_0 = arith.constant 0 : index
    %0 = vector.load %arg1[%c0, %c0_0] : memref<512x3xf32, #tpu.memory_space<vmem>>, vector<512x3xf32>
    %1 = vector.extract_strided_slice %0 {offsets = [0, 0], sizes = [512, 1], strides = [1, 1]} : vector<512x3xf32> to vector<512x1xf32>
    %2 = vector.extract_strided_slice %0 {offsets = [0, 1], sizes = [512, 1], strides = [1, 1]} : vector<512x3xf32> to vector<512x1xf32>
    %3 = vector.extract_strided_slice %0 {offsets = [0, 2], sizes = [512, 1], strides = [1, 1]} : vector<512x3xf32> to vector<512x1xf32>
    %c0_1 = arith.constant 0 : index
    %c0_2 = arith.constant 0 : index
    %4 = vector.load %arg2[%c0_1, %c0_2] : memref<3x128xf32, #tpu.memory_space<vmem>>, vector<1x128xf32>
    %5 = vector.broadcast %1 : vector<512x1xf32> to vector<512x128xf32>
    %6 = vector.broadcast %4 : vector<1x128xf32> to vector<512x128xf32>
    %7 = arith.mulf %5, %6 : vector<512x128xf32>
    %c1 = arith.constant 1 : index
    %c0_3 = arith.constant 0 : index
    %8 = vector.load %arg2[%c1, %c0_3] : memref<3x128xf32, #tpu.memory_space<vmem>>, vector<1x128xf32>
    %9 = vector.broadcast %2 : vector<512x1xf32> to vector<512x128xf32>
    %10 = vector.broadcast %8 : vector<1x128xf32> to vector<512x128xf32>
    %11 = arith.mulf %9, %10 : vector<512x128xf32>
    %12 = arith.addf %7, %11 : vector<512x128xf32>
    %c2 = arith.constant 2 : index
    %c0_4 = arith.constant 0 : index
    %13 = vector.load %arg2[%c2, %c0_4] : memref<3x128xf32, #tpu.memory_space<vmem>>, vector<1x128xf32>
    %14 = vector.broadcast %3 : vector<512x1xf32> to vector<512x128xf32>
    %15 = vector.broadcast %13 : vector<1x128xf32> to vector<512x128xf32>
    %16 = arith.mulf %14, %15 : vector<512x128xf32>
    %17 = arith.addf %12, %16 : vector<512x128xf32>
    %c0_5 = arith.constant 0 : index
    %c0_6 = arith.constant 0 : index
    %18 = vector.load %arg3[%c0_5, %c0_6] : memref<1x128xf32, #tpu.memory_space<vmem>>, vector<1x128xf32>
    %19 = vector.broadcast %18 : vector<1x128xf32> to vector<512x128xf32>
    %20 = arith.addf %17, %19 : vector<512x128xf32>
    %21 = math.tanh %20 : vector<512x128xf32>
    %22 = arith.truncf %21 : vector<512x128xf32> to vector<512x128xbf16>
    %c0_7 = arith.constant 0 : index
    %c0_8 = arith.constant 0 : index
    %23 = vector.load %arg4[%c0_7, %c0_8] : memref<128x128xbf16, #tpu.memory_space<vmem>>, vector<128x128xbf16>
    %cst = arith.constant dense<0.000000e+00> : vector<512x128xf32>
    %24 = tpu.matmul %22, %23, %cst {dimension_numbers = #tpu.dot_dimension_numbers<[1], [0], [0], [1], [0, 0, 1, 1], [], []>} : vector<512x128xbf16>, vector<128x128xbf16>, vector<512x128xf32> -> vector<512x128xf32>
    %c0_9 = arith.constant 0 : index
    %c0_10 = arith.constant 0 : index
    %25 = vector.load %arg5[%c0_9, %c0_10] : memref<1x128xf32, #tpu.memory_space<vmem>>, vector<1x128xf32>
    %26 = vector.broadcast %25 : vector<1x128xf32> to vector<512x128xf32>
    %27 = arith.addf %24, %26 : vector<512x128xf32>
    %28 = math.tanh %27 : vector<512x128xf32>
    %29 = arith.truncf %28 : vector<512x128xf32> to vector<512x128xbf16>
    %c0_11 = arith.constant 0 : index
    %c0_12 = arith.constant 0 : index
    %30 = vector.load %arg6[%c0_11, %c0_12] : memref<128x128xbf16, #tpu.memory_space<vmem>>, vector<128x128xbf16>
    %cst_13 = arith.constant dense<0.000000e+00> : vector<512x128xf32>
    %31 = tpu.matmul %29, %30, %cst_13 {dimension_numbers = #tpu.dot_dimension_numbers<[1], [0], [0], [1], [0, 0, 1, 1], [], []>} : vector<512x128xbf16>, vector<128x128xbf16>, vector<512x128xf32> -> vector<512x128xf32>
    %c0_14 = arith.constant 0 : index
    %c0_15 = arith.constant 0 : index
    %32 = vector.load %arg7[%c0_14, %c0_15] : memref<1x128xf32, #tpu.memory_space<vmem>>, vector<1x128xf32>
    %33 = vector.broadcast %32 : vector<1x128xf32> to vector<512x128xf32>
    %34 = arith.addf %31, %33 : vector<512x128xf32>
    %35 = math.tanh %34 : vector<512x128xf32>
    %36 = arith.truncf %35 : vector<512x128xf32> to vector<512x128xbf16>
    %c0_16 = arith.constant 0 : index
    %c0_17 = arith.constant 0 : index
    %37 = vector.load %arg8[%c0_16, %c0_17] : memref<128x128xbf16, #tpu.memory_space<vmem>>, vector<128x128xbf16>
    %cst_18 = arith.constant dense<0.000000e+00> : vector<512x128xf32>
    %38 = tpu.matmul %36, %37, %cst_18 {dimension_numbers = #tpu.dot_dimension_numbers<[1], [0], [0], [1], [0, 0, 1, 1], [], []>} : vector<512x128xbf16>, vector<128x128xbf16>, vector<512x128xf32> -> vector<512x128xf32>
    %c0_19 = arith.constant 0 : index
    %c0_20 = arith.constant 0 : index
    %39 = vector.load %arg9[%c0_19, %c0_20] : memref<1x128xf32, #tpu.memory_space<vmem>>, vector<1x128xf32>
    %40 = vector.broadcast %39 : vector<1x128xf32> to vector<512x128xf32>
    %41 = arith.addf %38, %40 : vector<512x128xf32>
    %42 = math.tanh %41 : vector<512x128xf32>
    %43 = arith.truncf %42 : vector<512x128xf32> to vector<512x128xbf16>
    %c0_21 = arith.constant 0 : index
    %c0_22 = arith.constant 0 : index
    %44 = vector.load %arg10[%c0_21, %c0_22] : memref<128x128xbf16, #tpu.memory_space<vmem>>, vector<128x128xbf16>
    %cst_23 = arith.constant dense<0.000000e+00> : vector<512x128xf32>
    %45 = tpu.matmul %43, %44, %cst_23 {dimension_numbers = #tpu.dot_dimension_numbers<[1], [0], [0], [1], [0, 0, 1, 1], [], []>} : vector<512x128xbf16>, vector<128x128xbf16>, vector<512x128xf32> -> vector<512x128xf32>
    %c0_24 = arith.constant 0 : index
    %c0_25 = arith.constant 0 : index
    %46 = vector.load %arg11[%c0_24, %c0_25] : memref<1x128xf32, #tpu.memory_space<vmem>>, vector<1x128xf32>
    %47 = vector.broadcast %46 : vector<1x128xf32> to vector<512x128xf32>
    %48 = arith.addf %45, %47 : vector<512x128xf32>
    %49 = math.tanh %48 : vector<512x128xf32>
    %c0_26 = arith.constant 0 : index
    %c0_27 = arith.constant 0 : index
    %50 = vector.load %arg12[%c0_26, %c0_27] : memref<1x128xf32, #tpu.memory_space<vmem>>, vector<1x128xf32>
    %51 = vector.broadcast %50 : vector<1x128xf32> to vector<512x128xf32>
    %52 = arith.mulf %49, %51 : vector<512x128xf32>
    %cst_28 = arith.constant dense<0.000000e+00> : vector<512xf32>
    %53 = vector.multi_reduction <add>, %52, %cst_28 [1] : vector<512x128xf32> to vector<512xf32>
    %54 = vector.shape_cast %53 : vector<512xf32> to vector<512x1xf32>
    %c0_29 = arith.constant 0 : index
    %c0_30 = arith.constant 0 : index
    %55 = vector.load %arg13[%c0_29, %c0_30] : memref<1x1xf32, #tpu.memory_space<vmem>>, vector<1x1xf32>
    %56 = vector.broadcast %55 : vector<1x1xf32> to vector<512x1xf32>
    %57 = arith.addf %54, %56 : vector<512x1xf32>
    %c0_31 = arith.constant 0 : index
    %c0_32 = arith.constant 0 : index
    %58 = vector.load %arg14[%c0_31, %c0_32] : memref<512x1xf32, #tpu.memory_space<vmem>>, vector<512x1xf32>
    tpu.vector_store %arg14[%c0_31, %c0_32], %57 {strides = array<i32>} : memref<512x1xf32, #tpu.memory_space<vmem>>, vector<512x1xf32>,
    return
  }
  func.func @transform_0(%arg0: i32) -> (i32, i32) {
    %c0_i32 = arith.constant 0 : i32
    %c0_i32_0 = arith.constant 0 : i32
    return %arg0, %c0_i32 : i32, i32
  }
  func.func @transform_1(%arg0: i32) -> (i32, i32) {
    %c0_i32 = arith.constant 0 : i32
    %c0_i32_0 = arith.constant 0 : i32
    %c0_i32_1 = arith.constant 0 : i32
    return %c0_i32, %c0_i32_0 : i32, i32
  }
  func.func @transform_2(%arg0: i32) -> (i32, i32) {
    %c0_i32 = arith.constant 0 : i32
    %c0_i32_0 = arith.constant 0 : i32
    %c0_i32_1 = arith.constant 0 : i32
    return %c0_i32, %c0_i32_0 : i32, i32
  }
  func.func @transform_3(%arg0: i32) -> (i32, i32) {
    %c0_i32 = arith.constant 0 : i32
    %c0_i32_0 = arith.constant 0 : i32
    %c0_i32_1 = arith.constant 0 : i32
    return %c0_i32, %c0_i32_0 : i32, i32
  }
  func.func @transform_4(%arg0: i32) -> (i32, i32) {
    %c0_i32 = arith.constant 0 : i32
    %c0_i32_0 = arith.constant 0 : i32
    %c0_i32_1 = arith.constant 0 : i32
    return %c0_i32, %c0_i32_0 : i32, i32
  }
  func.func @transform_5(%arg0: i32) -> (i32, i32) {
    %c0_i32 = arith.constant 0 : i32
    %c0_i32_0 = arith.constant 0 : i32
    %c0_i32_1 = arith.constant 0 : i32
    return %c0_i32, %c0_i32_0 : i32, i32
  }
  func.func @transform_6(%arg0: i32) -> (i32, i32) {
    %c0_i32 = arith.constant 0 : i32
    %c0_i32_0 = arith.constant 0 : i32
    %c0_i32_1 = arith.constant 0 : i32
    return %c0_i32, %c0_i32_0 : i32, i32
  }
  func.func @transform_7(%arg0: i32) -> (i32, i32) {
    %c0_i32 = arith.constant 0 : i32
    %c0_i32_0 = arith.constant 0 : i32
    %c0_i32_1 = arith.constant 0 : i32
    return %c0_i32, %c0_i32_0 : i32, i32
  }
  func.func @transform_8(%arg0: i32) -> (i32, i32) {
    %c0_i32 = arith.constant 0 : i32
    %c0_i32_0 = arith.constant 0 : i32
    %c0_i32_1 = arith.constant 0 : i32
    return %c0_i32, %c0_i32_0 : i32, i32
  }
  func.func @transform_9(%arg0: i32) -> (i32, i32) {
    %c0_i32 = arith.constant 0 : i32
    %c0_i32_0 = arith.constant 0 : i32
    %c0_i32_1 = arith.constant 0 : i32
    return %c0_i32, %c0_i32_0 : i32, i32
  }
  func.func @transform_10(%arg0: i32) -> (i32, i32) {
    %c0_i32 = arith.constant 0 : i32
    %c0_i32_0 = arith.constant 0 : i32
    %c0_i32_1 = arith.constant 0 : i32
    return %c0_i32, %c0_i32_0 : i32, i32
  }
  func.func @transform_11(%arg0: i32) -> (i32, i32) {
    %c0_i32 = arith.constant 0 : i32
    %c0_i32_0 = arith.constant 0 : i32
    %c0_i32_1 = arith.constant 0 : i32
    return %c0_i32, %c0_i32_0 : i32, i32
  }
  func.func @transform_12(%arg0: i32) -> (i32, i32) {
    %c0_i32 = arith.constant 0 : i32
    %c0_i32_0 = arith.constant 0 : i32
    %c0_i32_1 = arith.constant 0 : i32
    return %c0_i32, %c0_i32_0 : i32, i32
  }
  func.func @transform_13(%arg0: i32) -> (i32, i32) {
    %c0_i32 = arith.constant 0 : i32
    %c0_i32_0 = arith.constant 0 : i32
    return %arg0, %c0_i32 : i32, i32
  }
}

</mosaic_0001>

<bundles_post_ra>
// kernel: neural_network_forward.1
= control target key start
LH: loop header
LB: loop body
LE: loop exit
PB: predicated region body
PF: predicated region fallthrough
CT: control target
= control target key end

     0   :  { %s5434_s27 = smov 0   ;;  %s7040_s0 = inlined_call_operand.vmem [shape: f32[1024,3], index: 0, kind: input, shape index: {}]   ;;  %s7041_s1 = inlined_call_operand.vmem [shape: f32[3,128], index: 1, kind: input, shape index: {}]   ;;  %s7042_s2 = inlined_call_operand.vmem [shape: f32[1,128], index: 2, kind: input, shape index: {}]   ;;  %s7043_s3 = inlined_call_operand.vmem [shape: bf16[128,128], index: 3, kind: input, shape index: {}]   ;;  %s7044_s4 = inlined_call_operand.vmem [shape: f32[1,128], index: 4, kind: input, shape index: {}]   ;;  %s7045_s5 = inlined_call_operand.vmem [shape: bf16[128,128], index: 5, kind: input, shape index: {}]   ;;  %s7046_s6 = inlined_call_operand.vmem [shape: f32[1,128], index: 6, kind: input, shape index: {}]   ;;  %s7047_s7 = inlined_call_operand.vmem [shape: bf16[128,128], index: 7, kind: input, shape index: {}]   ;;  %s7048_s8 = inlined_call_operand.vmem [shape: f32[1,128], index: 8, kind: input, shape index: {}]   ;;  %s7049_s9 = inlined_call_operand.vmem [shape: bf16[128,128], index: 9, kind: input, shape index: {}]   ;;  %s7050_s10 = inlined_call_operand.vmem [shape: f32[1,128], index: 10, kind: input, shape index: {}]   ;;  %s7051_s11 = inlined_call_operand.vmem [shape: f32[1,128], index: 11, kind: input, shape index: {}]   ;;  %s7052_s12 = inlined_call_operand.<no memory space> [shape: f32[1,1], index: 12, kind: input, shape index: {}]   ;;  %s7053_s13 = inlined_call_operand.vmem [shape: f32[1024,1], index: 13, kind: output, shape index: {}]  }
   0x1   :  { %v18_v0 = vstv %s7052_s12 }
   0x2   :  { %19 = vst [vmem:[#allocation2] sm:$0x1] %v18_v0 }
   0x3 LB: > { %s4028_s28 = sadd.s32 4294967295, %s5356_s27   ;;  %p4032_p0 = scmp.ge.s32.totalorder %s5356_s27, 1  ;;  %s5356_s27 = sphi %s5434_s27, %s25_s27  }
   0x4   : > { %p390_p1 = scmp.lt.s32.totalorder %s5356_s27, 3 }
   0x6   : > { %p391_p2 = pnand %p4032_p0, %p390_p1 }
   0x8   : > { %394 = sbr.rel (%p391_p2) target bundleno = 1792 (0x700), region = 72 }
   0xf   : > { %s4033_s29 = sshll.u32 %s4028_s28, 6  ;;  %v7058_v1 = vmov 1   ;;  %v7056_v8 = vmov 0   ;;  %v7054_v12 = vmov 2   ;;  %v4656_v55 = vld [vmem:[%s7043_s3] sm:$0xff]   ;;  %v4657_v59 = vld [vmem:[%s7043_s3 + $0x8] sm:$0xff]  }
  0x10   : > { %4574 = vset.pattern.permute.xlu0 %v7058_v1  ;;  %4572 = vset.pattern.permute.xlu1 %v7058_v1  ;;  %p435_p3 = scmp.lt.s32.totalorder %s4033_s29, 127  ;;  %v4658_v62 = vld [vmem:[%s7043_s3 + $0x10] sm:$0xff]   ;;  %vm3907_vm0 = vcmask 7168  }
  0x11   : > { %4241 = vmatprep.subr.bf16.mxu0 %v4656_v55 }
  0x12   : > { %s7148_s29 = smov (!%p435_p3, %s4033_s29), 127  ;;  %4242 = vmatpush3.bf16.msra.mxu0 %v4656_v55 }
  0x13   : > { %s4034_s12 = sshll.u32 %s7148_s29, 3  ;;  %4243 = vmatprep.subr.bf16.mxu0 %v4657_v59 }
  0x14   : > { %s5452_s15 = scalar_lea.vmem %s7040_s0, %s4034_s12  ;;  %s6769_s26 = scalar_lea.vmem %s7053_s13, %s4034_s12 }
  0x15   : > { %v5455_v2 = vld [vmem:[%s5452_s15 + $0x10] sm:$0xff]  ;;  %v5458_v3 = vld [vmem:[%s5452_s15] sm:$0xff]  ;;  %v452_v4 = vld [vmem:[%s5452_s15 + $0x28] sm:$0xff] }
  0x16   : > { %910 = vperm.xlu0 %4574, %v5455_v2   ;;  %902 = vperm.xlu1 %4572, %v5458_v3   ;;  %v5464_v5 = vld [vmem:[%s5452_s15 + $0x8] sm:$0xff]  ;;  %v453_v6 = vld [vmem:[%s5452_s15 + $0x30] sm:$0xff]  ;;  %v450_v7 = vld [vmem:[%s5452_s15 + $0x18] sm:$0xff] }
  0x17   : > { %v5471_v9 = vld [vmem:[%s5452_s15 + $0x50] sm:$0xff]  ;;  %v5475_v10 = vld [vmem:[%s5452_s15 + $0x68] sm:$0xff]  ;;  %v5503_v17 = vld [vmem:[%s5452_s15 + $0x20] sm:$0xff]  ;;  %4244 = vmatpush3.bf16.msra.mxu0 %v4657_v59 }
  0x18   : > { %v5480_v11 = vld [vmem:[%s5452_s15 + $0x70] sm:$0xff]  ;;  %v5490_v14 = vld [vmem:[%s5452_s15 + $0xa8] sm:$0xff]  ;;  %v454_v20 = vld [vmem:[%s5452_s15 + $0x38] sm:$0xff]  ;;  %4245 = vmatprep.subr.bf16.mxu0 %v4658_v62 }
  0x19   : > { %v5486_v13 = vld [vmem:[%s5452_s15 + $0x90] sm:$0xff]  ;;  %v5509_v18 = vld [vmem:[%s5452_s15 + $0xe8] sm:$0xff]  ;;  %v455_v24 = vld [vmem:[%s5452_s15 + $0x40] sm:$0xff] }
  0x1a   : > { %922 = vperm.xlu0 %4574, %v452_v4   ;;  %906 = vperm.xlu1 %4572, %v5464_v5   ;;  %v5494_v15 = vld [vmem:[%s5452_s15 + $0xb0] sm:$0xff]  ;;  %v5523_v22 = vld [vmem:[%s5452_s15 + $0x128] sm:$0xff]  ;;  %v5544_v26 = vld [vmem:[%s5452_s15 + $0x60] sm:$0xff] }
  0x1b   : > { %v5500_v16 = vld [vmem:[%s5452_s15 + $0xd0] sm:$0xff]  ;;  %7074 = vst [vmem:[#allocation3_spill] sm:$0xff] %v5523_v22  ;;  %v5539_v25 = vld [vmem:[%s5452_s15 + $0x48] sm:$0xff]  ;;  %v458_v27 = vld [vmem:[%s5452_s15 + $0x58] sm:$0xff]  ;;  %4246 = vmatpush3.bf16.msra.mxu0 %v4658_v62 }
  0x1c   : > { %v5514_v19 = vld [vmem:[%s5452_s15 + $0xf0] sm:$0xff]  ;;  %v462_v28 = vld [vmem:[%s5452_s15 + $0x78] sm:$0xff]  ;;  %v5551_v29 = vld [vmem:[%s5452_s15 + $0x88] sm:$0xff] }
  0x1d   : > { %v5519_v21 = vld [vmem:[%s5452_s15 + $0x110] sm:$0xff]  ;;  %v5556_v30 = vld [vmem:[%s5452_s15 + $0xa0] sm:$0xff]  ;;  %v5561_v31 = vld [vmem:[%s5452_s15 + $0xb8] sm:$0xff] }
  0x1e   : > { %926 = vperm.xlu0 %4574, %v453_v6   ;;  %4573 = vset.pattern.permute.xlu1 %v7056_v8  ;;  %v5528_v23 = vld [vmem:[%s5452_s15 + $0x130] sm:$0xff]  ;;  %v5566_v32 = vld [vmem:[%s5452_s15 + $0xc8] sm:$0xff]  ;;  %v5570_v33 = vld [vmem:[%s5452_s15 + $0xe0] sm:$0xff] }
  0x1f   : > { %529 = vperm.xlu1 %4573, %v450_v7   ;;  %7075 = vst [vmem:[#allocation4_spill] sm:$0xff] %v5528_v23  ;;  %v5576_v34 = vld [vmem:[%s5452_s15 + $0xf8] sm:$0xff]  ;;  %v5581_v35 = vld [vmem:[%s5452_s15 + $0x108] sm:$0xff]  ;;  %v5586_v36 = vld [vmem:[%s5452_s15 + $0x120] sm:$0xff] }
  0x20   : > { %7076 = vst [vmem:[#allocation5_spill] sm:$0xff] %v5586_v36  ;;  %v5592_v37 = vld [vmem:[%s5452_s15 + $0x138] sm:$0xff]  ;;  %v5596_v38 = vld [vmem:[%s5452_s15 + $0x148] sm:$0xff]  ;;  %v5601_v39 = vld [vmem:[%s5452_s15 + $0x160] sm:$0xff] }
  0x21   : > { %7077 = vst [vmem:[#allocation6_spill] sm:$0xff] %v5592_v37  ;;  %7078 = vst [vmem:[#allocation7_spill] sm:$0xff] %v5596_v38  ;;  %v494_v40 = vld [vmem:[%s5452_s15 + $0x178] sm:$0xff]  ;;  %v5613_v43 = vld [vmem:[%s5452_s15 + $0x188] sm:$0xff] }
  0x22   : > { %942 = vperm.xlu0 %4574, %v5471_v9   ;;  %v463_v46 = vld [vmem:[%s5452_s15 + $0x80] sm:$0xff]  ;;  %v502_v50 = vld [vmem:[%s5452_s15 + $0x1b8] sm:$0xff]  ;;  %v5637_v53 = vld [vmem:[%s5452_s15 + $0x1c8] sm:$0xff] }
  0x23   : > { %4575 = vset.pattern.permute.xlu1 %v7058_v1  ;;  %v5623_v47 = vld [vmem:[%s5452_s15 + $0x1a0] sm:$0xff]  ;;  %v466_v57 = vld [vmem:[%s5452_s15 + $0x98] sm:$0xff] }
  0x24   : > { %914 = vperm.xlu1 %4575, %v450_v7   ;;  %v471_v62 = vld [vmem:[%s5452_s15 + $0xc0] sm:$0xff] }
  0x26   : > { %954 = vperm.xlu0 %4574, %v5475_v10  }
  0x28   : > { %4576 = vset.pattern.permute.xlu1 %v7054_v12 }
  0x29   : > { %1291 = vperm.xlu1 %4576, %v5458_v3  }
  0x2a   : > { %958 = vperm.xlu0 %4574, %v5480_v11  }
  0x2d   : > { %1299 = vperm.xlu1 %4576, %v5455_v2  }
  0x2e   : > { %974 = vperm.xlu0 %4574, %v5486_v13  }
  0x31   : > { %1303 = vperm.xlu1 %4576, %v450_v7  }
  0x32   : > { %986 = vperm.xlu0 %4574, %v5490_v14  }
  0x35   : > { %4577 = vset.pattern.permute.xlu1 %v7056_v8 }
  0x36   : > { %990 = vperm.xlu0 %4574, %v5494_v15   ;;  %539 = vperm.xlu1 %4577, %v452_v4  }
  0x3a   : > { %1006 = vperm.xlu0 %4574, %v5500_v16   ;;  %4578 = vset.pattern.permute.xlu1 %v7058_v1 }
  0x3b   : > { %918 = vperm.xlu1 %4578, %v5503_v17  }
  0x3e   : > { %1018 = vperm.xlu0 %4574, %v5509_v18  }
  0x3f   : > { %4579 = vset.pattern.permute.xlu1 %v7056_v8 }
  0x40   : > { %544 = vperm.xlu1 %4579, %v453_v6  }
  0x42   : > { %1022 = vperm.xlu0 %4574, %v5514_v19  }
  0x44   : > { %549 = vperm.xlu1 %4579, %v454_v20  }
  0x46   : > { %1038 = vperm.xlu0 %4574, %v5519_v21  }
  0x48   : > { %4580 = vset.pattern.permute.xlu1 %v7058_v1 }
  0x49   : > { %930 = vperm.xlu1 %4580, %v454_v20  }
  0x4a   : > { %1050 = vperm.xlu0 %4574, %v5523_v22  }
  0x4d   : > { %4581 = vset.pattern.permute.xlu1 %v7054_v12 }
  0x4e   : > { %1054 = vperm.xlu0 %4574, %v5528_v23   ;;  %1311 = vperm.xlu1 %4581, %v452_v4  }
  0x52   : > { %4620 = vset.pattern.permute.xlu0 %v7054_v12  ;;  %1315 = vperm.xlu1 %4581, %v453_v6  }
  0x53   : > { %1295 = vperm.xlu0 %4620, %v5464_v5  }
  0x56   : > { %4582 = vset.pattern.permute.xlu1 %v7056_v8 }
  0x57   : > { %1307 = vperm.xlu0 %4620, %v5503_v17   ;;  %554 = vperm.xlu1 %4582, %v455_v24  }
  0x5b   : > { %1319 = vperm.xlu0 %4620, %v454_v20   ;;  %4583 = vset.pattern.permute.xlu1 %v7058_v1  ;;  %v4662_v20 = vld [vmem:[%s7043_s3 + $0x30] sm:$0xff]  }
  0x5c   : > { %934 = vperm.xlu1 %4583, %v455_v24  }
  0x5f   : > { %1327 = vperm.xlu0 %4620, %v5539_v25  }
  0x60   : > { %938 = vperm.xlu1 %4583, %v5539_v25  }
  0x63   : > { %1339 = vperm.xlu0 %4620, %v5544_v26  }
  0x64   : > { %4584 = vset.pattern.permute.xlu1 %v7056_v8 }
  0x65   : > { %569 = vperm.xlu1 %4584, %v458_v27  }
  0x67   : > { %1351 = vperm.xlu0 %4620, %v462_v28  }
  0x69   : > { %4585 = vset.pattern.permute.xlu1 %v7058_v1 }
  0x6a   : > { %946 = vperm.xlu1 %4585, %v458_v27  }
  0x6b   : > { %1359 = vperm.xlu0 %4620, %v5551_v29  }
  0x6e   : > { %4586 = vset.pattern.permute.xlu1 %v7054_v12 }
  0x6f   : > { %1371 = vperm.xlu0 %4620, %v5556_v30   ;;  %1323 = vperm.xlu1 %4586, %v455_v24  }
  0x73   : > { %1383 = vperm.xlu0 %4620, %v5561_v31   ;;  %1331 = vperm.xlu1 %4586, %v5471_v9  }
  0x77   : > { %1391 = vperm.xlu0 %4620, %v5566_v32   ;;  %1335 = vperm.xlu1 %4586, %v458_v27   ;;  %v4663_v27 = vld [vmem:[%s7043_s3 + $0x38] sm:$0xff]  }
  0x7b   : > { %1403 = vperm.xlu0 %4620, %v5570_v33   ;;  %4587 = vset.pattern.permute.xlu1 %v7056_v8 }
  0x7c   : > { %579 = vperm.xlu1 %4587, %v5475_v10  }
  0x7f   : > { %1415 = vperm.xlu0 %4620, %v5576_v34  }
  0x80   : > { %4588 = vset.pattern.permute.xlu1 %v7058_v1 }
  0x81   : > { %950 = vperm.xlu1 %4588, %v5544_v26  }
  0x83   : > { %1423 = vperm.xlu0 %4620, %v5581_v35  }
  0x85   : > { %4589 = vset.pattern.permute.xlu1 %v7056_v8 }
  0x86   : > { %584 = vperm.xlu1 %4589, %v5480_v11  }
  0x87   : > { %1435 = vperm.xlu0 %4620, %v5586_v36  }
  0x8a   : > { %589 = vperm.xlu1 %4589, %v462_v28  }
  0x8b   : > { %1447 = vperm.xlu0 %4620, %v5592_v37  }
  0x8e   : > { %4590 = vset.pattern.permute.xlu1 %v7058_v1 }
  0x8f   : > { %1455 = vperm.xlu0 %4620, %v5596_v38   ;;  %962 = vperm.xlu1 %4590, %v462_v28  }
  0x93   : > { %1467 = vperm.xlu0 %4620, %v5601_v39   ;;  %4591 = vset.pattern.permute.xlu1 %v7054_v12 }
  0x94   : > { %1343 = vperm.xlu1 %4591, %v5475_v10   ;;  %v4661_v10 = vld [vmem:[%s7043_s3 + $0x28] sm:$0xff]  }
  0x95   : > { %v5607_v41 = vpop.permute.xlu1 %902  ;;  %v5609_v42 = vpop.permute.xlu0 %910 }
  0x97   : > { %1479 = vperm.xlu0 %4620, %v494_v40  }
  0x98   : > { %1347 = vperm.xlu1 %4591, %v5480_v11  }
  0x99   : > { %v5615_v44 = vpop.permute.xlu1 %906  ;;  %v5617_v45 = vpop.permute.xlu0 %922 }
  0x9b   : > { %1487 = vperm.xlu0 %4620, %v5613_v43  }
  0x9c   : > { %4592 = vset.pattern.permute.xlu1 %v7056_v8 }
  0x9d   : > { %594 = vperm.xlu1 %4592, %v463_v46   ;;  %v5625_v48 = vpop.permute.xlu0 %926 }
  0x9e   : > { %v5627_v49 = vpop.permute.xlu1 %529 }
  0x9f   : > { %1499 = vperm.xlu0 %4620, %v5623_v47  }
  0xa1   : > { %4593 = vset.pattern.permute.xlu1 %v7058_v1  ;;  %v5632_v51 = vpop.permute.xlu0 %942 }
  0xa2   : > { %966 = vperm.xlu1 %4593, %v463_v46  }
  0xa3   : > { %1511 = vperm.xlu0 %4620, %v502_v50   ;;  %v5634_v52 = vpop.permute.xlu1 %914 }
  0xa5   : > { %v5639_v54 = vpop.permute.xlu0 %954 }
  0xa6   : > { %970 = vperm.xlu1 %4593, %v5551_v29  }
  0xa7   : > { %1519 = vperm.xlu0 %4620, %v5637_v53  }
  0xa8   : > { %v5646_v56 = vpop.permute.xlu1 %1291 }
  0xa9   : > { %v5649_v58 = vpop.permute.xlu0 %958 }
  0xaa   : > { %4594 = vset.pattern.permute.xlu1 %v7056_v8 }
  0xab   : > { %4648 = vset.pattern.permute.xlu0 %v7056_v8  ;;  %609 = vperm.xlu1 %4594, %v466_v57  }
  0xac   : > { %514 = vperm.xlu0 %4648, %v5458_v3   ;;  %v5657_v60 = vpop.permute.xlu1 %1299  ;;  %v4659_v3 = vld [vmem:[%s7043_s3 + $0x18] sm:$0xff]  }
  0xad   : > { %v5659_v61 = vpop.permute.xlu0 %974  ;;  %4247 = vmatprep.subr.bf16.mxu0 %v4659_v3 }
  0xae   : > { %4248 = vmatpush3.bf16.msra.mxu0 %v4659_v3 }
  0xaf   : > { %4595 = vset.pattern.permute.xlu1 %v7058_v1 }
  0xb0   : > { %519 = vperm.xlu0 %4648, %v5464_v5   ;;  %978 = vperm.xlu1 %4595, %v466_v57   ;;  %v5666_v63 = vpop.permute.xlu1 %1303  ;;  %v4660_v5 = vld [vmem:[%s7043_s3 + $0x20] sm:$0xff]  }
  0xb1   : > { %v5668_v0 = vpop.permute.xlu0 %986  ;;  %4249 = vmatprep.subr.bf16.mxu0 %v4660_v5 }
  0xb2   : > { %7079 = vst [vmem:[#allocation8_spill] sm:$0xff] %v5668_v0  ;;  %4250 = vmatpush3.bf16.msra.mxu0 %v4660_v5 }
  0xb3   : > { %4251 = vmatprep.subr.bf16.mxu0 %v4661_v10 }
  0xb4   : > { %524 = vperm.xlu0 %4648, %v5455_v2   ;;  %4596 = vset.pattern.permute.xlu1 %v7054_v12 }
  0xb5   : > { %1355 = vperm.xlu1 %4596, %v463_v46   ;;  %v5675_v4 = vpop.permute.xlu1 %539  ;;  %v5677_v6 = vpop.permute.xlu0 %990 }
  0xb6   : > { %7080 = vst [vmem:[#allocation9_spill] sm:$0xff] %v5677_v6  ;;  %4252 = vmatpush3.bf16.msra.mxu0 %v4661_v10 }
  0xb7   : > { %4253 = vmatprep.subr.bf16.mxu0 %v4662_v20 }
  0xb8   : > { %534 = vperm.xlu0 %4648, %v5503_v17  }
  0xb9   : > { %1363 = vperm.xlu1 %4596, %v5486_v13   ;;  %v5684_v7 = vpop.permute.xlu0 %1006 }
  0xba   : > { %7081 = vst [vmem:[#allocation10_spill] sm:$0xff] %v5684_v7  ;;  %v5686_v2 = vpop.permute.xlu1 %918  ;;  %4254 = vmatpush3.bf16.msra.mxu0 %v4662_v20  ;;  %v5771_v20 = vld [vmem:[%s5452_s15 + $0x150] sm:$0xff]  ;;  %v7093_v7 = vmov 2  }
  0xbb   : > { %4255 = vmatprep.subr.bf16.mxu0 %v4663_v27  ;;  %7087 = vst [vmem:[#allocation16_spill] sm:$0xff] %v5771_v20 }
  0xbc   : > { %559 = vperm.xlu0 %4648, %v5539_v25  }
  0xbd   : > { %1367 = vperm.xlu1 %4596, %v466_v57   ;;  %v5692_v11 = vpop.permute.xlu0 %1018 }
  0xbe   : > { %7082 = vst [vmem:[#allocation11_spill] sm:$0xff] %v5692_v11  ;;  %4256 = vmatpush3.bf16.msra.mxu0 %v4663_v27  ;;  %v497_v11 = vld [vmem:[%s5452_s15 + $0x190] sm:$0xff] }
  0xbf   : > { %v5694_v17 = vpop.permute.xlu1 %544 }
  0xc0   : > { %564 = vperm.xlu0 %4648, %v5471_v9  }
  0xc1   : > { %4597 = vset.pattern.permute.xlu1 %v7056_v8  ;;  %v5701_v24 = vpop.permute.xlu0 %1022 }
  0xc2   : > { %7083 = vst [vmem:[#allocation12_spill] sm:$0xff] %v5701_v24  ;;  %619 = vperm.xlu1 %4597, %v5490_v14  }
  0xc3   : > { %v5704_v25 = vpop.permute.xlu1 %549 }
  0xc4   : > { %574 = vperm.xlu0 %4648, %v5544_v26  }
  0xc5   : > { %v5710_v28 = vpop.permute.xlu0 %1038 }
  0xc6   : > { %7084 = vst [vmem:[#allocation13_spill] sm:$0xff] %v5710_v28  ;;  %4598 = vset.pattern.permute.xlu1 %v7058_v1 }
  0xc7   : > { %982 = vperm.xlu1 %4598, %v5556_v30  }
  0xc8   : > { %599 = vperm.xlu0 %4648, %v5551_v29   ;;  %v5715_v9 = vpop.permute.xlu1 %930 }
  0xc9   : > { %v5717_v40 = vpop.permute.xlu0 %1050 }
  0xca   : > { %7085 = vst [vmem:[#allocation14_spill] sm:$0xff] %v5717_v40 }
  0xcb   : > { %4599 = vset.pattern.permute.xlu1 %v7056_v8 }
  0xcc   : > { %604 = vperm.xlu0 %4648, %v5486_v13   ;;  %624 = vperm.xlu1 %4599, %v5494_v15  }
  0xcd   : > { %v5722_v26 = vpop.permute.xlu1 %1311  ;;  %v5724_v46 = vpop.permute.xlu0 %1054 }
  0xce   : > { %7086 = vst [vmem:[#allocation15_spill] sm:$0xff] %v5724_v46 }
  0xd0   : > { %614 = vperm.xlu0 %4648, %v5556_v30   ;;  %629 = vperm.xlu1 %4599, %v5561_v31  }
  0xd1   : > { %v5728_v50 = vpop.permute.xlu1 %1315 }
  0xd2   : > { %v5730_v29 = vpop.permute.xlu0 %1295 }
  0xd4   : > { %4600 = vset.pattern.permute.xlu1 %v7058_v1  ;;  %639 = vperm.xlu0 %4648, %v5566_v32  }
  0xd5   : > { %994 = vperm.xlu1 %4600, %v5561_v31  }
  0xd6   : > { %v5735_v13 = vpop.permute.xlu0 %1307  ;;  %v5737_v55 = vpop.permute.xlu1 %554 }
  0xd8   : > { %644 = vperm.xlu0 %4648, %v5500_v16  }
  0xd9   : > { %4601 = vset.pattern.permute.xlu1 %v7054_v12 }
  0xda   : > { %v5741_v30 = vpop.permute.xlu0 %1319  ;;  %1375 = vperm.xlu1 %4601, %v5490_v14  }
  0xdb   : > { %v5744_v57 = vpop.permute.xlu1 %934 }
  0xdc   : > { %654 = vperm.xlu0 %4648, %v5570_v33  }
  0xde   : > { %1379 = vperm.xlu1 %4601, %v5494_v15   ;;  %v5748_v59 = vpop.permute.xlu0 %1327 }
  0xdf   : > { %v5750_v31 = vpop.permute.xlu1 %938 }
  0xe0   : > { %679 = vperm.xlu0 %4648, %v5581_v35  }
  0xe2   : > { %4602 = vset.pattern.permute.xlu1 %v7056_v8  ;;  %v5755_v3 = vpop.permute.xlu0 %1339  ;;  %v474_v8 = vld [vmem:[%s5452_s15 + $0xd8] sm:$0xff] }
  0xe3   : > { %634 = vperm.xlu1 %4602, %v471_v62  }
  0xe4   : > { %v5757_v14 = vpop.permute.xlu1 %569  ;;  %684 = vperm.xlu0 %4648, %v5519_v21  }
  0xe6   : > { %v5760_v5 = vpop.permute.xlu0 %1351 }
  0xe7   : > { %4603 = vset.pattern.permute.xlu1 %v7058_v1  ;;  %v7089_v1 = vmov 0  }
  0xe8   : > { %998 = vperm.xlu1 %4603, %v471_v62   ;;  %694 = vperm.xlu0 %4648, %v5586_v36  }
  0xe9   : > { %v5764_v15 = vpop.permute.xlu1 %946 }
  0xea   : > { %v5766_v10 = vpop.permute.xlu0 %1359 }
  0xec   : > { %1002 = vperm.xlu1 %4603, %v5566_v32   ;;  %719 = vperm.xlu0 %4648, %v5596_v38   ;;  %v7091_v32 = vmov 1  }
  0xee   : > { %v5773_v27 = vpop.permute.xlu1 %1323  ;;  %v5775_v12 = vpop.permute.xlu0 %1371 }
  0xef   : > { %7088 = vst [vmem:[#allocation17_spill] sm:$0xff] %v5775_v12 }
  0xf0   : > { %4604 = vset.pattern.permute.xlu1 %v7089_v1  ;;  %724 = vperm.xlu0 %4648, %v5771_v20  }
  0xf1   : > { %649 = vperm.xlu1 %4604, %v474_v8  }
  0xf2   : > { %v5780_v46 = vpop.permute.xlu1 %1331  ;;  %v5782_v40 = vpop.permute.xlu0 %1383 }
  0xf3   : > { %7090 = vst [vmem:[#allocation18_spill] sm:$0xff] %v5782_v40 }
  0xf4   : > { %734 = vperm.xlu0 %4648, %v5601_v39  }
  0xf5   : > { %4605 = vset.pattern.permute.xlu1 %v7091_v32 }
  0xf6   : > { %1010 = vperm.xlu1 %4605, %v474_v8   ;;  %v5786_v28 = vpop.permute.xlu1 %1335  ;;  %v5788_v24 = vpop.permute.xlu0 %1391 }
  0xf7   : > { %7092 = vst [vmem:[#allocation19_spill] sm:$0xff] %v5788_v24 }
  0xf8   : > { %759 = vperm.xlu0 %4648, %v5613_v43  }
  0xfa   : > { %4606 = vset.pattern.permute.xlu1 %v7093_v7  ;;  %v5793_v38 = vpop.permute.xlu0 %1403 }
  0xfb   : > { %7094 = vst [vmem:[#allocation20_spill] sm:$0xff] %v5793_v38  ;;  %1387 = vperm.xlu1 %4606, %v471_v62   ;;  %v5795_v37 = vpop.permute.xlu1 %579  ;;  %v505_v62 = vld [vmem:[%s5452_s15 + $0x1d0] sm:$0xff] }
  0xfc   : > { %764 = vperm.xlu0 %4648, %v497_v11  }
  0xfe   : > { %v5797_v39 = vpop.permute.xlu0 %1415 }
  0xff   : > { %7095 = vst [vmem:[#allocation21_spill] sm:$0xff] %v5797_v39  ;;  %1395 = vperm.xlu1 %4606, %v5500_v16   ;;  %v5816_v39 = vld [vmem:[%s5452_s15 + $0x1e0] sm:$0xff] }
 0x100   : > { %v5800_v6 = vpop.permute.xlu1 %950  ;;  %774 = vperm.xlu0 %4648, %v5623_v47   ;;  %7098 = vst [vmem:[#allocation24_spill] sm:$0xff] %v5816_v39 }
 0x102   : > { %v5803_v24 = vpop.permute.xlu0 %1423 }
 0x103   : > { %7096 = vst [vmem:[#allocation22_spill] sm:$0xff] %v5803_v24  ;;  %1399 = vperm.xlu1 %4606, %v474_v8   ;;  %v5836_v24 = vld [vmem:[%s5452_s15 + $0x168] sm:$0xff] }
 0x104   : > { %799 = vperm.xlu0 %4648, %v5637_v53   ;;  %7102 = vst [vmem:[#allocation28_spill] sm:$0xff] %v5836_v24 }
 0x105   : > { %v5806_v43 = vpop.permute.xlu1 %584 }
 0x106   : > { %v5809_v38 = vpop.permute.xlu0 %1435 }
 0x107   : > { %7097 = vst [vmem:[#allocation23_spill] sm:$0xff] %v5809_v38  ;;  %4607 = vset.pattern.permute.xlu1 %v7089_v1 }
 0x108   : > { %659 = vperm.xlu1 %4607, %v5509_v18   ;;  %804 = vperm.xlu0 %4648, %v505_v62  }
 0x109   : > { %v5813_v16 = vpop.permute.xlu1 %589 }
 0x10a   : > { %v5818_v47 = vpop.permute.xlu0 %1447 }
 0x10b   : > { %7099 = vst [vmem:[#allocation25_spill] sm:$0xff] %v5818_v47 }
 0x10c   : > { %4608 = vset.pattern.permute.xlu1 %v7091_v32  ;;  %814 = vperm.xlu0 %4648, %v5816_v39  }
 0x10d   : > { %1014 = vperm.xlu1 %4608, %v5570_v33  }
 0x10e   : > { %v5823_v8 = vpop.permute.xlu1 %962  ;;  %v5825_v53 = vpop.permute.xlu0 %1455 }
 0x10f   : > { %7100 = vst [vmem:[#allocation26_spill] sm:$0xff] %v5825_v53 }
 0x110   : > { %4649 = vset.pattern.permute.xlu0 %v7091_v32 }
 0x111   : > { %4609 = vset.pattern.permute.xlu1 %v7089_v1  ;;  %1070 = vperm.xlu0 %4649, %v5771_v20   ;;  %v5851_v20 = vld [vmem:[%s5452_s15 + $0x170] sm:$0xff] }
 0x112   : > { %664 = vperm.xlu1 %4609, %v5514_v19   ;;  %v5831_v47 = vpop.permute.xlu0 %1467  ;;  %7106 = vst [vmem:[#allocation32_spill] sm:$0xff] %v5851_v20 }
 0x113   : > { %7101 = vst [vmem:[#allocation27_spill] sm:$0xff] %v5831_v47  ;;  %v5833_v38 = vpop.permute.xlu1 %1343 }
 0x115   : > { %1082 = vperm.xlu0 %4649, %v5836_v24  }
 0x116   : > { %669 = vperm.xlu1 %4609, %v5576_v34   ;;  %v5840_v33 = vpop.permute.xlu0 %1479 }
 0x117   : > { %7103 = vst [vmem:[#allocation29_spill] sm:$0xff] %v5840_v33  ;;  %v5842_v53 = vpop.permute.xlu1 %1347 }
 0x119   : > { %1086 = vperm.xlu0 %4649, %v5851_v20  }
 0x11a   : > { %4610 = vset.pattern.permute.xlu1 %v7091_v32  ;;  %v5845_v39 = vpop.permute.xlu0 %1487 }
 0x11b   : > { %7104 = vst [vmem:[#allocation30_spill] sm:$0xff] %v5845_v39  ;;  %1026 = vperm.xlu1 %4610, %v5576_v34   ;;  %v5864_v34 = vld [vmem:[%s5452_s15 + $0x1a8] sm:$0xff] }
 0x11c   : > { %v5848_v47 = vpop.permute.xlu1 %594  ;;  %7109 = vst [vmem:[#allocation35_spill] sm:$0xff] %v5864_v34 }
 0x11d   : > { %7105 = vst [vmem:[#allocation31_spill] sm:$0xff] %v5848_v47  ;;  %1102 = vperm.xlu0 %4649, %v497_v11   ;;  %v5882_v11 = vld [vmem:[%s7041_s1] ss:$0 sm:$0xff] }
 0x11e   : > { %v5854_v24 = vpop.permute.xlu0 %1499 }
 0x11f   : > { %7107 = vst [vmem:[#allocation33_spill] sm:$0xff] %v5854_v24  ;;  %4611 = vset.pattern.permute.xlu1 %v7093_v7  ;;  %v5872_v24 = vld [vmem:[%s5452_s15 + $0x100] sm:$0xff] }
 0x120   : > { %1407 = vperm.xlu1 %4611, %v5509_v18   ;;  %v5877_v18 = vld [vmem:[%s7041_s1 + $0x1] ss:$0 sm:$0xff] }
 0x121   : > { %v5858_v33 = vpop.permute.xlu1 %966  ;;  %1114 = vperm.xlu0 %4649, %v5864_v34   ;;  %v839_v34 = vmul.f32 %v5882_v11, %v5627_v49  ;;  %v1161_v36 = vmul.f32 %v5877_v18, %v5607_v41  ;;  %v5915_v41 = vld [vmem:[%s7042_s2] ss:$0 sm:$0xff] }
 0x122   : > { %v5860_v39 = vpop.permute.xlu0 %1511 }
 0x123   : > { %7108 = vst [vmem:[#allocation34_spill] sm:$0xff] %v5860_v39  ;;  %v5888_v39 = vld [vmem:[%s5452_s15 + $0x1b0] sm:$0xff] }
 0x124   : > { %1411 = vperm.xlu1 %4611, %v5514_v19   ;;  %v1164_v19 = vmul.f32 %v5877_v18, %v5634_v52  ;;  %7111 = vst [vmem:[#allocation37_spill] sm:$0xff] %v5888_v39 }
 0x125   : > { %v5866_v23 = vpop.permute.xlu1 %970  ;;  %1118 = vperm.xlu0 %4649, %v5888_v39  }
 0x126   : > { %v5869_v20 = vpop.permute.xlu0 %1519  ;;  %v1228_v12 = vadd.f32 %v1164_v19, %v839_v34  ;;  %v1163_v19 = vmul.f32 %v5877_v18, %v5609_v42  ;;  %v1165_v42 = vmul.f32 %v5877_v18, %v5686_v2  ;;  %v844_v2 = vmul.f32 %v5882_v11, %v5737_v55 }
 0x127   : > { %7110 = vst [vmem:[#allocation36_spill] sm:$0xff] %v5869_v20  ;;  %v5893_v20 = vld [vmem:[%s7041_s1 + $0x2] ss:$0 sm:$0xff] }
 0x128   : > { %4612 = vset.pattern.permute.xlu1 %v7089_v1  ;;  %v1553_v40 = vmul.f32 %v5893_v20, %v5666_v63  ;;  %v1550_v39 = vmul.f32 %v5893_v20, %v5646_v56  ;;  %v1166_v63 = vmul.f32 %v5877_v18, %v5617_v45  ;;  %v1167_v56 = vmul.f32 %v5877_v18, %v5625_v48 }
 0x129   : > { %674 = vperm.xlu1 %4612, %v5872_v24   ;;  %1134 = vperm.xlu0 %4649, %v505_v62   ;;  %v1168_v48 = vmul.f32 %v5877_v18, %v5715_v9 }
 0x12a   : > { %v5901_v52 = vpop.permute.xlu1 %609  ;;  %v1617_v47 = vadd.f32 %v1553_v40, %v1228_v12  ;;  %v1162_v12 = vmul.f32 %v5877_v18, %v5615_v44  ;;  %v842_v40 = vmul.f32 %v5882_v11, %v5694_v17  ;;  %v1552_v44 = vmul.f32 %v5893_v20, %v5657_v60 }
 0x12b   : > { %v515_v0 = vpop.permute.xlu0 %514  ;;  %v1556_v17 = vmul.f32 %v5893_v20, %v5728_v50  ;;  %v1169_v60 = vmul.f32 %v5877_v18, %v5744_v57  ;;  %v843_v50 = vmul.f32 %v5882_v11, %v5704_v25  ;;  %v1558_v57 = vmul.f32 %v5893_v20, %v5773_v27 }
 0x12c   : > { %v836_v22 = vmul.f32 %v5882_v11, %v515_v0  ;;  %v841_v0 = vmul.f32 %v5882_v11, %v5675_v4  ;;  %v1555_v4 = vmul.f32 %v5893_v20, %v5722_v26  ;;  %v1231_v9 = vadd.f32 %v1167_v56, %v842_v40 }
 0x12d   : > { %4613 = vset.pattern.permute.xlu1 %v7091_v32  ;;  %v1554_v25 = vmul.f32 %v5893_v20, %v5735_v13 }
 0x12e   : > { %v1225_v49 = vadd.f32 %v1161_v36, %v836_v22  ;;  %1030 = vperm.xlu1 %4613, %v5872_v24   ;;  %v1551_v22 = vmul.f32 %v5893_v20, %v5730_v29  ;;  %v1688_v29 = vadd.f32 %v5915_v41, %v1617_v47  ;;  %v1620_v56 = vadd.f32 %v1556_v17, %v1231_v9 }
 0x12f   : > { %v520_v34 = vpop.permute.xlu0 %519  ;;  %v5919_v62 = vpop.permute.xlu1 %978 }
 0x130   : > { %v1614_v36 = vadd.f32 %v1550_v39, %v1225_v49  ;;  %v837_v45 = vmul.f32 %v5882_v11, %v520_v34  ;;  %v1230_v49 = vadd.f32 %v1166_v63, %v841_v0  ;;  %v5951_v63 = vld [vmem:[%s5452_s15 + $0x118] sm:$0xff] }
 0x132   : > { %v1226_v39 = vadd.f32 %v1162_v12, %v837_v45  ;;  %1034 = vperm.xlu1 %4613, %v5581_v35   ;;  %v1685_v26 = vadd.f32 %v5915_v41, %v1614_v36  ;;  %v1619_v0 = vadd.f32 %v1555_v4, %v1230_v49  ;;  %v1557_v36 = vmul.f32 %v5893_v20, %v5741_v30 }
 0x133   : > { %v525_v34 = vpop.permute.xlu0 %524  ;;  %v1233_v30 = vadd.f32 %v1169_v60, %v844_v2  ;;  %v1174_v49 = vmul.f32 %v5877_v18, %v5639_v54  ;;  %v1559_v60 = vmul.f32 %v5893_v20, %v5748_v59  ;;  %v1170_v54 = vmul.f32 %v5877_v18, %v5750_v31 }
 0x134   : > { %v1615_v47 = vadd.f32 %v1551_v22, %v1226_v39  ;;  %v838_v12 = vmul.f32 %v5882_v11, %v525_v34  ;;  %v5948_v35 = vpop.permute.xlu1 %1355  ;;  %v1232_v39 = vadd.f32 %v1168_v48, %v843_v50  ;;  %4688 = vtanh.f32 %v1685_v26 }
 0x135   : > { %v1690_v13 = vadd.f32 %v5915_v41, %v1619_v0  ;;  %v1622_v17 = vadd.f32 %v1558_v57, %v1233_v30  ;;  %v847_v59 = vmul.f32 %v5882_v11, %v5757_v14  ;;  %v849_v50 = vmul.f32 %v5882_v11, %v5795_v37 }
 0x136   : > { %v1686_v22 = vadd.f32 %v5915_v41, %v1615_v47  ;;  %v1227_v45 = vadd.f32 %v1163_v19, %v838_v12  ;;  %4614 = vset.pattern.permute.xlu1 %v7089_v1  ;;  %v1171_v19 = vmul.f32 %v5877_v18, %v5632_v51  ;;  %v1621_v48 = vadd.f32 %v1557_v36, %v1232_v39 }
 0x137   : > { %v535_v40 = vpop.permute.xlu0 %534  ;;  %689 = vperm.xlu1 %4614, %v5951_v63   ;;  %v1172_v47 = vmul.f32 %v5877_v18, %v5764_v15  ;;  %v1561_v15 = vmul.f32 %v5893_v20, %v5786_v28  ;;  %v1693_v31 = vadd.f32 %v5915_v41, %v1622_v17  ;;  %v1563_v57 = vmul.f32 %v5893_v20, %v5833_v38 }
 0x138   : > { %4690 = vtanh.f32 %v1686_v22  ;;  %v1616_v55 = vadd.f32 %v1552_v44, %v1227_v45  ;;  %v840_v4 = vmul.f32 %v5882_v11, %v535_v40  ;;  %v5967_v27 = vpop.permute.xlu1 %1363  ;;  %v1691_v44 = vadd.f32 %v5915_v41, %v1620_v56 }
 0x139   : > { %4692 = vtanh.f32 %v1688_v29  ;;  %v1236_v2 = vadd.f32 %v1172_v47, %v847_v59  ;;  %v1175_v14 = vmul.f32 %v5877_v18, %v5649_v58  ;;  %v1562_v39 = vmul.f32 %v5893_v20, %v5755_v3 }
 0x13a   : > { %v1687_v26 = vadd.f32 %v5915_v41, %v1616_v55  ;;  %v1229_v34 = vadd.f32 %v1165_v42, %v840_v4  ;;  %v1692_v42 = vadd.f32 %v5915_v41, %v1621_v48  ;;  %v1560_v58 = vmul.f32 %v5893_v20, %v5780_v46 }
 0x13b   : > { %v560_v51 = vpop.permute.xlu0 %559  ;;  %4615 = vset.pattern.permute.xlu1 %v7091_v32  ;;  %v1625_v56 = vadd.f32 %v1561_v15, %v1236_v2  ;;  %v1173_v4 = vmul.f32 %v5877_v18, %v5800_v6  ;;  %v1176_v3 = vmul.f32 %v5877_v18, %v5823_v8  ;;  %v851_v6 = vmul.f32 %v5882_v11, %v5813_v16 }
 0x13c   : > { %4694 = vtanh.f32 %v1687_v26  ;;  %v1618_v12 = vadd.f32 %v1554_v25, %v1229_v34  ;;  %v845_v9 = vmul.f32 %v5882_v11, %v560_v51  ;;  %1042 = vperm.xlu1 %4615, %v5951_v63   ;;  %v5985_v29 = vpop.permute.xlu1 %1367  ;;  %v1238_v25 = vadd.f32 %v1174_v49, %v849_v50 }
 0x13d   : > { %4696 = vtanh.f32 %v1690_v13  ;;  %v1696_v34 = vadd.f32 %v5915_v41, %v1625_v56  ;;  %v1177_v16 = vmul.f32 %v5877_v18, %v5858_v33  ;;  %v1179_v50 = vmul.f32 %v5877_v18, %v5659_v61 }
 0x13e   : > { %v1689_v0 = vadd.f32 %v5915_v41, %v1618_v12  ;;  %v1234_v36 = vadd.f32 %v1170_v54, %v845_v9  ;;  %4698 = vtanh.f32 %v1691_v44  ;;  %v4689_v37 = vpop.eup %4688  ;;  %v1627_v48 = vadd.f32 %v1563_v57, %v1238_v25 }
 0x13f   : > { %v565_v22 = vpop.permute.xlu0 %564  ;;  %v1564_v44 = vmul.f32 %v5893_v20, %v5842_v53  ;;  %v1566_v33 = vmul.f32 %v5893_v20, %v5948_v35 }
 0x140   : > { %4700 = vtanh.f32 %v1689_v0  ;;  %v1623_v28 = vadd.f32 %v1559_v60, %v1234_v36  ;;  %v846_v45 = vmul.f32 %v5882_v11, %v565_v22  ;;  %4616 = vset.pattern.permute.xlu1 %v7093_v7  ;;  %v1698_v54 = vadd.f32 %v5915_v41, %v1627_v48 }
 0x141   : > { %4702 = vtanh.f32 %v1692_v42  ;;  %1419 = vperm.xlu1 %4616, %v5872_v24   ;;  %v6005_v38 = vpop.permute.xlu1 %619  ;;  %v850_v24 = vmul.f32 %v5882_v11, %v5806_v43  ;;  %v1567_v43 = vmul.f32 %v5893_v20, %v5766_v10  ;;  %v1178_v10 = vmul.f32 %v5877_v18, %v5866_v23 }
 0x142   : > { %v4691_v40 = vpop.eup %4690  ;;  %4704 = vtanh.f32 %v1693_v31  ;;  %v1694_v30 = vadd.f32 %v5915_v41, %v1623_v28  ;;  %v1235_v55 = vadd.f32 %v1171_v19, %v846_v45  ;;  %v1565_v19 = vmul.f32 %v5893_v20, %v5760_v5  ;;  %v7112_v31 = vld [vmem:[#allocation31_spill] sm:$0xff] }
 0x143   : > { %v575_v49 = vpop.permute.xlu0 %574  ;;  %v1813_v13 = vpack.c.bf16 %v4691_v40, %v4689_v37  ;;  %v4693_v46 = vpop.eup %4692  ;;  %v1240_v5 = vadd.f32 %v1176_v3, %v851_v6  ;;  %v1239_v42 = vadd.f32 %v1175_v14, %v850_v24  ;;  %v852_v0 = vmul.f32 %v5882_v11, %v7112_v31 }
 0x144   : > { %4706 = vtanh.f32 %v1694_v30  ;;  %v1624_v17 = vadd.f32 %v1560_v58, %v1235_v55  ;;  %v848_v26 = vmul.f32 %v5882_v11, %v575_v49  ;;  %v1180_v58 = vmul.f32 %v5877_v18, %v5919_v62  ;;  %v7113_v55 = vld [vmem:[#allocation3_spill] sm:$0xff] }
 0x145   : > { %4257 = vmatprep.mubr.bf16.mxu0 %v1813_v13  ;;  %1427 = vperm.xlu1 %4616, %v5519_v21   ;;  %4708 = vtanh.f32 %v1696_v34  ;;  %v1628_v2 = vadd.f32 %v1564_v44, %v1239_v42  ;;  %v1629_v14 = vadd.f32 %v1565_v19, %v1240_v5  ;;  %v1241_v61 = vadd.f32 %v1177_v16, %v852_v0  ;;  %v7117_v42 = vld [vmem:[#allocation18_spill] sm:$0xff] }
 0x146   : > { %v4695_v8 = vpop.eup %4694  ;;  %v1695_v60 = vadd.f32 %v5915_v41, %v1624_v17  ;;  %v1237_v47 = vadd.f32 %v1173_v4, %v848_v26  ;;  %v983_v51 = vpop.permute.xlu1 %982  ;;  %v855_v17 = vmul.f32 %v5882_v11, %v5901_v52  ;;  %v1568_v26 = vmul.f32 %v5893_v20, %v5967_v27 }
 0x147   : > { %v600_v12 = vpop.permute.xlu0 %599  ;;  %v1814_v9 = vpack.c.bf16 %v4693_v46, %v4695_v8  ;;  %v4697_v21 = vpop.eup %4696  ;;  %v1630_v25 = vadd.f32 %v1566_v33, %v1241_v61  ;;  %v1699_v40 = vadd.f32 %v5915_v41, %v1628_v2  ;;  %v1700_v4 = vadd.f32 %v5915_v41, %v1629_v14  ;;  %v7119_v2 = vld [vmem:[#allocation9_spill] sm:$0xff] }
 0x148   : > { %v1626_v59 = vadd.f32 %v1562_v39, %v1237_v47  ;;  %v853_v53 = vmul.f32 %v5882_v11, %v600_v12  ;;  %v4699_v15 = vpop.eup %4698  ;;  %4710 = vtanh.f32 %v1695_v60  ;;  %v1569_v62 = vmul.f32 %v5893_v20, %v5985_v29  ;;  %v7115_v29 = vld [vmem:[#allocation5_spill] sm:$0xff] }
 0x149   : > { %4258 = vmatmul.mubr.bf16.vlgmr.msra.gmra.mrb[0].mxu0 %v1814_v9  ;;  %1431 = vperm.xlu1 %4616, %v5951_v63   ;;  %4712 = vtanh.f32 %v1698_v54  ;;  %v1701_v19 = vadd.f32 %v5915_v41, %v1630_v25  ;;  %v1181_v34 = vmul.f32 %v5877_v18, %v983_v51  ;;  %v1244_v6 = vadd.f32 %v1180_v58, %v855_v17  ;;  %v7116_v9 = vld [vmem:[#allocation8_spill] sm:$0xff] }
 0x14a   : > { %v4701_v36 = vpop.eup %4700  ;;  %v1697_v23 = vadd.f32 %v5915_v41, %v1626_v59  ;;  %v1242_v57 = vadd.f32 %v1178_v10, %v853_v53  ;;  %v1573_v10 = vmul.f32 %v5893_v20, %v7117_v42  ;;  %v857_v59 = vmul.f32 %v5882_v11, %v6005_v38 }
 0x14b   : > { %v4703_v22 = vpop.eup %4702  ;;  %v605_v28 = vpop.permute.xlu0 %604  ;;  %v1815_v37 = vpack.c.bf16 %v4697_v21, %v4701_v36  ;;  %v1633_v47 = vadd.f32 %v1569_v62, %v1244_v6  ;;  %v1182_v21 = vmul.f32 %v5877_v18, %v7116_v9  ;;  %v7118_v36 = vld [vmem:[#allocation4_spill] sm:$0xff] }
 0x14c   : > { %v625_v45 = vpop.permute.xlu1 %624  ;;  %v4705_v39 = vpop.eup %4704  ;;  %4714 = vtanh.f32 %v1697_v23  ;;  %v1631_v56 = vadd.f32 %v1567_v43, %v1242_v57  ;;  %v854_v35 = vmul.f32 %v5882_v11, %v605_v28  ;;  %v1816_v13 = vpack.c.bf16 %v4703_v22, %v4699_v15  ;;  %v7114_v43 = vld [vmem:[#allocation17_spill] sm:$0xff] }
 0x14d   : > { %4261 = vmatprep.mubr.bf16.mxu0 %v1815_v37  ;;  %4617 = vset.pattern.permute.xlu1 %v7089_v1  ;;  %4716 = vtanh.f32 %v1699_v40  ;;  %v1570_v27 = vmul.f32 %v5893_v20, %v7114_v43  ;;  %v1704_v33 = vadd.f32 %v5915_v41, %v1633_v47  ;;  %v1183_v23 = vmul.f32 %v5877_v18, %v7119_v2  ;;  %v5329_v6 = vld [vmem:[%s5452_s15 + $0x130] sm:$0xff]  ;;  %v487_v43 = vld [vmem:[%s5452_s15 + $0x140] sm:$0xff] }
 0x14e   : > { %v4707_v63 = vpop.eup %4706  ;;  %v1243_v30 = vadd.f32 %v1179_v50, %v854_v35  ;;  %699 = vperm.xlu1 %4617, %v7113_v55   ;;  %v1702_v3 = vadd.f32 %v5915_v41, %v1631_v56  ;;  %v1246_v22 = vadd.f32 %v1182_v21, %v857_v59  ;;  %v858_v38 = vmul.f32 %v5882_v11, %v625_v45  ;;  %v7120_v56 = vld [vmem:[#allocation6_spill] sm:$0xff]  ;;  %v7122_v59 = vld [vmem:[#allocation7_spill] sm:$0xff] }
 0x14f   : > { %v615_v48 = vpop.permute.xlu0 %614  ;;  %v1817_v24 = vpack.c.bf16 %v4707_v63, %v4705_v39  ;;  %v4709_v52 = vpop.eup %4708 }
 0x150   : > { %v630_v49 = vpop.permute.xlu1 %629  ;;  %v856_v46 = vmul.f32 %v5882_v11, %v615_v48  ;;  %v1632_v8 = vadd.f32 %v1568_v26, %v1243_v30  ;;  %4718 = vtanh.f32 %v1702_v3  ;;  %v1247_v40 = vadd.f32 %v1183_v23, %v858_v38  ;;  %v5328_v26 = vld [vmem:[%s5452_s15 + $0x128] sm:$0xff] }
 0x151   : > { %4262 = vmatmul.mubr.bf16.gmra.mrb[4].mxu0 %v1816_v13  ;;  %4720 = vtanh.f32 %v1700_v4  ;;  %v859_v54 = vmul.f32 %v5882_v11, %v630_v49 }
 0x152   : > { %4618 = vset.pattern.permute.xlu1 %v7091_v32  ;;  %4265 = vmatprep.mubr.bf16.mxu0 %v1817_v24  ;;  %v1245_v44 = vadd.f32 %v1181_v34, %v856_v46  ;;  %v4711_v60 = vpop.eup %4710  ;;  %4722 = vtanh.f32 %v1701_v19  ;;  %v1703_v53 = vadd.f32 %v5915_v41, %v1632_v8 }
 0x153   : > { %1046 = vperm.xlu1 %4618, %v7115_v29   ;;  %v4713_v51 = vpop.eup %4712  ;;  %v1818_v31 = vpack.c.bf16 %v4709_v52, %v4711_v60 }
 0x154   : > { %v995_v5 = vpop.permute.xlu1 %994  ;;  %v1634_v15 = vadd.f32 %v1570_v27, %v1245_v44  ;;  %4724 = vtanh.f32 %v1703_v53  ;;  %v640_v44 = vpop.permute.xlu0 %639  ;;  %v7123_v53 = vld [vmem:[#allocation10_spill] sm:$0xff] }
 0x155   : > { %v1184_v16 = vmul.f32 %v5877_v18, %v995_v5  ;;  %4726 = vtanh.f32 %v1704_v33  ;;  %v861_v47 = vmul.f32 %v5882_v11, %v640_v44  ;;  %v490_v33 = vld [vmem:[%s5452_s15 + $0x158] sm:$0xff]  ;;  %v7126_v44 = vld [vmem:[#allocation24_spill] sm:$0xff] }
 0x156   : > { %v4715_v12 = vpop.eup %4714  ;;  %v1705_v61 = vadd.f32 %v5915_v41, %v1634_v15  ;;  %v1187_v15 = vmul.f32 %v5877_v18, %v7123_v53 }
 0x157   : > { %v1248_v50 = vadd.f32 %v1184_v16, %v859_v54  ;;  %4619 = vset.pattern.permute.xlu1 %v7089_v1  ;;  %v1819_v0 = vpack.c.bf16 %v4713_v51, %v4715_v12  ;;  %v4717_v37 = vpop.eup %4716  ;;  %v7121_v54 = vld [vmem:[#allocation19_spill] sm:$0xff] }
 0x158   : > { %704 = vperm.xlu1 %4619, %v7118_v36   ;;  %4728 = vtanh.f32 %v1705_v61  ;;  %v1575_v16 = vmul.f32 %v5893_v20, %v7121_v54  ;;  %v645_v21 = vpop.permute.xlu0 %644  ;;  %v4667_v54 = vld [vmem:[%s7045_s5 + $0x18] sm:$0xff]  }
 0x159   : > { %4266 = vmatmul.mubr.bf16.gmra.mrb[8].mxu0 %v1818_v31  ;;  %v1376_v57 = vpop.permute.xlu1 %1375  ;;  %v1637_v28 = vadd.f32 %v1573_v10, %v1248_v50  ;;  %v862_v31 = vmul.f32 %v5882_v11, %v645_v21 }
 0x15a   : > { %v1571_v14 = vmul.f32 %v5893_v20, %v1376_v57  ;;  %4269 = vmatprep.mubr.bf16.mxu0 %v1819_v0  ;;  %v4719_v35 = vpop.eup %4718 }
 0x15b   : > { %v4721_v63 = vpop.eup %4720  ;;  %v1708_v55 = vadd.f32 %v5915_v41, %v1637_v28 }
 0x15c   : > { %v1635_v39 = vadd.f32 %v1571_v14, %v1246_v22  ;;  %709 = vperm.xlu1 %4619, %v7120_v56   ;;  %v4723_v45 = vpop.eup %4722  ;;  %v1820_v4 = vpack.c.bf16 %v4721_v63, %v4717_v37  ;;  %v1251_v22 = vadd.f32 %v1187_v15, %v862_v31 }
 0x15d   : > { %v1380_v25 = vpop.permute.xlu1 %1379  ;;  %v1821_v48 = vpack.c.bf16 %v4719_v35, %v4723_v45 }
 0x15e   : > { %v1706_v58 = vadd.f32 %v5915_v41, %v1635_v39  ;;  %v1572_v30 = vmul.f32 %v5893_v20, %v1380_v25  ;;  %v4725_v24 = vpop.eup %4724 }
 0x15f   : > { %v4727_v17 = vpop.eup %4726 }
 0x160   : > { %4730 = vtanh.f32 %v1706_v58  ;;  %v1636_v3 = vadd.f32 %v1572_v30, %v1247_v40  ;;  %4621 = vset.pattern.permute.xlu1 %v7091_v32  ;;  %v1822_v46 = vpack.c.bf16 %v4727_v17, %v4725_v24  ;;  %v6125_v17 = vld [vmem:[%s5452_s15 + $0x1f0] sm:$0xff] }
 0x161   : > { %1058 = vperm.xlu1 %4621, %v7120_v56   ;;  %4270 = vmatmul.mubr.bf16.gmra.mrb[12].mxu0 %v1820_v4  ;;  %4732 = vtanh.f32 %v1708_v55  ;;  %v7124_v4 = vld [vmem:[#allocation16_spill] sm:$0xff] }
 0x162   : > { %v1707_v49 = vadd.f32 %v5915_v41, %v1636_v3  ;;  %4273 = vmatprep.mubr.bf16.mxu0 %v1821_v48  ;;  %v635_v13 = vpop.permute.xlu1 %634  ;;  %v4729_v19 = vpop.eup %4728 }
 0x163   : > { %v860_v50 = vmul.f32 %v5882_v11, %v635_v13  ;;  %v4664_v13 = vld [vmem:[%s7045_s5] sm:$0xff]  }
 0x164   : > { %4734 = vtanh.f32 %v1707_v49  ;;  %v6118_v49 = vld [vmem:[%s5452_s15 + $0x1e8] sm:$0xff]  ;;  %4321 = vmatprep.subr.bf16.mxu1 %v4664_v13 }
 0x165   : > { %4622 = vset.pattern.permute.xlu1 %v7093_v7  ;;  %1146 = vperm.xlu0 %4649, %v6118_v49  }
 0x166   : > { %1439 = vperm.xlu1 %4622, %v5328_v26   ;;  %4322 = vmatpush3.bf16.msra.mxu1 %v4664_v13 }
 0x167   : > { %v999_v62 = vpop.permute.xlu1 %998 }
 0x168   : > { %v1185_v42 = vmul.f32 %v5877_v18, %v999_v62  ;;  %v655_v62 = vpop.permute.xlu0 %654 }
 0x169   : > { %4274 = vmatmul.mubr.bf16.gmra.mrb[16].mxu0 %v1822_v46  ;;  %1150 = vperm.xlu0 %4649, %v6125_v17   ;;  %v4665_v46 = vld [vmem:[%s7045_s5 + $0x8] sm:$0xff]  }
 0x16a   : > { %v4731_v34 = vpop.eup %4730  ;;  %1443 = vperm.xlu1 %4622, %v5329_v6   ;;  %v1249_v36 = vadd.f32 %v1185_v42, %v860_v50  ;;  %4323 = vmatprep.subr.bf16.mxu1 %v4665_v46  ;;  %v7130_v50 = vld [vmem:[#allocation32_spill] sm:$0xff] }
 0x16b   : > { %v1003_v8 = vpop.permute.xlu1 %1002  ;;  %v1823_v52 = vpack.c.bf16 %v4731_v34, %v4729_v19  ;;  %v4733_v27 = vpop.eup %4732  ;;  %v7125_v34 = vld [vmem:[#allocation28_spill] sm:$0xff]  ;;  %4324 = vmatpush3.bf16.msra.mxu1 %v4665_v46 }
 0x16c   : > { %v1186_v5 = vmul.f32 %v5877_v18, %v1003_v8  ;;  %v864_v8 = vmul.f32 %v5882_v11, %v655_v62 }
 0x16d   : > { %4277 = vmatprep.mubr.bf16.mxu0 %v1823_v52  ;;  %4654 = vset.pattern.permute.xlu0 %v7093_v7 }
 0x16e   : > { %v4735_v29 = vpop.eup %4734  ;;  %4623 = vset.pattern.permute.xlu1 %v7089_v1  ;;  %v1250_v12 = vadd.f32 %v1186_v5, %v861_v47  ;;  %1531 = vperm.xlu0 %4654, %v7126_v44   ;;  %v5330_v5 = vld [vmem:[%s5452_s15 + $0x160] sm:$0xff] }
 0x16f   : > { %714 = vperm.xlu1 %4623, %v487_v43   ;;  %v1824_v60 = vpack.c.bf16 %v4733_v27, %v4735_v29  ;;  %v4666_v27 = vld [vmem:[%s7045_s5 + $0x10] sm:$0xff]  }
 0x170   : > { %v650_v51 = vpop.permute.xlu1 %649  ;;  %v1639_v10 = vadd.f32 %v1575_v16, %v1250_v12  ;;  %4325 = vmatprep.subr.bf16.mxu1 %v4666_v27  ;;  %v7127_v29 = vld [vmem:[#allocation20_spill] sm:$0xff] }
 0x171   : > { %4278 = vmatmul.mubr.bf16.gmra.mrb[20].mxu0 %v1824_v60  ;;  %v863_v37 = vmul.f32 %v5882_v11, %v650_v51  ;;  %v1578_v60 = vmul.f32 %v5893_v20, %v7127_v29  ;;  %4326 = vmatpush3.bf16.msra.mxu1 %v4666_v27 }
 0x172   : > { %v1710_v23 = vadd.f32 %v5915_v41, %v1639_v10  ;;  %4327 = vmatprep.subr.bf16.mxu1 %v4667_v54  ;;  %v7129_v10 = vld [vmem:[#allocation21_spill] sm:$0xff] }
 0x173   : > { %4624 = vset.pattern.permute.xlu1 %v7091_v32 }
 0x174   : > { %1062 = vperm.xlu1 %4624, %v487_v43   ;;  %4736 = vtanh.f32 %v1710_v23 }
 0x175   : > { %v1011_v9 = vpop.permute.xlu1 %1010  ;;  %4328 = vmatpush3.bf16.msra.mxu1 %v4667_v54 }
 0x176   : > { %v1188_v14 = vmul.f32 %v5877_v18, %v1011_v9  ;;  %v7128_v9 = vld [vmem:[#allocation11_spill] sm:$0xff] }
 0x177   : > { %v1190_v21 = vmul.f32 %v5877_v18, %v7128_v9  ;;  %v7133_v9 = vld [vmem:[#allocation13_spill] sm:$0xff] }
 0x178   : > { %1066 = vperm.xlu1 %4624, %v7122_v59   ;;  %v1252_v35 = vadd.f32 %v1188_v14, %v863_v37  ;;  %v1581_v59 = vmul.f32 %v5893_v20, %v7129_v10  ;;  %v4669_v37 = vld [vmem:[%s7045_s5 + $0x28] sm:$0xff]  }
 0x17a   : > { %v1388_v0 = vpop.permute.xlu1 %1387 }
 0x17b   : > { %v1574_v2 = vmul.f32 %v5893_v20, %v1388_v0  ;;  %v4668_v0 = vld [vmem:[%s7045_s5 + $0x20] sm:$0xff]  }
 0x17c   : > { %4625 = vset.pattern.permute.xlu1 %v7089_v1  ;;  %4329 = vmatprep.subr.bf16.mxu1 %v4668_v0 }
 0x17d   : > { %v1638_v57 = vadd.f32 %v1574_v2, %v1249_v36  ;;  %729 = vperm.xlu1 %4625, %v490_v33   ;;  %4330 = vmatpush3.bf16.msra.mxu1 %v4668_v0 }
 0x17e   : > { %v1396_v38 = vpop.permute.xlu1 %1395  ;;  %v4737_v45 = vpop.eup %4736  ;;  %4331 = vmatprep.subr.bf16.mxu1 %v4669_v37 }
 0x17f   : > { %v1709_v61 = vadd.f32 %v5915_v41, %v1638_v57  ;;  %v1576_v28 = vmul.f32 %v5893_v20, %v1396_v38 }
 0x181   : > { %4738 = vtanh.f32 %v1709_v61  ;;  %v1640_v39 = vadd.f32 %v1576_v28, %v1251_v22  ;;  %4626 = vset.pattern.permute.xlu1 %v7091_v32  ;;  %v5331_v61 = vld [vmem:[%s5452_s15 + $0x178] sm:$0xff]  ;;  %4332 = vmatpush3.bf16.msra.mxu1 %v4669_v37 }
 0x182   : > { %1074 = vperm.xlu1 %4626, %v490_v33   ;;  %v1400_v56 = vpop.permute.xlu1 %1399 }
 0x183   : > { %v1577_v25 = vmul.f32 %v5893_v20, %v1400_v56  ;;  %v1711_v63 = vadd.f32 %v5915_v41, %v1640_v39 }
 0x185   : > { %v1641_v40 = vadd.f32 %v1577_v25, %v1252_v35  ;;  %4740 = vtanh.f32 %v1711_v63 }
 0x186   : > { %4627 = vset.pattern.permute.xlu1 %v7093_v7 }
 0x187   : > { %v1712_v58 = vadd.f32 %v5915_v41, %v1641_v40  ;;  %1451 = vperm.xlu1 %4627, %v487_v43   ;;  %v660_v30 = vpop.permute.xlu1 %659  ;;  %v4670_v40 = vld [vmem:[%s7045_s5 + $0x30] sm:$0xff]  }
 0x188   : > { %v865_v42 = vmul.f32 %v5882_v11, %v660_v30  ;;  %4333 = vmatprep.subr.bf16.mxu1 %v4670_v40 }
 0x189   : > { %4742 = vtanh.f32 %v1712_v58  ;;  %4334 = vmatpush3.bf16.msra.mxu1 %v4670_v40 }
 0x18a   : > { %v1254_v2 = vadd.f32 %v1190_v21, %v865_v42  ;;  %v1195_v21 = vmul.f32 %v5877_v18, %v7133_v9 }
 0x18b   : > { %v4739_v55 = vpop.eup %4738  ;;  %1459 = vperm.xlu1 %4627, %v7124_v4  }
 0x18c   : > { %v1015_v3 = vpop.permute.xlu1 %1014  ;;  %v1825_v48 = vpack.c.bf16 %v4737_v45, %v4739_v55  ;;  %v4671_v45 = vld [vmem:[%s7045_s5 + $0x38] sm:$0xff]  }
 0x18d   : > { %v1189_v52 = vmul.f32 %v5877_v18, %v1015_v3  ;;  %4335 = vmatprep.subr.bf16.mxu1 %v4671_v45  ;;  %v6182_v3 = vld [vmem:[%s5452_s15 + $0x1f8] sm:$0xff] }
 0x18e   : > { %4281 = vmatprep.mubr.bf16.mxu0 %v1825_v48  ;;  %4336 = vmatpush3.bf16.msra.mxu1 %v4671_v45 }
 0x18f   : > { %1463 = vperm.xlu1 %4627, %v490_v33   ;;  %v4741_v26 = vpop.eup %4740  ;;  %v1253_v47 = vadd.f32 %v1189_v52, %v864_v8  ;;  %v7131_v33 = vld [vmem:[#allocation12_spill] sm:$0xff]  ;;  %1543 = vperm.xlu0 %4654, %v6182_v3  }
 0x190   : > { %v1191_v36 = vmul.f32 %v5877_v18, %v7131_v33 }
 0x191   : > { %v665_v24 = vpop.permute.xlu1 %664  ;;  %v1642_v53 = vadd.f32 %v1578_v60, %v1253_v47 }
 0x192   : > { %v866_v23 = vmul.f32 %v5882_v11, %v665_v24 }
 0x193   : > { %v4743_v19 = vpop.eup %4742  ;;  %4628 = vset.pattern.permute.xlu1 %v7089_v1  ;;  %v1713_v22 = vadd.f32 %v5915_v41, %v1642_v53 }
 0x194   : > { %739 = vperm.xlu1 %4628, %v7125_v34   ;;  %v1826_v6 = vpack.c.bf16 %v4743_v19, %v4741_v26  ;;  %v1255_v39 = vadd.f32 %v1191_v36, %v866_v23  ;;  %v495_v26 = vld [vmem:[%s5452_s15 + $0x180] sm:$0xff]  ;;  %v680_v19 = vpop.permute.xlu0 %679 }
 0x195   : > { %v670_v43 = vpop.permute.xlu1 %669  ;;  %4744 = vtanh.f32 %v1713_v22 }
 0x196   : > { %4282 = vmatmul.mubr.bf16.gmra.mrb[24].mxu0 %v1826_v6  ;;  %v867_v16 = vmul.f32 %v5882_v11, %v670_v43  ;;  %v869_v6 = vmul.f32 %v5882_v11, %v680_v19  ;;  %v7132_v43 = vld [vmem:[#allocation22_spill] sm:$0xff] }
 0x197   : > { %v1583_v27 = vmul.f32 %v5893_v20, %v7132_v43 }
 0x198   : > { %4629 = vset.pattern.permute.xlu1 %v7091_v32  ;;  %v685_v47 = vpop.permute.xlu0 %684 }
 0x199   : > { %1078 = vperm.xlu1 %4629, %v5330_v5   ;;  %v870_v42 = vmul.f32 %v5882_v11, %v685_v47 }
 0x19a   : > { %v1027_v51 = vpop.permute.xlu1 %1026 }
 0x19b   : > { %v1192_v12 = vmul.f32 %v5877_v18, %v1027_v51  ;;  %v5332_v51 = vld [vmem:[%s5452_s15 + $0x188] sm:$0xff] }
 0x19c   : > { %v695_v22 = vpop.permute.xlu0 %694 }
 0x19d   : > { %v1256_v15 = vadd.f32 %v1192_v12, %v867_v16  ;;  %4630 = vset.pattern.permute.xlu1 %v7089_v1  ;;  %v498_v12 = vld [vmem:[%s5452_s15 + $0x198] sm:$0xff] }
 0x19e   : > { %744 = vperm.xlu1 %4630, %v7130_v50  }
 0x19f   : > { %v1408_v31 = vpop.permute.xlu1 %1407  ;;  %v1645_v38 = vadd.f32 %v1581_v59, %v1256_v15  ;;  %v4745_v4 = vpop.eup %4744 }
 0x1a0   : > { %v1579_v57 = vmul.f32 %v5893_v20, %v1408_v31  ;;  %v1259_v31 = vadd.f32 %v1195_v21, %v870_v42  ;;  %v6211_v37 = vpop.permute.xlu0 %719 }
 0x1a1   : > { %v1716_v25 = vadd.f32 %v5915_v41, %v1645_v38 }
 0x1a2   : > { %v1643_v14 = vadd.f32 %v1579_v57, %v1254_v2  ;;  %749 = vperm.xlu1 %4630, %v5331_v61  }
 0x1a3   : > { %v1412_v28 = vpop.permute.xlu1 %1411 }
 0x1a4   : > { %v1714_v56 = vadd.f32 %v5915_v41, %v1643_v14  ;;  %v1580_v35 = vmul.f32 %v5893_v20, %v1412_v28 }
 0x1a6   : > { %4746 = vtanh.f32 %v1714_v56  ;;  %v1644_v63 = vadd.f32 %v1580_v35, %v1255_v39  ;;  %4631 = vset.pattern.permute.xlu1 %v7091_v32 }
 0x1a7   : > { %1090 = vperm.xlu1 %4631, %v5331_v61   ;;  %4748 = vtanh.f32 %v1716_v25 }
 0x1a8   : > { %v1715_v58 = vadd.f32 %v5915_v41, %v1644_v63  ;;  %v675_v30 = vpop.permute.xlu1 %674  ;;  %v5333_v63 = vld [vmem:[%s5452_s15 + $0x190] sm:$0xff] }
 0x1a9   : > { %v868_v54 = vmul.f32 %v5882_v11, %v675_v30  ;;  %v6215_v30 = vpop.permute.xlu0 %724 }
 0x1aa   : > { %4750 = vtanh.f32 %v1715_v58 }
 0x1ab   : > { %4632 = vset.pattern.permute.xlu1 %v7093_v7 }
 0x1ac   : > { %1471 = vperm.xlu1 %4632, %v7125_v34  }
 0x1ad   : > { %v1031_v55 = vpop.permute.xlu1 %1030 }
 0x1ae   : > { %v1193_v60 = vmul.f32 %v5877_v18, %v1031_v55 }
 0x1b0   : > { %v4747_v48 = vpop.eup %4746  ;;  %1475 = vperm.xlu1 %4632, %v7130_v50   ;;  %v1257_v10 = vadd.f32 %v1193_v60, %v868_v54  ;;  %v7137_v54 = vld [vmem:[#allocation37_spill] sm:$0xff] }
 0x1b1   : > { %v1035_v13 = vpop.permute.xlu1 %1034  ;;  %v1827_v24 = vpack.c.bf16 %v4747_v48, %v4745_v4  ;;  %v4749_v62 = vpop.eup %4748 }
 0x1b2   : > { %v1194_v8 = vmul.f32 %v5877_v18, %v1035_v13  ;;  %v6217_v4 = vpop.permute.xlu0 %734  ;;  %v7134_v13 = vld [vmem:[#allocation35_spill] sm:$0xff] }
 0x1b3   : > { %4285 = vmatprep.mubr.bf16.mxu0 %v1827_v24 }
 0x1b4   : > { %v4751_v46 = vpop.eup %4750  ;;  %4633 = vset.pattern.permute.xlu1 %v7089_v1  ;;  %v1258_v44 = vadd.f32 %v1194_v8, %v869_v6 }
 0x1b5   : > { %754 = vperm.xlu1 %4633, %v495_v26   ;;  %v1828_v34 = vpack.c.bf16 %v4749_v62, %v4751_v46 }
 0x1b6   : > { %v690_v52 = vpop.permute.xlu1 %689  ;;  %v1647_v5 = vadd.f32 %v1583_v27, %v1258_v44  ;;  %v6224_v19 = vpop.permute.xlu0 %759 }
 0x1b7   : > { %4286 = vmatmul.mubr.bf16.gmra.mrb[28].mxu0 %v1828_v34  ;;  %v871_v2 = vmul.f32 %v5882_v11, %v690_v52  ;;  %v7135_v34 = vld [vmem:[#allocation23_spill] sm:$0xff] }
 0x1b8   : > { %v1718_v53 = vadd.f32 %v5915_v41, %v1647_v5  ;;  %v1586_v6 = vmul.f32 %v5893_v20, %v7135_v34  ;;  %v5334_v52 = vld [vmem:[%s5452_s15 + $0x1a0] sm:$0xff] }
 0x1b9   : > { %4634 = vset.pattern.permute.xlu1 %v7091_v32  ;;  %v7136_v5 = vld [vmem:[#allocation14_spill] sm:$0xff] }
 0x1ba   : > { %1094 = vperm.xlu1 %4634, %v495_v26   ;;  %4752 = vtanh.f32 %v1718_v53 }
 0x1bb   : > { %v1043_v29 = vpop.permute.xlu1 %1042 }
 0x1bc   : > { %v1196_v0 = vmul.f32 %v5877_v18, %v1043_v29 }
 0x1be   : > { %1098 = vperm.xlu1 %4634, %v5332_v51   ;;  %v1260_v38 = vadd.f32 %v1196_v0, %v871_v2  ;;  %v1198_v51 = vmul.f32 %v5877_v18, %v7136_v5 }
 0x1c0   : > { %v1420_v16 = vpop.permute.xlu1 %1419 }
 0x1c1   : > { %v1582_v59 = vmul.f32 %v5893_v20, %v1420_v16  ;;  %v6236_v16 = vpop.permute.xlu0 %764 }
 0x1c2   : > { %4635 = vset.pattern.permute.xlu1 %v7089_v1 }
 0x1c3   : > { %v1646_v15 = vadd.f32 %v1582_v59, %v1257_v10  ;;  %769 = vperm.xlu1 %4635, %v498_v12  }
 0x1c4   : > { %v1428_v50 = vpop.permute.xlu1 %1427  ;;  %v4753_v35 = vpop.eup %4752 }
 0x1c5   : > { %v1717_v33 = vadd.f32 %v5915_v41, %v1646_v15  ;;  %v1584_v36 = vmul.f32 %v5893_v20, %v1428_v50  ;;  %v7139_v50 = vld [vmem:[#allocation15_spill] sm:$0xff] }
 0x1c7   : > { %4754 = vtanh.f32 %v1717_v33  ;;  %v1648_v23 = vadd.f32 %v1584_v36, %v1259_v31  ;;  %4636 = vset.pattern.permute.xlu1 %v7091_v32  ;;  %v5336_v33 = vld [vmem:[%s5452_s15 + $0x1b8] sm:$0xff] }
 0x1c8   : > { %1106 = vperm.xlu1 %4636, %v498_v12   ;;  %v1432_v57 = vpop.permute.xlu1 %1431 }
 0x1c9   : > { %v1585_v14 = vmul.f32 %v5893_v20, %v1432_v57  ;;  %v1719_v61 = vadd.f32 %v5915_v41, %v1648_v23  ;;  %v6258_v57 = vpop.permute.xlu0 %774 }
 0x1cb   : > { %v1649_v28 = vadd.f32 %v1585_v14, %v1260_v38  ;;  %4756 = vtanh.f32 %v1719_v61 }
 0x1cc   : > { %4637 = vset.pattern.permute.xlu1 %v7093_v7 }
 0x1cd   : > { %v1720_v39 = vadd.f32 %v5915_v41, %v1649_v28  ;;  %1483 = vperm.xlu1 %4637, %v495_v26   ;;  %v700_v56 = vpop.permute.xlu1 %699  ;;  %v872_v26 = vmul.f32 %v5882_v11, %v695_v22  ;;  %v6263_v28 = vpop.permute.xlu0 %799 }
 0x1ce   : > { %v873_v29 = vmul.f32 %v5882_v11, %v700_v56 }
 0x1cf   : > { %4758 = vtanh.f32 %v1720_v39  ;;  %v5338_v39 = vld [vmem:[%s5452_s15 + $0x1a8] sm:$0xff] }
 0x1d0   : > { %v1262_v42 = vadd.f32 %v1198_v51, %v873_v29 }
 0x1d1   : > { %v4755_v25 = vpop.eup %4754  ;;  %1491 = vperm.xlu1 %4637, %v5333_v63   ;;  %v5339_v63 = vld [vmem:[%s5452_s15 + $0x1b0] sm:$0xff] }
 0x1d2   : > { %v1047_v40 = vpop.permute.xlu1 %1046  ;;  %v1829_v58 = vpack.c.bf16 %v4753_v35, %v4755_v25 }
 0x1d3   : > { %v1197_v62 = vmul.f32 %v5877_v18, %v1047_v40  ;;  %v6268_v40 = vpop.permute.xlu0 %804 }
 0x1d4   : > { %4289 = vmatprep.mubr.bf16.mxu0 %v1829_v58 }
 0x1d5   : > { %1495 = vperm.xlu1 %4637, %v498_v12   ;;  %v4757_v55 = vpop.eup %4756  ;;  %v1261_v8 = vadd.f32 %v1197_v62, %v872_v26  ;;  %v7138_v12 = vld [vmem:[#allocation25_spill] sm:$0xff] }
 0x1d6   : > { %v1589_v9 = vmul.f32 %v5893_v20, %v7138_v12 }
 0x1d7   : > { %v705_v45 = vpop.permute.xlu1 %704  ;;  %v1650_v60 = vadd.f32 %v1586_v6, %v1261_v8  ;;  %v6280_v34 = vpop.permute.xlu0 %814 }
 0x1d8   : > { %v874_v10 = vmul.f32 %v5882_v11, %v705_v45 }
 0x1d9   : > { %v4759_v48 = vpop.eup %4758  ;;  %4638 = vset.pattern.permute.xlu1 %v7089_v1  ;;  %v1721_v53 = vadd.f32 %v5915_v41, %v1650_v60 }
 0x1da   : > { %779 = vperm.xlu1 %4638, %v7134_v13   ;;  %v1830_v24 = vpack.c.bf16 %v4759_v48, %v4757_v55 }
 0x1db   : > { %v710_v46 = vpop.permute.xlu1 %709  ;;  %4760 = vtanh.f32 %v1721_v53 }
 0x1dc   : > { %4290 = vmatmul.mubr.bf16.gmra.mrb[32].mxu0 %v1830_v24  ;;  %v875_v27 = vmul.f32 %v5882_v11, %v710_v46  ;;  %v6275_v24 = vld [vmem:[%s7041_s1] ss:$0 sm:$0xff] }
 0x1dd   : > { %v877_v26 = vmul.f32 %v6275_v24, %v6211_v37  ;;  %v5341_v37 = vld [vmem:[%s5452_s15 + $0x1c8] sm:$0xff]  ;;  %v878_v60 = vmul.f32 %v6275_v24, %v6215_v30 }
 0x1de   : > { %4639 = vset.pattern.permute.xlu1 %v7091_v32 }
 0x1df   : > { %1110 = vperm.xlu1 %4639, %v5334_v52   ;;  %v7140_v52 = vld [vmem:[#allocation26_spill] sm:$0xff] }
 0x1e0   : > { %v1059_v43 = vpop.permute.xlu1 %1058 }
 0x1e1   : > { %v1200_v44 = vmul.f32 %v5877_v18, %v1059_v43  ;;  %v6246_v18 = vld [vmem:[%s7041_s1 + $0x1] ss:$0 sm:$0xff] }
 0x1e2   : > { %v1199_v31 = vmul.f32 %v6246_v18, %v7139_v50 }
 0x1e3   : > { %v1264_v47 = vadd.f32 %v1200_v44, %v875_v27  ;;  %4640 = vset.pattern.permute.xlu1 %v7089_v1  ;;  %v1071_v27 = vpop.permute.xlu0 %1070 }
 0x1e4   : > { %784 = vperm.xlu1 %4640, %v7137_v54   ;;  %v1263_v2 = vadd.f32 %v1199_v31, %v874_v10  ;;  %v1203_v5 = vmul.f32 %v6246_v18, %v1071_v27  ;;  %v506_v54 = vld [vmem:[%s5452_s15 + $0x1d8] sm:$0xff] }
 0x1e5   : > { %v1440_v21 = vpop.permute.xlu1 %1439  ;;  %v1653_v15 = vadd.f32 %v1589_v9, %v1264_v47  ;;  %v4761_v35 = vpop.eup %4760 }
 0x1e6   : > { %v1587_v59 = vmul.f32 %v5893_v20, %v1440_v21  ;;  %v6255_v20 = vld [vmem:[%s7041_s1 + $0x2] ss:$0 sm:$0xff]  ;;  %v6296_v21 = vld [vmem:[%s7042_s2] ss:$0 sm:$0xff]  ;;  %v1267_v30 = vadd.f32 %v1203_v5, %v878_v60 }
 0x1e7   : > { %v1724_v22 = vadd.f32 %v5915_v41, %v1653_v15  ;;  %v1591_v43 = vmul.f32 %v6255_v20, %v7140_v52 }
 0x1e8   : > { %v1651_v0 = vadd.f32 %v1587_v59, %v1262_v42  ;;  %789 = vperm.xlu1 %4640, %v5336_v33  }
 0x1e9   : > { %v1444_v36 = vpop.permute.xlu1 %1443 }
 0x1ea   : > { %v1722_v11 = vadd.f32 %v5915_v41, %v1651_v0  ;;  %v1588_v23 = vmul.f32 %v6255_v20, %v1444_v36 }
 0x1ec   : > { %4762 = vtanh.f32 %v1722_v11  ;;  %v1652_v38 = vadd.f32 %v1588_v23, %v1263_v2  ;;  %4641 = vset.pattern.permute.xlu1 %v7091_v32 }
 0x1ed   : > { %1122 = vperm.xlu1 %4641, %v5336_v33   ;;  %4764 = vtanh.f32 %v1724_v22 }
 0x1ee   : > { %v1723_v14 = vadd.f32 %v5915_v41, %v1652_v38  ;;  %v715_v61 = vpop.permute.xlu1 %714  ;;  %v503_v41 = vld [vmem:[%s5452_s15 + $0x1c0] sm:$0xff] }
 0x1ef   : > { %v876_v47 = vmul.f32 %v6275_v24, %v715_v61 }
 0x1f0   : > { %4766 = vtanh.f32 %v1723_v14 }
 0x1f1   : > { %4642 = vset.pattern.permute.xlu1 %v7093_v7 }
 0x1f2   : > { %1503 = vperm.xlu1 %4642, %v5338_v39   ;;  %v5343_v39 = vld [vmem:[%s5452_s15 + $0x1d0] sm:$0xff] }
 0x1f3   : > { %v1063_v56 = vpop.permute.xlu1 %1062 }
 0x1f4   : > { %v1201_v44 = vmul.f32 %v6246_v18, %v1063_v56 }
 0x1f6   : > { %v4763_v25 = vpop.eup %4762  ;;  %1507 = vperm.xlu1 %4642, %v5339_v63   ;;  %v1265_v12 = vadd.f32 %v1201_v44, %v876_v47  ;;  %v7141_v44 = vld [vmem:[#allocation27_spill] sm:$0xff] }
 0x1f7   : > { %v1067_v58 = vpop.permute.xlu1 %1066  ;;  %v1831_v45 = vpack.c.bf16 %v4763_v25, %v4761_v35  ;;  %v4765_v55 = vpop.eup %4764  ;;  %v6313_v25 = vld [vmem:[%s7044_s4] ss:$0 sm:$0xff] }
 0x1f8   : > { %v1202_v62 = vmul.f32 %v6246_v18, %v1067_v58 }
 0x1f9   : > { %4293 = vmatprep.mubr.bf16.mxu0 %v1831_v45 }
 0x1fa   : > { %v4767_v48 = vpop.eup %4766  ;;  %4643 = vset.pattern.permute.xlu1 %v7089_v1  ;;  %v1266_v6 = vadd.f32 %v1202_v62, %v877_v26 }
 0x1fb   : > { %794 = vperm.xlu1 %4643, %v503_v41   ;;  %v1832_v13 = vpack.c.bf16 %v4765_v55, %v4767_v48  ;;  %v880_v48 = vmul.f32 %v6275_v24, %v6217_v4 }
 0x1fc   : > { %v730_v46 = vpop.permute.xlu1 %729  ;;  %v1655_v29 = vadd.f32 %v1591_v43, %v1266_v6 }
 0x1fd   : > { %4294 = vmatmul.mubr.bf16.gmra.mrb[36].mxu0 %v1832_v13  ;;  %v879_v31 = vmul.f32 %v6275_v24, %v730_v46 }
 0x1fe   : > { %v1726_v42 = vadd.f32 %v6296_v21, %v1655_v29  ;;  %v1594_v29 = vmul.f32 %v6255_v20, %v7141_v44 }
 0x1ff   : > { %4644 = vset.pattern.permute.xlu1 %v7091_v32 }
 0x200   : > { %1126 = vperm.xlu1 %4644, %v503_v41   ;;  %4768 = vtanh.f32 %v1726_v42 }
 0x201   : > { %v1075_v8 = vpop.permute.xlu1 %1074 }
 0x202   : > { %v1204_v53 = vmul.f32 %v6246_v18, %v1075_v8 }
 0x204   : > { %1130 = vperm.xlu1 %4644, %v5341_v37   ;;  %v1268_v36 = vadd.f32 %v1204_v53, %v879_v31  ;;  %v1083_v37 = vpop.permute.xlu0 %1082 }
 0x206   : > { %v1452_v51 = vpop.permute.xlu1 %1451 }
 0x207   : > { %v1590_v9 = vmul.f32 %v6255_v20, %v1452_v51  ;;  %v5344_v51 = vld [vmem:[%s5452_s15 + $0x1e0] sm:$0xff] }
 0x208   : > { %4645 = vset.pattern.permute.xlu1 %v7089_v1  ;;  %v1087_v31 = vpop.permute.xlu0 %1086 }
 0x209   : > { %v1654_v10 = vadd.f32 %v1590_v9, %v1265_v12  ;;  %809 = vperm.xlu1 %4645, %v506_v54  }
 0x20a   : > { %v1460_v59 = vpop.permute.xlu1 %1459  ;;  %v4769_v14 = vpop.eup %4768 }
 0x20b   : > { %v1725_v15 = vadd.f32 %v6296_v21, %v1654_v10  ;;  %v1592_v50 = vmul.f32 %v6255_v20, %v1460_v59 }
 0x20d   : > { %4770 = vtanh.f32 %v1725_v15  ;;  %v1656_v0 = vadd.f32 %v1592_v50, %v1267_v30  ;;  %4646 = vset.pattern.permute.xlu1 %v7091_v32  ;;  %v1206_v15 = vmul.f32 %v6246_v18, %v1083_v37 }
 0x20e   : > { %1138 = vperm.xlu1 %4646, %v506_v54   ;;  %v1464_v33 = vpop.permute.xlu1 %1463 }
 0x20f   : > { %v1593_v2 = vmul.f32 %v6255_v20, %v1464_v33  ;;  %v1727_v11 = vadd.f32 %v6296_v21, %v1656_v0 }
 0x211   : > { %v1657_v23 = vadd.f32 %v1593_v2, %v1268_v36  ;;  %4772 = vtanh.f32 %v1727_v11  ;;  %v7142_v11 = vld [vmem:[#allocation29_spill] sm:$0xff] }
 0x212   : > { %4647 = vset.pattern.permute.xlu1 %v7093_v7 }
 0x213   : > { %v1728_v22 = vadd.f32 %v6296_v21, %v1657_v23  ;;  %1515 = vperm.xlu1 %4647, %v503_v41   ;;  %v740_v38 = vpop.permute.xlu1 %739  ;;  %v1597_v23 = vmul.f32 %v6255_v20, %v7142_v11 }
 0x214   : > { %v881_v50 = vmul.f32 %v6275_v24, %v740_v38  ;;  %v1207_v38 = vmul.f32 %v6246_v18, %v1087_v31 }
 0x215   : > { %4774 = vtanh.f32 %v1728_v22 }
 0x217   : > { %v4771_v61 = vpop.eup %4770  ;;  %1523 = vperm.xlu1 %4647, %v5343_v39  }
 0x218   : > { %v1079_v56 = vpop.permute.xlu1 %1078  ;;  %v1833_v35 = vpack.c.bf16 %v4769_v14, %v4771_v61 }
 0x219   : > { %v1205_v13 = vmul.f32 %v6246_v18, %v1079_v56  ;;  %v1270_v56 = vadd.f32 %v1206_v15, %v881_v50 }
 0x21a   : > { %4297 = vmatprep.mubr.bf16.mxu0 %v1833_v35 }
 0x21b   : > { %1527 = vperm.xlu1 %4647, %v506_v54   ;;  %v4773_v55 = vpop.eup %4772  ;;  %v1269_v27 = vadd.f32 %v1205_v13, %v880_v48 }
 0x21c   : > { %v4259_v63 = vpop.f32.mrb[0].mxu0 }
 0x21d   : > { %v1959_v58 = vadd.f32 %v4259_v63, %v6313_v25  ;;  %v1950_v45 = vpop.f32.mrb[1].mxu0  ;;  %v745_v41 = vpop.permute.xlu1 %744  ;;  %v1658_v54 = vadd.f32 %v1594_v29, %v1269_v27 }
 0x21e   : > { %v1951_v26 = vadd.f32 %v6313_v25, %v1950_v45  ;;  %v4260_v62 = vpop.f32.mrb[2].mxu0  ;;  %v882_v14 = vmul.f32 %v6275_v24, %v745_v41 }
 0x21f   : > { %v4775_v46 = vpop.eup %4774  ;;  %v1962_v6 = vadd.f32 %v4260_v62, %v6313_v25  ;;  %v1953_v8 = vpop.f32.mrb[3].mxu0  ;;  %4650 = vset.pattern.permute.xlu1 %v7089_v1  ;;  %4776 = vtanh.f32 %v1959_v58  ;;  %v1729_v22 = vadd.f32 %v6296_v21, %v1658_v54 }
 0x220   : > { %v1954_v52 = vadd.f32 %v6313_v25, %v1953_v8  ;;  %819 = vperm.xlu1 %4650, %v6118_v49   ;;  %v1834_v43 = vpack.c.bf16 %v4775_v46, %v4773_v55  ;;  %4778 = vtanh.f32 %v1951_v26  ;;  %v1271_v41 = vadd.f32 %v1207_v38, %v882_v14 }
 0x221   : > { %v750_v4 = vpop.permute.xlu1 %749  ;;  %4780 = vtanh.f32 %v1962_v6 }
 0x222   : > { %4298 = vmatmul.mubr.bf16.gmra.mrb[40].mxu0 %v1834_v43  ;;  %4782 = vtanh.f32 %v1954_v52  ;;  %v883_v10 = vmul.f32 %v6275_v24, %v750_v4 }
 0x224   : > { %v4263_v60 = vpop.f32.mrb[4].mxu0  ;;  %4651 = vset.pattern.permute.xlu1 %v7091_v32 }
 0x225   : > { %v1975_v47 = vadd.f32 %v4263_v60, %v6313_v25  ;;  %v1966_v5 = vpop.f32.mrb[5].mxu0  ;;  %1142 = vperm.xlu1 %4651, %v5344_v51  }
 0x226   : > { %v1967_v12 = vadd.f32 %v6313_v25, %v1966_v5  ;;  %v4264_v9 = vpop.f32.mrb[6].mxu0  ;;  %v1091_v42 = vpop.permute.xlu1 %1090 }
 0x227   : > { %4784 = vtanh.f32 %v1975_v47  ;;  %v1978_v30 = vadd.f32 %v4264_v9, %v6313_v25  ;;  %v1208_v59 = vmul.f32 %v6246_v18, %v1091_v42  ;;  %v1969_v53 = vpop.f32.mrb[7].mxu0 }
 0x228   : > { %4786 = vtanh.f32 %v1967_v12  ;;  %v1970_v0 = vadd.f32 %v6313_v25, %v1969_v53 }
 0x229   : > { %4788 = vtanh.f32 %v1978_v30  ;;  %v1272_v33 = vadd.f32 %v1208_v59, %v883_v10  ;;  %4652 = vset.pattern.permute.xlu1 %v7089_v1  ;;  %v4777_v36 = vpop.eup %4776 }
 0x22a   : > { %4790 = vtanh.f32 %v1970_v0  ;;  %824 = vperm.xlu1 %4652, %v6125_v17   ;;  %v4779_v2 = vpop.eup %4778 }
 0x22b   : > { %v1472_v61 = vpop.permute.xlu1 %1471  ;;  %v4781_v39 = vpop.eup %4780  ;;  %v1661_v58 = vadd.f32 %v1597_v23, %v1272_v33  ;;  %4792 = vtanh.f32 %v1729_v22 }
 0x22c   : > { %v1595_v35 = vmul.f32 %v6255_v20, %v1472_v61  ;;  %v4267_v1 = vpop.f32.mrb[8].mxu0  ;;  %v4783_v63 = vpop.eup %4782  ;;  %v2270_v48 = vpack.c.bf16 %v4781_v39, %v4777_v36 }
 0x22d   : > { %v1991_v45 = vadd.f32 %v4267_v1, %v6313_v25  ;;  %v1982_v55 = vpop.f32.mrb[9].mxu0  ;;  %v2269_v46 = vpack.c.bf16 %v4783_v63, %v4779_v2  ;;  %v1732_v29 = vadd.f32 %v6296_v21, %v1661_v58 }
 0x22e   : > { %v1659_v13 = vadd.f32 %v1595_v35, %v1270_v56  ;;  %v1983_v26 = vadd.f32 %v6313_v25, %v1982_v55  ;;  %v4268_v62 = vpop.f32.mrb[10].mxu0  ;;  %829 = vperm.xlu1 %4652, %v6182_v3  }
 0x22f   : > { %v1994_v6 = vadd.f32 %v4268_v62, %v6313_v25  ;;  %v1985_v8 = vpop.f32.mrb[11].mxu0  ;;  %v1476_v52 = vpop.permute.xlu1 %1475  ;;  %4794 = vtanh.f32 %v1991_v45  ;;  %4337 = vmatprep.mubr.bf16.mxu1 %v2269_v46 }
 0x230   : > { %v1730_v43 = vadd.f32 %v6296_v21, %v1659_v13  ;;  %v1986_v4 = vadd.f32 %v6313_v25, %v1985_v8  ;;  %v1596_v27 = vmul.f32 %v6255_v20, %v1476_v52  ;;  %4796 = vtanh.f32 %v1983_v26  ;;  %4338 = vmatmul.mubr.bf16.vlgmr.msra.gmra.mrb[0].mxu1 %v2270_v48 }
 0x231   : > { %v4785_v44 = vpop.eup %4784 }
 0x232   : > { %v4787_v37 = vpop.eup %4786  ;;  %4798 = vtanh.f32 %v1730_v43  ;;  %v1660_v60 = vadd.f32 %v1596_v27, %v1271_v41  ;;  %4653 = vset.pattern.permute.xlu1 %v7091_v32  ;;  %v885_v41 = vmul.f32 %v6275_v24, %v6224_v19 }
 0x233   : > { %v4789_v47 = vpop.eup %4788  ;;  %4800 = vtanh.f32 %v1994_v6  ;;  %1154 = vperm.xlu1 %4653, %v6182_v3  }
 0x234   : > { %v4791_v5 = vpop.eup %4790  ;;  %4802 = vtanh.f32 %v1986_v4  ;;  %v1731_v51 = vadd.f32 %v6296_v21, %v1660_v60  ;;  %v4271_v54 = vpop.f32.mrb[12].mxu0  ;;  %v2272_v9 = vpack.c.bf16 %v4789_v47, %v4785_v44 }
 0x235   : > { %v6355_v12 = vpop.permute.xlu1 %754  ;;  %4804 = vtanh.f32 %v1732_v29  ;;  %v2007_v42 = vadd.f32 %v4271_v54, %v6313_v25  ;;  %v1998_v10 = vpop.f32.mrb[13].mxu0  ;;  %v2271_v30 = vpack.c.bf16 %v4791_v5, %v4787_v37  ;;  %v7143_v5 = vld [vmem:[#allocation30_spill] sm:$0xff] }
 0x236   : > { %4806 = vtanh.f32 %v1731_v51  ;;  %v1999_v32 = vadd.f32 %v6313_v25, %v1998_v10  ;;  %v4272_v59 = vpop.f32.mrb[14].mxu0  ;;  %v4793_v50 = vpop.eup %4792  ;;  %v1599_v51 = vmul.f32 %v6255_v20, %v7143_v5 }
 0x237   : > { %4808 = vtanh.f32 %v2007_v42  ;;  %v2010_v3 = vadd.f32 %v4272_v59, %v6313_v25  ;;  %v2001_v53 = vpop.f32.mrb[15].mxu0  ;;  %4341 = vmatprep.mubr.bf16.mxu1 %v2271_v30  ;;  %4655 = vset.pattern.permute.xlu1 %v7093_v7 }
 0x238   : > { %4810 = vtanh.f32 %v1999_v32  ;;  %v2002_v15 = vadd.f32 %v6313_v25, %v2001_v53  ;;  %1535 = vperm.xlu1 %4655, %v6118_v49   ;;  %4342 = vmatmul.mubr.bf16.gmra.mrb[4].mxu1 %v2272_v9  ;;  %v884_v32 = vmul.f32 %v6275_v24, %v6355_v12  ;;  %v1103_v53 = vpop.permute.xlu0 %1102 }
 0x239   : > { %4812 = vtanh.f32 %v2010_v3  ;;  %v1095_v31 = vpop.permute.xlu1 %1094  ;;  %v4795_v0 = vpop.eup %4794  ;;  %v886_v3 = vmul.f32 %v6275_v24, %v6236_v16 }
 0x23a   : > { %4814 = vtanh.f32 %v2002_v15  ;;  %v4797_v33 = vpop.eup %4796  ;;  %v1209_v9 = vmul.f32 %v6246_v18, %v1095_v31 }
 0x23c   : > { %v4799_v36 = vpop.eup %4798  ;;  %v4275_v2 = vpop.f32.mrb[16].mxu0  ;;  %1539 = vperm.xlu1 %4655, %v6125_v17  }
 0x23d   : > { %v4801_v11 = vpop.eup %4800  ;;  %v2023_v23 = vadd.f32 %v4275_v2, %v6313_v25  ;;  %v2014_v7 = vpop.f32.mrb[17].mxu0  ;;  %v1835_v38 = vpack.c.bf16 %v4799_v36, %v4793_v50 }
 0x23e   : > { %v1099_v22 = vpop.permute.xlu1 %1098  ;;  %v4803_v14 = vpop.eup %4802  ;;  %v2015_v49 = vadd.f32 %v6313_v25, %v2014_v7  ;;  %v2274_v39 = vpack.c.bf16 %v4801_v11, %v4795_v0  ;;  %v1211_v0 = vmul.f32 %v6246_v18, %v1103_v53 }
 0x23f   : > { %v4276_v61 = vpop.f32.mrb[18].mxu0  ;;  %v4805_v56 = vpop.eup %4804  ;;  %4816 = vtanh.f32 %v2023_v23  ;;  %4301 = vmatprep.mubr.bf16.mxu0 %v1835_v38  ;;  %v2273_v63 = vpack.c.bf16 %v4803_v14, %v4797_v33  ;;  %v1210_v13 = vmul.f32 %v6246_v18, %v1099_v22  ;;  %v1273_v33 = vadd.f32 %v1209_v9, %v884_v32 }
 0x240   : > { %v2026_v35 = vadd.f32 %v4276_v61, %v6313_v25  ;;  %v2017_v1 = vpop.f32.mrb[19].mxu0  ;;  %v4807_v58 = vpop.eup %4806  ;;  %4818 = vtanh.f32 %v2015_v49  ;;  %v1275_v12 = vadd.f32 %v1211_v0, %v886_v3  ;;  %v7145_v0 = vld [vmem:[#allocation34_spill] sm:$0xff] }
 0x241   : > { %v2018_v17 = vadd.f32 %v6313_v25, %v2017_v1  ;;  %v4809_v45 = vpop.eup %4808  ;;  %4345 = vmatprep.mubr.bf16.mxu1 %v2273_v63  ;;  %v1836_v55 = vpack.c.bf16 %v4805_v56, %v4807_v58  ;;  %v1274_v27 = vadd.f32 %v1210_v13, %v885_v41 }
 0x242   : > { %4820 = vtanh.f32 %v2026_v35  ;;  %v4811_v48 = vpop.eup %4810  ;;  %4346 = vmatmul.mubr.bf16.gmra.mrb[8].mxu1 %v2274_v39  ;;  %v770_v26 = vpop.permute.xlu1 %769 }
 0x243   : > { %4822 = vtanh.f32 %v2018_v17  ;;  %v4813_v62 = vpop.eup %4812  ;;  %4302 = vmatmul.mubr.bf16.gmra.mrb[44].mxu0 %v1836_v55  ;;  %v1663_v10 = vadd.f32 %v1599_v51, %v1274_v27  ;;  %v887_v61 = vmul.f32 %v6275_v24, %v770_v26 }
 0x244   : > { %v4815_v46 = vpop.eup %4814  ;;  %v4279_v6 = vpop.f32.mrb[20].mxu0  ;;  %v2276_v8 = vpack.c.bf16 %v4813_v62, %v4809_v45 }
 0x245   : > { %v2039_v52 = vadd.f32 %v4279_v6, %v6313_v25  ;;  %v2030_v43 = vpop.f32.mrb[21].mxu0  ;;  %v2275_v4 = vpack.c.bf16 %v4815_v46, %v4811_v48  ;;  %v1734_v2 = vadd.f32 %v6296_v21, %v1663_v10 }
 0x246   : > { %v2031_v44 = vadd.f32 %v6313_v25, %v2030_v43  ;;  %v4280_v29 = vpop.f32.mrb[22].mxu0 }
 0x247   : > { %4824 = vtanh.f32 %v2039_v52  ;;  %v2042_v37 = vadd.f32 %v4280_v29, %v6313_v25  ;;  %v2033_v60 = vpop.f32.mrb[23].mxu0  ;;  %4349 = vmatprep.mubr.bf16.mxu1 %v2275_v4  ;;  %v1107_v47 = vpop.permute.xlu1 %1106 }
 0x248   : > { %4826 = vtanh.f32 %v2031_v44  ;;  %v2034_v19 = vadd.f32 %v6313_v25, %v2033_v60  ;;  %v1212_v22 = vmul.f32 %v6246_v18, %v1107_v47  ;;  %v888_v44 = vmul.f32 %v6275_v24, %v6258_v57  ;;  %v1115_v47 = vpop.permute.xlu0 %1114 }
 0x249   : > { %v4817_v54 = vpop.eup %4816  ;;  %4828 = vtanh.f32 %v2042_v37  ;;  %v1214_v3 = vmul.f32 %v6246_v18, %v1115_v47  ;;  %v893_v47 = vmul.f32 %v6275_v24, %v6263_v28  ;;  %v7146_v28 = vld [vmem:[#allocation36_spill] sm:$0xff] }
 0x24a   : > { %v4819_v42 = vpop.eup %4818  ;;  %4830 = vtanh.f32 %v2034_v19  ;;  %4350 = vmatmul.mubr.bf16.gmra.mrb[12].mxu1 %v2276_v8  ;;  %v1276_v63 = vadd.f32 %v1212_v22, %v887_v61 }
 0x24b   : > { %4832 = vtanh.f32 %v1734_v2 }
 0x24c   : > { %v4821_v30 = vpop.eup %4820  ;;  %v1484_v15 = vpop.permute.xlu1 %1483 }
 0x24d   : > { %v4823_v59 = vpop.eup %4822  ;;  %v2278_v50 = vpack.c.bf16 %v4821_v30, %v4817_v54  ;;  %v1598_v31 = vmul.f32 %v6255_v20, %v1484_v15  ;;  %v7144_v54 = vld [vmem:[#allocation33_spill] sm:$0xff] }
 0x24e   : > { %v2277_v36 = vpack.c.bf16 %v4823_v59, %v4819_v42  ;;  %v1602_v9 = vmul.f32 %v6255_v20, %v7144_v54  ;;  %v4677_v54 = vld [vmem:[%s7047_s7 + $0x28] sm:$0xff]  }
 0x24f   : > { %v1662_v11 = vadd.f32 %v1598_v31, %v1273_v33  ;;  %v1605_v33 = vmul.f32 %v6255_v20, %v7145_v0  ;;  %v1119_v31 = vpop.permute.xlu0 %1118 }
 0x250   : > { %4353 = vmatprep.mubr.bf16.mxu1 %v2277_v36  ;;  %v1492_v23 = vpop.permute.xlu1 %1491  ;;  %v1215_v2 = vmul.f32 %v6246_v18, %v1119_v31 }
 0x251   : > { %v4825_v7 = vpop.eup %4824  ;;  %v1733_v16 = vadd.f32 %v6296_v21, %v1662_v11  ;;  %v1600_v38 = vmul.f32 %v6255_v20, %v1492_v23 }
 0x252   : > { %v4827_v14 = vpop.eup %4826  ;;  %4354 = vmatmul.mubr.bf16.gmra.mrb[16].mxu1 %v2278_v50 }
 0x253   : > { %v4829_v49 = vpop.eup %4828  ;;  %4834 = vtanh.f32 %v1733_v16  ;;  %v1664_v39 = vadd.f32 %v1600_v38, %v1275_v12 }
 0x254   : > { %v4831_v56 = vpop.eup %4830  ;;  %v1496_v35 = vpop.permute.xlu1 %1495  ;;  %v2280_v1 = vpack.c.bf16 %v4829_v49, %v4825_v7 }
 0x255   : > { %v1601_v58 = vmul.f32 %v6255_v20, %v1496_v35  ;;  %v2279_v17 = vpack.c.bf16 %v4831_v56, %v4827_v14  ;;  %v1735_v45 = vadd.f32 %v6296_v21, %v1664_v39  ;;  %v4833_v26 = vpop.eup %4832 }
 0x257   : > { %v1665_v55 = vadd.f32 %v1601_v58, %v1276_v63  ;;  %4357 = vmatprep.mubr.bf16.mxu1 %v2279_v17  ;;  %4836 = vtanh.f32 %v1735_v45 }
 0x259   : > { %v1736_v48 = vadd.f32 %v6296_v21, %v1665_v55  ;;  %v780_v13 = vpop.permute.xlu1 %779 }
 0x25a   : > { %4358 = vmatmul.mubr.bf16.gmra.mrb[20].mxu1 %v2280_v1  ;;  %v889_v53 = vmul.f32 %v6275_v24, %v780_v13  ;;  %v4672_v1 = vld [vmem:[%s7047_s7] sm:$0xff]  }
 0x25b   : > { %4838 = vtanh.f32 %v1736_v48  ;;  %4401 = vmatprep.subr.bf16.mxu0 %v4672_v1 }
 0x25c   : > { %v1278_v11 = vadd.f32 %v1214_v3, %v889_v53  ;;  %4402 = vmatpush3.bf16.msra.mxu0 %v4672_v1 }
 0x25d   : > { %v4835_v62 = vpop.eup %4834 }
 0x25e   : > { %v1111_v46 = vpop.permute.xlu1 %1110  ;;  %v1837_v41 = vpack.c.bf16 %v4833_v26, %v4835_v62  ;;  %v4673_v26 = vld [vmem:[%s7047_s7 + $0x8] sm:$0xff]   ;;  %v4674_v62 = vld [vmem:[%s7047_s7 + $0x10] sm:$0xff]  }
 0x25f   : > { %v1213_v4 = vmul.f32 %v6246_v18, %v1111_v46  ;;  %4403 = vmatprep.subr.bf16.mxu0 %v4673_v26 }
 0x260   : > { %4305 = vmatprep.mubr.bf16.mxu0 %v1837_v41  ;;  %4404 = vmatpush3.bf16.msra.mxu0 %v4673_v26 }
 0x261   : > { %v4837_v8 = vpop.eup %4836  ;;  %v1277_v5 = vadd.f32 %v1213_v4, %v888_v44  ;;  %4405 = vmatprep.subr.bf16.mxu0 %v4674_v62 }
 0x263   : > { %v785_v6 = vpop.permute.xlu1 %784  ;;  %v1666_v15 = vadd.f32 %v1602_v9, %v1277_v5 }
 0x264   : > { %v890_v23 = vmul.f32 %v6275_v24, %v785_v6  ;;  %4406 = vmatpush3.bf16.msra.mxu0 %v4674_v62 }
 0x265   : > { %v4839_v52 = vpop.eup %4838  ;;  %v1737_v12 = vadd.f32 %v6296_v21, %v1666_v15  ;;  %v4678_v15 = vld [vmem:[%s7047_s7 + $0x30] sm:$0xff]  }
 0x266   : > { %v1838_v43 = vpack.c.bf16 %v4839_v52, %v4837_v8  ;;  %v1279_v49 = vadd.f32 %v1215_v2, %v890_v23 }
 0x267   : > { %v790_v27 = vpop.permute.xlu1 %789 }
 0x268   : > { %4306 = vmatmul.mubr.bf16.gmra.mrb[48].mxu0 %v1838_v43  ;;  %v891_v32 = vmul.f32 %v6275_v24, %v790_v27  ;;  %v4675_v43 = vld [vmem:[%s7047_s7 + $0x18] sm:$0xff]  }
 0x269   : > { %v4283_v29 = vpop.f32.mrb[24].mxu0  ;;  %4407 = vmatprep.subr.bf16.mxu0 %v4675_v43 }
 0x26a   : > { %v2055_v37 = vadd.f32 %v4283_v29, %v6313_v25  ;;  %v2046_v60 = vpop.f32.mrb[25].mxu0  ;;  %4408 = vmatpush3.bf16.msra.mxu0 %v4675_v43  ;;  %v4676_v29 = vld [vmem:[%s7047_s7 + $0x20] sm:$0xff]  }
 0x26b   : > { %v2047_v51 = vadd.f32 %v6313_v25, %v2046_v60  ;;  %v4284_v19 = vpop.f32.mrb[26].mxu0  ;;  %4409 = vmatprep.subr.bf16.mxu0 %v4676_v29 }
 0x26c   : > { %4840 = vtanh.f32 %v2055_v37  ;;  %v2058_v42 = vadd.f32 %v4284_v19, %v6313_v25  ;;  %v2049_v10 = vpop.f32.mrb[27].mxu0  ;;  %v1123_v30 = vpop.permute.xlu1 %1122 }
 0x26d   : > { %4842 = vtanh.f32 %v2047_v51  ;;  %v2050_v57 = vadd.f32 %v6313_v25, %v2049_v10  ;;  %v1216_v59 = vmul.f32 %v6246_v18, %v1123_v30 }
 0x26e   : > { %4844 = vtanh.f32 %v2058_v42  ;;  %4410 = vmatpush3.bf16.msra.mxu0 %v4676_v29 }
 0x26f   : > { %4846 = vtanh.f32 %v2050_v57  ;;  %v1280_v50 = vadd.f32 %v1216_v59, %v891_v32  ;;  %4411 = vmatprep.subr.bf16.mxu0 %v4677_v54  ;;  %v1607_v59 = vmul.f32 %v6255_v20, %v7146_v28 }
 0x270   : > { %4848 = vtanh.f32 %v1737_v12 }
 0x271   : > { %v1504_v36 = vpop.permute.xlu1 %1503  ;;  %v1669_v22 = vadd.f32 %v1605_v33, %v1280_v50  ;;  %v1135_v50 = vpop.permute.xlu0 %1134 }
 0x272   : > { %v1603_v7 = vmul.f32 %v6255_v20, %v1504_v36  ;;  %4412 = vmatpush3.bf16.msra.mxu0 %v4677_v54  ;;  %v894_v36 = vmul.f32 %v6275_v24, %v6268_v40  ;;  %v1219_v2 = vmul.f32 %v6246_v18, %v1135_v50 }
 0x273   : > { %v1740_v35 = vadd.f32 %v6296_v21, %v1669_v22  ;;  %4413 = vmatprep.subr.bf16.mxu0 %v4678_v15 }
 0x274   : > { %v1667_v16 = vadd.f32 %v1603_v7, %v1278_v11  ;;  %v4679_v7 = vld [vmem:[%s7047_s7 + $0x38] sm:$0xff]  }
 0x275   : > { %v1508_v38 = vpop.permute.xlu1 %1507 }
 0x276   : > { %v4841_v14 = vpop.eup %4840  ;;  %v1738_v61 = vadd.f32 %v6296_v21, %v1667_v16  ;;  %v1604_v39 = vmul.f32 %v6255_v20, %v1508_v38  ;;  %4414 = vmatpush3.bf16.msra.mxu0 %v4678_v15 }
 0x277   : > { %v4843_v56 = vpop.eup %4842  ;;  %4415 = vmatprep.subr.bf16.mxu0 %v4679_v7 }
 0x278   : > { %v4845_v63 = vpop.eup %4844  ;;  %4850 = vtanh.f32 %v1738_v61  ;;  %v1668_v58 = vadd.f32 %v1604_v39, %v1279_v49 }
 0x279   : > { %v4847_v17 = vpop.eup %4846  ;;  %v2282_v45 = vpack.c.bf16 %v4845_v63, %v4841_v14  ;;  %4852 = vtanh.f32 %v1740_v35  ;;  %v1283_v14 = vadd.f32 %v1219_v2, %v894_v36 }
 0x27a   : > { %v1739_v55 = vadd.f32 %v6296_v21, %v1668_v58  ;;  %v795_v48 = vpop.permute.xlu1 %794  ;;  %v2281_v13 = vpack.c.bf16 %v4847_v17, %v4843_v56  ;;  %v4849_v41 = vpop.eup %4848  ;;  %4416 = vmatpush3.bf16.msra.mxu0 %v4679_v7 }
 0x27b   : > { %v892_v33 = vmul.f32 %v6275_v24, %v795_v48 }
 0x27c   : > { %4854 = vtanh.f32 %v1739_v55  ;;  %4361 = vmatprep.mubr.bf16.mxu1 %v2281_v13 }
 0x27d   : > { %4362 = vmatmul.mubr.bf16.gmra.mrb[24].mxu1 %v2282_v45 }
 0x27f   : > { %v1127_v46 = vpop.permute.xlu1 %1126 }
 0x280   : > { %v1217_v53 = vmul.f32 %v6246_v18, %v1127_v46 }
 0x282   : > { %v4851_v6 = vpop.eup %4850  ;;  %v1281_v11 = vadd.f32 %v1217_v53, %v892_v33 }
 0x283   : > { %v1131_v8 = vpop.permute.xlu1 %1130  ;;  %v1839_v52 = vpack.c.bf16 %v4851_v6, %v4849_v41  ;;  %v4853_v4 = vpop.eup %4852 }
 0x284   : > { %v1218_v37 = vmul.f32 %v6246_v18, %v1131_v8  ;;  %v1147_v8 = vpop.permute.xlu0 %1146 }
 0x285   : > { %4309 = vmatprep.mubr.bf16.mxu0 %v1839_v52  ;;  %v1222_v36 = vmul.f32 %v6246_v18, %v1147_v8 }
 0x286   : > { %v4855_v27 = vpop.eup %4854  ;;  %v1282_v9 = vadd.f32 %v1218_v37, %v893_v47 }
 0x287   : > { %v1840_v44 = vpack.c.bf16 %v4853_v4, %v4855_v27 }
 0x288   : > { %v810_v60 = vpop.permute.xlu1 %809  ;;  %v1671_v0 = vadd.f32 %v1607_v59, %v1282_v9  ;;  %v1151_v4 = vpop.permute.xlu0 %1150 }
 0x289   : > { %4310 = vmatmul.mubr.bf16.gmra.mrb[52].mxu0 %v1840_v44  ;;  %v895_v35 = vmul.f32 %v6275_v24, %v810_v60 }
 0x28a   : > { %v4287_v5 = vpop.f32.mrb[28].mxu0  ;;  %v1742_v12 = vadd.f32 %v6296_v21, %v1671_v0 }
 0x28b   : > { %v2071_v51 = vadd.f32 %v4287_v5, %v6313_v25  ;;  %v2062_v19 = vpop.f32.mrb[29].mxu0 }
 0x28c   : > { %v2063_v42 = vadd.f32 %v6313_v25, %v2062_v19  ;;  %v4288_v10 = vpop.f32.mrb[30].mxu0  ;;  %v1532_v47 = vpop.permute.xlu0 %1531 }
 0x28d   : > { %4856 = vtanh.f32 %v2071_v51  ;;  %v2074_v30 = vadd.f32 %v4288_v10, %v6313_v25  ;;  %v2065_v32 = vpop.f32.mrb[31].mxu0  ;;  %v1139_v57 = vpop.permute.xlu1 %1138  ;;  %v896_v51 = vmul.f32 %v6275_v24, %v6280_v34  ;;  %v1610_v10 = vmul.f32 %v6255_v20, %v1532_v47 }
 0x28e   : > { %4858 = vtanh.f32 %v2063_v42  ;;  %v2066_v3 = vadd.f32 %v6313_v25, %v2065_v32  ;;  %v1220_v49 = vmul.f32 %v6246_v18, %v1139_v57 }
 0x28f   : > { %4860 = vtanh.f32 %v2074_v30 }
 0x290   : > { %4862 = vtanh.f32 %v2066_v3  ;;  %v1284_v45 = vadd.f32 %v1220_v49, %v895_v35  ;;  %v1544_v57 = vpop.permute.xlu0 %1543 }
 0x291   : > { %4864 = vtanh.f32 %v1742_v12 }
 0x292   : > { %v1516_v31 = vpop.permute.xlu1 %1515 }
 0x293   : > { %v1606_v23 = vmul.f32 %v6255_v20, %v1516_v31  ;;  %v1613_v31 = vmul.f32 %v6255_v20, %v1544_v57 }
 0x295   : > { %v1670_v22 = vadd.f32 %v1606_v23, %v1281_v11 }
 0x296   : > { %v1524_v16 = vpop.permute.xlu1 %1523 }
 0x297   : > { %v4857_v38 = vpop.eup %4856  ;;  %v1741_v40 = vadd.f32 %v6296_v21, %v1670_v22  ;;  %v1608_v61 = vmul.f32 %v6255_v20, %v1524_v16  ;;  %v1223_v16 = vmul.f32 %v6246_v18, %v1151_v4 }
 0x298   : > { %v4859_v39 = vpop.eup %4858 }
 0x299   : > { %v4861_v56 = vpop.eup %4860  ;;  %4866 = vtanh.f32 %v1741_v40  ;;  %v1672_v1 = vadd.f32 %v1608_v61, %v1283_v14 }
 0x29a   : > { %v4863_v63 = vpop.eup %4862  ;;  %v1528_v58 = vpop.permute.xlu1 %1527  ;;  %v2284_v17 = vpack.c.bf16 %v4861_v56, %v4857_v38 }
 0x29b   : > { %v1609_v55 = vmul.f32 %v6255_v20, %v1528_v58  ;;  %v2283_v48 = vpack.c.bf16 %v4863_v63, %v4859_v39  ;;  %v1743_v13 = vadd.f32 %v6296_v21, %v1672_v1  ;;  %v4865_v41 = vpop.eup %4864 }
 0x29d   : > { %v1673_v26 = vadd.f32 %v1609_v55, %v1284_v45  ;;  %4365 = vmatprep.mubr.bf16.mxu1 %v2283_v48  ;;  %4868 = vtanh.f32 %v1743_v13 }
 0x29e   : > { %4366 = vmatmul.mubr.bf16.gmra.mrb[28].mxu1 %v2284_v17 }
 0x29f   : > { %v1744_v62 = vadd.f32 %v6296_v21, %v1673_v26  ;;  %v820_v46 = vpop.permute.xlu1 %819 }
 0x2a0   : > { %v897_v50 = vmul.f32 %v6275_v24, %v820_v46 }
 0x2a1   : > { %4870 = vtanh.f32 %v1744_v62 }
 0x2a2   : > { %v1286_v11 = vadd.f32 %v1222_v36, %v897_v50 }
 0x2a3   : > { %v4867_v6 = vpop.eup %4866 }
 0x2a4   : > { %v1143_v52 = vpop.permute.xlu1 %1142  ;;  %v1841_v43 = vpack.c.bf16 %v4865_v41, %v4867_v6 }
 0x2a5   : > { %v1221_v60 = vmul.f32 %v6246_v18, %v1143_v52 }
 0x2a6   : > { %4313 = vmatprep.mubr.bf16.mxu0 %v1841_v43 }
 0x2a7   : > { %v4869_v44 = vpop.eup %4868  ;;  %v1285_v42 = vadd.f32 %v1221_v60, %v896_v51 }
 0x2a9   : > { %v825_v27 = vpop.permute.xlu1 %824  ;;  %v1674_v0 = vadd.f32 %v1610_v10, %v1285_v42 }
 0x2aa   : > { %v898_v23 = vmul.f32 %v6275_v24, %v825_v27 }
 0x2ab   : > { %v4871_v29 = vpop.eup %4870  ;;  %v1745_v12 = vadd.f32 %v6296_v21, %v1674_v0 }
 0x2ac   : > { %v1842_v37 = vpack.c.bf16 %v4871_v29, %v4869_v44  ;;  %v1287_v40 = vadd.f32 %v1223_v16, %v898_v23 }
 0x2ad   : > { %v830_v5 = vpop.permute.xlu1 %829 }
 0x2ae   : > { %4314 = vmatmul.mubr.bf16.gmra.mrb[56].mxu0 %v1842_v37  ;;  %v899_v53 = vmul.f32 %v6275_v24, %v830_v5 }
 0x2af   : > { %v4291_v19 = vpop.f32.mrb[32].mxu0 }
 0x2b0   : > { %v2087_v54 = vadd.f32 %v4291_v19, %v6313_v25  ;;  %v2078_v9 = vpop.f32.mrb[33].mxu0 }
 0x2b1   : > { %v2079_v30 = vadd.f32 %v6313_v25, %v2078_v9  ;;  %v4292_v32 = vpop.f32.mrb[34].mxu0 }
 0x2b2   : > { %4872 = vtanh.f32 %v2087_v54  ;;  %v2090_v28 = vadd.f32 %v4292_v32, %v6313_v25  ;;  %v2081_v59 = vpop.f32.mrb[35].mxu0  ;;  %v1155_v3 = vpop.permute.xlu1 %1154  ;;  %v6494_v32 = vld [vmem:[%s7046_s6] ss:$0 sm:$0xff] }
 0x2b3   : > { %4874 = vtanh.f32 %v2079_v30  ;;  %v2082_v34 = vadd.f32 %v6313_v25, %v2081_v59  ;;  %v1224_v15 = vmul.f32 %v6246_v18, %v1155_v3 }
 0x2b4   : > { %4876 = vtanh.f32 %v2090_v28 }
 0x2b5   : > { %4878 = vtanh.f32 %v2082_v34  ;;  %v1288_v33 = vadd.f32 %v1224_v15, %v899_v53 }
 0x2b6   : > { %4880 = vtanh.f32 %v1745_v12 }
 0x2b7   : > { %v1536_v2 = vpop.permute.xlu1 %1535  ;;  %v1677_v22 = vadd.f32 %v1613_v31, %v1288_v33 }
 0x2b8   : > { %v1611_v7 = vmul.f32 %v6255_v20, %v1536_v2 }
 0x2b9   : > { %v1748_v35 = vadd.f32 %v6296_v21, %v1677_v22 }
 0x2ba   : > { %v1675_v38 = vadd.f32 %v1611_v7, %v1286_v11 }
 0x2bb   : > { %v1540_v14 = vpop.permute.xlu1 %1539 }
 0x2bc   : > { %v4873_v49 = vpop.eup %4872  ;;  %v1746_v61 = vadd.f32 %v6296_v21, %v1675_v38  ;;  %v1612_v39 = vmul.f32 %v6255_v20, %v1540_v14 }
 0x2bd   : > { %v4875_v56 = vpop.eup %4874 }
 0x2be   : > { %v4877_v24 = vpop.eup %4876  ;;  %4882 = vtanh.f32 %v1746_v61  ;;  %v1676_v1 = vadd.f32 %v1612_v39, %v1287_v40 }
 0x2bf   : > { %v4879_v63 = vpop.eup %4878  ;;  %v2286_v58 = vpack.c.bf16 %v4877_v24, %v4873_v49  ;;  %4884 = vtanh.f32 %v1748_v35 }
 0x2c0   : > { %v1747_v17 = vadd.f32 %v6296_v21, %v1676_v1  ;;  %v2285_v18 = vpack.c.bf16 %v4879_v63, %v4875_v56  ;;  %v4881_v45 = vpop.eup %4880 }
 0x2c2   : > { %4886 = vtanh.f32 %v1747_v17  ;;  %4369 = vmatprep.mubr.bf16.mxu1 %v2285_v18  ;;  %v6509_v18 = vld [vmem:[%s7044_s4] ss:$0 sm:$0xff] }
 0x2c3   : > { %4370 = vmatmul.mubr.bf16.gmra.mrb[32].mxu1 %v2286_v58 }
 0x2c8   : > { %v4883_v55 = vpop.eup %4882 }
 0x2c9   : > { %v1843_v48 = vpack.c.bf16 %v4883_v55, %v4881_v45  ;;  %v4885_v20 = vpop.eup %4884 }
 0x2cb   : > { %4317 = vmatprep.mubr.bf16.mxu0 %v1843_v48 }
 0x2cc   : > { %v4887_v13 = vpop.eup %4886 }
 0x2cd   : > { %v1844_v26 = vpack.c.bf16 %v4885_v20, %v4887_v13 }
 0x2cf   : > { %4318 = vmatmul.mubr.bf16.gmra.mrb[60].mxu0 %v1844_v26 }
 0x2d0   : > { %v4295_v62 = vpop.f32.mrb[36].mxu0 }
 0x2d1   : > { %v2103_v46 = vadd.f32 %v4295_v62, %v6313_v25  ;;  %v2094_v41 = vpop.f32.mrb[37].mxu0 }
 0x2d2   : > { %v2095_v6 = vadd.f32 %v6313_v25, %v2094_v41  ;;  %v4296_v21 = vpop.f32.mrb[38].mxu0 }
 0x2d3   : > { %4888 = vtanh.f32 %v2103_v46  ;;  %v2106_v8 = vadd.f32 %v4296_v21, %v6313_v25  ;;  %v2097_v52 = vpop.f32.mrb[39].mxu0 }
 0x2d4   : > { %4890 = vtanh.f32 %v2095_v6  ;;  %v2098_v43 = vadd.f32 %v6313_v25, %v2097_v52 }
 0x2d5   : > { %4892 = vtanh.f32 %v2106_v8 }
 0x2d6   : > { %4894 = vtanh.f32 %v2098_v43 }
 0x2dd   : > { %v4889_v4 = vpop.eup %4888 }
 0x2de   : > { %v4891_v27 = vpop.eup %4890 }
 0x2df   : > { %v4893_v44 = vpop.eup %4892 }
 0x2e0   : > { %v4895_v29 = vpop.eup %4894  ;;  %v2288_v37 = vpack.c.bf16 %v4893_v44, %v4889_v4 }
 0x2e1   : > { %v2287_v60 = vpack.c.bf16 %v4895_v29, %v4891_v27 }
 0x2e3   : > { %4373 = vmatprep.mubr.bf16.mxu1 %v2287_v60 }
 0x2e4   : > { %4374 = vmatmul.mubr.bf16.gmra.mrb[36].mxu1 %v2288_v37 }
 0x2f5   : > { %v4299_v47 = vpop.f32.mrb[40].mxu0 }
 0x2f6   : > { %v2119_v5 = vadd.f32 %v4299_v47, %v6313_v25  ;;  %v2110_v51 = vpop.f32.mrb[41].mxu0 }
 0x2f7   : > { %v2111_v19 = vadd.f32 %v6313_v25, %v2110_v51  ;;  %v4300_v54 = vpop.f32.mrb[42].mxu0 }
 0x2f8   : > { %4896 = vtanh.f32 %v2119_v5  ;;  %v2122_v9 = vadd.f32 %v4300_v54, %v6313_v25  ;;  %v2113_v42 = vpop.f32.mrb[43].mxu0 }
 0x2f9   : > { %4898 = vtanh.f32 %v2111_v19  ;;  %v2114_v10 = vadd.f32 %v6313_v25, %v2113_v42 }
 0x2fa   : > { %4900 = vtanh.f32 %v2122_v9 }
 0x2fb   : > { %4902 = vtanh.f32 %v2114_v10 }
 0x302   : > { %v4897_v30 = vpop.eup %4896 }
 0x303   : > { %v4899_v57 = vpop.eup %4898  ;;  %v4339_v59 = vpop.f32.mrb[0].mxu1 }
 0x304   : > { %v4901_v28 = vpop.eup %4900  ;;  %v2415_v53 = vadd.f32 %v4339_v59, %v6494_v32  ;;  %v2406_v34 = vpop.f32.mrb[1].mxu1 }
 0x305   : > { %v4903_v3 = vpop.eup %4902  ;;  %v2290_v15 = vpack.c.bf16 %v4901_v28, %v4897_v30  ;;  %v2407_v50 = vadd.f32 %v6494_v32, %v2406_v34  ;;  %v4340_v0 = vpop.f32.mrb[2].mxu1 }
 0x306   : > { %v2289_v25 = vpack.c.bf16 %v4903_v3, %v4899_v57  ;;  %4904 = vtanh.f32 %v2415_v53  ;;  %v2418_v33 = vadd.f32 %v4340_v0, %v6494_v32  ;;  %v2409_v31 = vpop.f32.mrb[3].mxu1 }
 0x307   : > { %4906 = vtanh.f32 %v2407_v50  ;;  %v2410_v36 = vadd.f32 %v6494_v32, %v2409_v31 }
 0x308   : > { %4377 = vmatprep.mubr.bf16.mxu1 %v2289_v25  ;;  %4908 = vtanh.f32 %v2418_v33 }
 0x309   : > { %4378 = vmatmul.mubr.bf16.gmra.mrb[40].mxu1 %v2290_v15  ;;  %4910 = vtanh.f32 %v2410_v36 }
 0x30b   : > { %v4343_v2 = vpop.f32.mrb[4].mxu1 }
 0x30c   : > { %v2431_v11 = vadd.f32 %v4343_v2, %v6494_v32  ;;  %v2422_v23 = vpop.f32.mrb[5].mxu1 }
 0x30d   : > { %v2423_v7 = vadd.f32 %v6494_v32, %v2422_v23  ;;  %v4344_v12 = vpop.f32.mrb[6].mxu1 }
 0x30e   : > { %4912 = vtanh.f32 %v2431_v11  ;;  %v2434_v22 = vadd.f32 %v4344_v12, %v6494_v32  ;;  %v2425_v16 = vpop.f32.mrb[7].mxu1 }
 0x30f   : > { %4914 = vtanh.f32 %v2423_v7  ;;  %v2426_v38 = vadd.f32 %v6494_v32, %v2425_v16 }
 0x310   : > { %v4905_v14 = vpop.eup %4904  ;;  %4916 = vtanh.f32 %v2434_v22 }
 0x311   : > { %v4907_v49 = vpop.eup %4906  ;;  %4918 = vtanh.f32 %v2426_v38 }
 0x312   : > { %v4909_v40 = vpop.eup %4908 }
 0x313   : > { %v4911_v61 = vpop.eup %4910  ;;  %v2726_v39 = vpack.c.bf16 %v4909_v40, %v4905_v14 }
 0x314   : > { %v2725_v35 = vpack.c.bf16 %v4911_v61, %v4907_v49 }
 0x315   : > { %v4347_v56 = vpop.f32.mrb[8].mxu1 }
 0x316   : > { %v2447_v24 = vadd.f32 %v4347_v56, %v6494_v32  ;;  %v2438_v1 = vpop.f32.mrb[9].mxu1  ;;  %v4303_v63 = vpop.f32.mrb[44].mxu0  ;;  %4417 = vmatprep.mubr.bf16.mxu0 %v2725_v35 }
 0x317   : > { %v2439_v58 = vadd.f32 %v6494_v32, %v2438_v1  ;;  %v4348_v17 = vpop.f32.mrb[10].mxu1  ;;  %v2135_v45 = vadd.f32 %v6509_v18, %v4303_v63  ;;  %v2126_v55 = vpop.f32.mrb[45].mxu0  ;;  %4418 = vmatmul.mubr.bf16.vlgmr.msra.gmra.mrb[64].mxu0 %v2726_v39 }
 0x318   : > { %4920 = vtanh.f32 %v2447_v24  ;;  %v2450_v48 = vadd.f32 %v4348_v17, %v6494_v32  ;;  %v2441_v20 = vpop.f32.mrb[11].mxu1  ;;  %v4304_v13 = vpop.f32.mrb[46].mxu0  ;;  %v2127_v46 = vadd.f32 %v6509_v18, %v2126_v55 }
 0x319   : > { %v4913_v26 = vpop.eup %4912  ;;  %4922 = vtanh.f32 %v2439_v58  ;;  %v2442_v62 = vadd.f32 %v6494_v32, %v2441_v20  ;;  %v2129_v41 = vpop.f32.mrb[47].mxu0  ;;  %v2138_v21 = vadd.f32 %v6509_v18, %v4304_v13 }
 0x31a   : > { %v4915_v6 = vpop.eup %4914  ;;  %4924 = vtanh.f32 %v2450_v48  ;;  %v2130_v52 = vadd.f32 %v6509_v18, %v2129_v41 }
 0x31b   : > { %v4917_v8 = vpop.eup %4916  ;;  %4926 = vtanh.f32 %v2135_v45 }
 0x31c   : > { %v4919_v43 = vpop.eup %4918  ;;  %4928 = vtanh.f32 %v2442_v62  ;;  %v2728_v4 = vpack.c.bf16 %v4917_v8, %v4913_v26 }
 0x31d   : > { %4930 = vtanh.f32 %v2127_v46  ;;  %v4351_v27 = vpop.f32.mrb[12].mxu1  ;;  %v2727_v44 = vpack.c.bf16 %v4919_v43, %v4915_v6 }
 0x31e   : > { %4932 = vtanh.f32 %v2138_v21  ;;  %v2463_v29 = vadd.f32 %v4351_v27, %v6494_v32  ;;  %v2454_v37 = vpop.f32.mrb[13].mxu1 }
 0x31f   : > { %4934 = vtanh.f32 %v2130_v52  ;;  %v2455_v60 = vadd.f32 %v6494_v32, %v2454_v37  ;;  %v4352_v47 = vpop.f32.mrb[14].mxu1  ;;  %4421 = vmatprep.mubr.bf16.mxu0 %v2727_v44 }
 0x320   : > { %4936 = vtanh.f32 %v2463_v29  ;;  %v2466_v5 = vadd.f32 %v4352_v47, %v6494_v32  ;;  %v2457_v51 = vpop.f32.mrb[15].mxu1  ;;  %4422 = vmatmul.mubr.bf16.gmra.mrb[68].mxu0 %v2728_v4 }
 0x321   : > { %4938 = vtanh.f32 %v2455_v60  ;;  %v2458_v19 = vadd.f32 %v6494_v32, %v2457_v51 }
 0x322   : > { %v4921_v54 = vpop.eup %4920  ;;  %4940 = vtanh.f32 %v2466_v5 }
 0x323   : > { %v4923_v9 = vpop.eup %4922  ;;  %4942 = vtanh.f32 %v2458_v19 }
 0x324   : > { %v4925_v42 = vpop.eup %4924 }
 0x325   : > { %v4927_v10 = vpop.eup %4926  ;;  %v4355_v30 = vpop.f32.mrb[16].mxu1  ;;  %v2730_v57 = vpack.c.bf16 %v4925_v42, %v4921_v54 }
 0x326   : > { %v4929_v28 = vpop.eup %4928  ;;  %v2479_v59 = vadd.f32 %v4355_v30, %v6494_v32  ;;  %v2470_v3 = vpop.f32.mrb[17].mxu1 }
 0x327   : > { %v4931_v53 = vpop.eup %4930  ;;  %v2471_v34 = vadd.f32 %v6494_v32, %v2470_v3  ;;  %v4356_v15 = vpop.f32.mrb[18].mxu1  ;;  %v2729_v50 = vpack.c.bf16 %v4929_v28, %v4923_v9 }
 0x328   : > { %v4933_v0 = vpop.eup %4932  ;;  %4944 = vtanh.f32 %v2479_v59  ;;  %v2482_v25 = vadd.f32 %v4356_v15, %v6494_v32  ;;  %v2473_v33 = vpop.f32.mrb[19].mxu1 }
 0x329   : > { %v4935_v31 = vpop.eup %4934  ;;  %4946 = vtanh.f32 %v2471_v34  ;;  %v2474_v36 = vadd.f32 %v6494_v32, %v2473_v33  ;;  %4425 = vmatprep.mubr.bf16.mxu0 %v2729_v50  ;;  %v2292_v2 = vpack.c.bf16 %v4933_v0, %v4927_v10 }
 0x32a   : > { %v4937_v11 = vpop.eup %4936  ;;  %4948 = vtanh.f32 %v2482_v25  ;;  %4426 = vmatmul.mubr.bf16.gmra.mrb[72].mxu0 %v2730_v57  ;;  %v2291_v23 = vpack.c.bf16 %v4935_v31, %v4931_v53  ;;  %v4680_v31 = vld [vmem:[%s7049_s9] sm:$0xff]  }
 0x32b   : > { %v4939_v7 = vpop.eup %4938  ;;  %4950 = vtanh.f32 %v2474_v36  ;;  %4481 = vmatprep.subr.bf16.mxu1 %v4680_v31 }
 0x32c   : > { %v4941_v12 = vpop.eup %4940  ;;  %4381 = vmatprep.mubr.bf16.mxu1 %v2291_v23  ;;  %4482 = vmatpush3.bf16.msra.mxu1 %v4680_v31 }
 0x32d   : > { %v4943_v22 = vpop.eup %4942  ;;  %4382 = vmatmul.mubr.bf16.gmra.mrb[44].mxu1 %v2292_v2  ;;  %v4359_v16 = vpop.f32.mrb[20].mxu1  ;;  %v2732_v38 = vpack.c.bf16 %v4941_v12, %v4937_v11  ;;  %v4682_v12 = vld [vmem:[%s7049_s9 + $0x10] sm:$0xff]  }
 0x32e   : > { %v2495_v14 = vadd.f32 %v4359_v16, %v6494_v32  ;;  %v2486_v49 = vpop.f32.mrb[21].mxu1  ;;  %v2731_v40 = vpack.c.bf16 %v4943_v22, %v4939_v7  ;;  %v4681_v7 = vld [vmem:[%s7049_s9 + $0x8] sm:$0xff]  }
 0x32f   : > { %v2487_v61 = vadd.f32 %v6494_v32, %v2486_v49  ;;  %v4360_v39 = vpop.f32.mrb[22].mxu1  ;;  %4483 = vmatprep.subr.bf16.mxu1 %v4681_v7 }
 0x330   : > { %4952 = vtanh.f32 %v2495_v14  ;;  %v2498_v56 = vadd.f32 %v4360_v39, %v6494_v32  ;;  %v2489_v35 = vpop.f32.mrb[23].mxu1  ;;  %4429 = vmatprep.mubr.bf16.mxu0 %v2731_v40  ;;  %4484 = vmatpush3.bf16.msra.mxu1 %v4681_v7  ;;  %v4683_v14 = vld [vmem:[%s7049_s9 + $0x18] sm:$0xff]   ;;  %v4684_v39 = vld [vmem:[%s7049_s9 + $0x20] sm:$0xff]  }
 0x331   : > { %4954 = vtanh.f32 %v2487_v61  ;;  %v2490_v24 = vadd.f32 %v6494_v32, %v2489_v35  ;;  %4485 = vmatprep.subr.bf16.mxu1 %v4682_v12 }
 0x332   : > { %v4945_v1 = vpop.eup %4944  ;;  %4956 = vtanh.f32 %v2498_v56  ;;  %4430 = vmatmul.mubr.bf16.gmra.mrb[76].mxu0 %v2732_v38 }
 0x333   : > { %v4947_v63 = vpop.eup %4946  ;;  %4958 = vtanh.f32 %v2490_v24 }
 0x334   : > { %v4949_v58 = vpop.eup %4948  ;;  %4486 = vmatpush3.bf16.msra.mxu1 %v4682_v12 }
 0x335   : > { %v4951_v17 = vpop.eup %4950  ;;  %v2734_v45 = vpack.c.bf16 %v4949_v58, %v4945_v1  ;;  %4487 = vmatprep.subr.bf16.mxu1 %v4683_v14  ;;  %v4685_v58 = vld [vmem:[%s7049_s9 + $0x28] sm:$0xff]  }
 0x336   : > { %v2733_v55 = vpack.c.bf16 %v4951_v17, %v4947_v63 }
 0x338   : > { %4433 = vmatprep.mubr.bf16.mxu0 %v2733_v55  ;;  %4488 = vmatpush3.bf16.msra.mxu1 %v4683_v14 }
 0x339   : > { %4489 = vmatprep.subr.bf16.mxu1 %v4684_v39 }
 0x33a   : > { %v4953_v48 = vpop.eup %4952  ;;  %4434 = vmatmul.mubr.bf16.gmra.mrb[80].mxu0 %v2734_v45 }
 0x33b   : > { %v4955_v20 = vpop.eup %4954  ;;  %v4307_v13 = vpop.f32.mrb[48].mxu0 }
 0x33c   : > { %v4957_v26 = vpop.eup %4956  ;;  %v2151_v62 = vadd.f32 %v6509_v18, %v4307_v13  ;;  %v2142_v46 = vpop.f32.mrb[49].mxu0  ;;  %4490 = vmatpush3.bf16.msra.mxu1 %v4684_v39 }
 0x33d   : > { %v4959_v41 = vpop.eup %4958  ;;  %v2143_v6 = vadd.f32 %v6509_v18, %v2142_v46  ;;  %v4308_v21 = vpop.f32.mrb[50].mxu0  ;;  %v2736_v8 = vpack.c.bf16 %v4957_v26, %v4953_v48  ;;  %4491 = vmatprep.subr.bf16.mxu1 %v4685_v58  ;;  %v4686_v48 = vld [vmem:[%s7049_s9 + $0x30] sm:$0xff]  }
 0x33e   : > { %4960 = vtanh.f32 %v2151_v62  ;;  %v2154_v52 = vadd.f32 %v6509_v18, %v4308_v21  ;;  %v2145_v43 = vpop.f32.mrb[51].mxu0  ;;  %v2735_v4 = vpack.c.bf16 %v4959_v41, %v4955_v20  ;;  %v4687_v20 = vld [vmem:[%s7049_s9 + $0x38] sm:$0xff]  }
 0x33f   : > { %4962 = vtanh.f32 %v2143_v6  ;;  %v2146_v27 = vadd.f32 %v6509_v18, %v2145_v43 }
 0x340   : > { %4964 = vtanh.f32 %v2154_v52  ;;  %4437 = vmatprep.mubr.bf16.mxu0 %v2735_v4  ;;  %4492 = vmatpush3.bf16.msra.mxu1 %v4685_v58 }
 0x341   : > { %4966 = vtanh.f32 %v2146_v27  ;;  %4493 = vmatprep.subr.bf16.mxu1 %v4686_v48 }
 0x342   : > { %4438 = vmatmul.mubr.bf16.gmra.mrb[84].mxu0 %v2736_v8 }
 0x344   : > { %4494 = vmatpush3.bf16.msra.mxu1 %v4686_v48 }
 0x345   : > { %4495 = vmatprep.subr.bf16.mxu1 %v4687_v20 }
 0x348   : > { %v4961_v44 = vpop.eup %4960  ;;  %4496 = vmatpush3.bf16.msra.mxu1 %v4687_v20 }
 0x349   : > { %v4963_v29 = vpop.eup %4962 }
 0x34a   : > { %v4965_v37 = vpop.eup %4964 }
 0x34b   : > { %v4967_v60 = vpop.eup %4966  ;;  %v2294_v47 = vpack.c.bf16 %v4965_v37, %v4961_v44 }
 0x34c   : > { %v2293_v5 = vpack.c.bf16 %v4967_v60, %v4963_v29 }
 0x34e   : > { %4385 = vmatprep.mubr.bf16.mxu1 %v2293_v5 }
 0x34f   : > { %4386 = vmatmul.mubr.bf16.gmra.mrb[48].mxu1 %v2294_v47 }
 0x350   : > { %v4363_v51 = vpop.f32.mrb[24].mxu1 }
 0x351   : > { %v2511_v19 = vadd.f32 %v4363_v51, %v6494_v32  ;;  %v2502_v54 = vpop.f32.mrb[25].mxu1 }
 0x352   : > { %v2503_v9 = vadd.f32 %v6494_v32, %v2502_v54  ;;  %v4364_v42 = vpop.f32.mrb[26].mxu1 }
 0x353   : > { %4968 = vtanh.f32 %v2511_v19  ;;  %v2514_v10 = vadd.f32 %v4364_v42, %v6494_v32  ;;  %v2505_v30 = vpop.f32.mrb[27].mxu1 }
 0x354   : > { %4970 = vtanh.f32 %v2503_v9  ;;  %v2506_v57 = vadd.f32 %v6494_v32, %v2505_v30 }
 0x355   : > { %4972 = vtanh.f32 %v2514_v10 }
 0x356   : > { %4974 = vtanh.f32 %v2506_v57 }
 0x35c   : > { %v4311_v28 = vpop.f32.mrb[52].mxu0 }
 0x35d   : > { %v4969_v59 = vpop.eup %4968  ;;  %v2167_v3 = vadd.f32 %v6509_v18, %v4311_v28  ;;  %v2158_v53 = vpop.f32.mrb[53].mxu0 }
 0x35e   : > { %v4971_v34 = vpop.eup %4970  ;;  %v2159_v15 = vadd.f32 %v6509_v18, %v2158_v53  ;;  %v4312_v50 = vpop.f32.mrb[54].mxu0 }
 0x35f   : > { %v4973_v0 = vpop.eup %4972  ;;  %4976 = vtanh.f32 %v2167_v3  ;;  %v2170_v25 = vadd.f32 %v6509_v18, %v4312_v50  ;;  %v2161_v33 = vpop.f32.mrb[55].mxu0 }
 0x360   : > { %v4975_v36 = vpop.eup %4974  ;;  %4978 = vtanh.f32 %v2159_v15  ;;  %v2162_v2 = vadd.f32 %v6509_v18, %v2161_v33  ;;  %v2738_v11 = vpack.c.bf16 %v4973_v0, %v4969_v59 }
 0x361   : > { %4980 = vtanh.f32 %v2170_v25  ;;  %v2737_v23 = vpack.c.bf16 %v4975_v36, %v4971_v34 }
 0x362   : > { %4982 = vtanh.f32 %v2162_v2 }
 0x363   : > { %4441 = vmatprep.mubr.bf16.mxu0 %v2737_v23 }
 0x364   : > { %4442 = vmatmul.mubr.bf16.gmra.mrb[88].mxu0 %v2738_v11 }
 0x369   : > { %v4977_v22 = vpop.eup %4976 }
 0x36a   : > { %v4979_v16 = vpop.eup %4978 }
 0x36b   : > { %v4981_v38 = vpop.eup %4980 }
 0x36c   : > { %v4983_v49 = vpop.eup %4982  ;;  %v2296_v40 = vpack.c.bf16 %v4981_v38, %v4977_v22 }
 0x36d   : > { %v2295_v61 = vpack.c.bf16 %v4983_v49, %v4979_v16 }
 0x36f   : > { %4389 = vmatprep.mubr.bf16.mxu1 %v2295_v61 }
 0x370   : > { %4390 = vmatmul.mubr.bf16.gmra.mrb[52].mxu1 %v2296_v40 }
 0x371   : > { %v4367_v56 = vpop.f32.mrb[28].mxu1 }
 0x372   : > { %v2527_v35 = vadd.f32 %v4367_v56, %v6494_v32  ;;  %v2518_v24 = vpop.f32.mrb[29].mxu1 }
 0x373   : > { %v2519_v1 = vadd.f32 %v6494_v32, %v2518_v24  ;;  %v4368_v63 = vpop.f32.mrb[30].mxu1 }
 0x374   : > { %4984 = vtanh.f32 %v2527_v35  ;;  %v2530_v17 = vadd.f32 %v4368_v63, %v6494_v32  ;;  %v2521_v45 = vpop.f32.mrb[31].mxu1 }
 0x375   : > { %4986 = vtanh.f32 %v2519_v1  ;;  %v2522_v55 = vadd.f32 %v6494_v32, %v2521_v45 }
 0x376   : > { %4988 = vtanh.f32 %v2530_v17 }
 0x377   : > { %4990 = vtanh.f32 %v2522_v55 }
 0x37e   : > { %v4985_v13 = vpop.eup %4984 }
 0x37f   : > { %v4987_v26 = vpop.eup %4986 }
 0x380   : > { %v4989_v62 = vpop.eup %4988 }
 0x381   : > { %v4991_v46 = vpop.eup %4990  ;;  %v4315_v41 = vpop.f32.mrb[56].mxu0  ;;  %v2740_v6 = vpack.c.bf16 %v4989_v62, %v4985_v13 }
 0x382   : > { %v2183_v21 = vadd.f32 %v6509_v18, %v4315_v41  ;;  %v2174_v8 = vpop.f32.mrb[57].mxu0  ;;  %v2739_v52 = vpack.c.bf16 %v4991_v46, %v4987_v26 }
 0x383   : > { %v2175_v43 = vadd.f32 %v6509_v18, %v2174_v8  ;;  %v4316_v4 = vpop.f32.mrb[58].mxu0 }
 0x384   : > { %4992 = vtanh.f32 %v2183_v21  ;;  %v2186_v27 = vadd.f32 %v6509_v18, %v4316_v4  ;;  %v2177_v44 = vpop.f32.mrb[59].mxu0  ;;  %4445 = vmatprep.mubr.bf16.mxu0 %v2739_v52  ;;  %v6592_v52 = vld [vmem:[%s7048_s8] ss:$0 sm:$0xff] }
 0x385   : > { %4994 = vtanh.f32 %v2175_v43  ;;  %v2178_v29 = vadd.f32 %v6509_v18, %v2177_v44  ;;  %4446 = vmatmul.mubr.bf16.gmra.mrb[92].mxu0 %v2740_v6 }
 0x386   : > { %4996 = vtanh.f32 %v2186_v27 }
 0x387   : > { %4998 = vtanh.f32 %v2178_v29 }
 0x38e   : > { %v4993_v37 = vpop.eup %4992 }
 0x38f   : > { %v4995_v60 = vpop.eup %4994 }
 0x390   : > { %v4997_v47 = vpop.eup %4996 }
 0x391   : > { %v4999_v5 = vpop.eup %4998  ;;  %v2298_v51 = vpack.c.bf16 %v4997_v47, %v4993_v37 }
 0x392   : > { %v2297_v19 = vpack.c.bf16 %v4999_v5, %v4995_v60 }
 0x394   : > { %4393 = vmatprep.mubr.bf16.mxu1 %v2297_v19 }
 0x395   : > { %4394 = vmatmul.mubr.bf16.gmra.mrb[56].mxu1 %v2298_v51 }
 0x396   : > { %v4371_v54 = vpop.f32.mrb[32].mxu1 }
 0x397   : > { %v2543_v9 = vadd.f32 %v4371_v54, %v6494_v32  ;;  %v2534_v42 = vpop.f32.mrb[33].mxu1 }
 0x398   : > { %v2535_v10 = vadd.f32 %v6494_v32, %v2534_v42  ;;  %v4372_v30 = vpop.f32.mrb[34].mxu1 }
 0x399   : > { %5000 = vtanh.f32 %v2543_v9  ;;  %v2546_v57 = vadd.f32 %v4372_v30, %v6494_v32  ;;  %v2537_v28 = vpop.f32.mrb[35].mxu1 }
 0x39a   : > { %5002 = vtanh.f32 %v2535_v10  ;;  %v2538_v59 = vadd.f32 %v6494_v32, %v2537_v28 }
 0x39b   : > { %5004 = vtanh.f32 %v2546_v57 }
 0x39c   : > { %5006 = vtanh.f32 %v2538_v59 }
 0x3a2   : > { %v4319_v3 = vpop.f32.mrb[60].mxu0 }
 0x3a3   : > { %v5001_v53 = vpop.eup %5000  ;;  %v2199_v34 = vadd.f32 %v6509_v18, %v4319_v3  ;;  %v2190_v15 = vpop.f32.mrb[61].mxu0 }
 0x3a4   : > { %v5003_v50 = vpop.eup %5002  ;;  %v2191_v0 = vadd.f32 %v6509_v18, %v2190_v15  ;;  %v4320_v25 = vpop.f32.mrb[62].mxu0 }
 0x3a5   : > { %v5005_v33 = vpop.eup %5004  ;;  %5008 = vtanh.f32 %v2199_v34  ;;  %v2202_v31 = vadd.f32 %v6509_v18, %v4320_v25  ;;  %v2193_v36 = vpop.f32.mrb[63].mxu0 }
 0x3a6   : > { %v5007_v2 = vpop.eup %5006  ;;  %5010 = vtanh.f32 %v2191_v0  ;;  %v2194_v11 = vadd.f32 %v6509_v18, %v2193_v36  ;;  %v2742_v23 = vpack.c.bf16 %v5005_v33, %v5001_v53 }
 0x3a7   : > { %5012 = vtanh.f32 %v2202_v31  ;;  %v2741_v7 = vpack.c.bf16 %v5007_v2, %v5003_v50 }
 0x3a8   : > { %5014 = vtanh.f32 %v2194_v11 }
 0x3a9   : > { %4449 = vmatprep.mubr.bf16.mxu0 %v2741_v7 }
 0x3aa   : > { %4450 = vmatmul.mubr.bf16.gmra.mrb[96].mxu0 %v2742_v23 }
 0x3af   : > { %v5009_v12 = vpop.eup %5008 }
 0x3b0   : > { %v5011_v22 = vpop.eup %5010 }
 0x3b1   : > { %v5013_v16 = vpop.eup %5012 }
 0x3b2   : > { %v5015_v38 = vpop.eup %5014  ;;  %v2300_v14 = vpack.c.bf16 %v5013_v16, %v5009_v12 }
 0x3b3   : > { %v2299_v49 = vpack.c.bf16 %v5015_v38, %v5011_v22 }
 0x3b5   : > { %4397 = vmatprep.mubr.bf16.mxu1 %v2299_v49 }
 0x3b6   : > { %4398 = vmatmul.mubr.bf16.gmra.mrb[60].mxu1 %v2300_v14 }
 0x3b7   : > { %v4375_v40 = vpop.f32.mrb[36].mxu1 }
 0x3b8   : > { %v2559_v61 = vadd.f32 %v4375_v40, %v6494_v32  ;;  %v2550_v39 = vpop.f32.mrb[37].mxu1 }
 0x3b9   : > { %v2551_v18 = vadd.f32 %v6494_v32, %v2550_v39  ;;  %v4376_v56 = vpop.f32.mrb[38].mxu1 }
 0x3ba   : > { %5016 = vtanh.f32 %v2559_v61  ;;  %v2562_v35 = vadd.f32 %v4376_v56, %v6494_v32  ;;  %v2553_v24 = vpop.f32.mrb[39].mxu1 }
 0x3bb   : > { %5018 = vtanh.f32 %v2551_v18  ;;  %v2554_v1 = vadd.f32 %v6494_v32, %v2553_v24 }
 0x3bc   : > { %5020 = vtanh.f32 %v2562_v35 }
 0x3bd   : > { %5022 = vtanh.f32 %v2554_v1 }
 0x3c4   : > { %v5017_v63 = vpop.eup %5016 }
 0x3c5   : > { %v5019_v58 = vpop.eup %5018 }
 0x3c6   : > { %v5021_v17 = vpop.eup %5020 }
 0x3c7   : > { %v5023_v45 = vpop.eup %5022  ;;  %v2744_v55 = vpack.c.bf16 %v5021_v17, %v5017_v63 }
 0x3c8   : > { %v2743_v48 = vpack.c.bf16 %v5023_v45, %v5019_v58 }
 0x3ca   : > { %4453 = vmatprep.mubr.bf16.mxu0 %v2743_v48 }
 0x3cb   : > { %4454 = vmatmul.mubr.bf16.gmra.mrb[100].mxu0 %v2744_v55 }
 0x3dc   : > { %v4379_v20 = vpop.f32.mrb[40].mxu1 }
 0x3dd   : > { %v2575_v13 = vadd.f32 %v4379_v20, %v6494_v32  ;;  %v2566_v26 = vpop.f32.mrb[41].mxu1 }
 0x3de   : > { %v2567_v62 = vadd.f32 %v6494_v32, %v2566_v26  ;;  %v4380_v46 = vpop.f32.mrb[42].mxu1 }
 0x3df   : > { %5024 = vtanh.f32 %v2575_v13  ;;  %v2578_v41 = vadd.f32 %v4380_v46, %v6494_v32  ;;  %v2569_v6 = vpop.f32.mrb[43].mxu1 }
 0x3e0   : > { %5026 = vtanh.f32 %v2567_v62  ;;  %v2570_v21 = vadd.f32 %v6494_v32, %v2569_v6 }
 0x3e1   : > { %5028 = vtanh.f32 %v2578_v41 }
 0x3e2   : > { %5030 = vtanh.f32 %v2570_v21 }
 0x3e9   : > { %v5025_v8 = vpop.eup %5024 }
 0x3ea   : > { %v5027_v43 = vpop.eup %5026  ;;  %v4419_v27 = vpop.f32.mrb[64].mxu0 }
 0x3eb   : > { %v5029_v4 = vpop.eup %5028  ;;  %v2871_v29 = vadd.f32 %v4419_v27, %v6592_v52  ;;  %v2862_v37 = vpop.f32.mrb[65].mxu0 }
 0x3ec   : > { %v5031_v44 = vpop.eup %5030  ;;  %v2746_v60 = vpack.c.bf16 %v5029_v4, %v5025_v8  ;;  %v2863_v47 = vadd.f32 %v6592_v52, %v2862_v37  ;;  %v4420_v5 = vpop.f32.mrb[66].mxu0 }
 0x3ed   : > { %v2745_v51 = vpack.c.bf16 %v5031_v44, %v5027_v43  ;;  %5032 = vtanh.f32 %v2871_v29  ;;  %v2874_v19 = vadd.f32 %v4420_v5, %v6592_v52  ;;  %v2865_v54 = vpop.f32.mrb[67].mxu0 }
 0x3ee   : > { %5034 = vtanh.f32 %v2863_v47  ;;  %v2866_v9 = vadd.f32 %v6592_v52, %v2865_v54 }
 0x3ef   : > { %4457 = vmatprep.mubr.bf16.mxu0 %v2745_v51  ;;  %5036 = vtanh.f32 %v2874_v19 }
 0x3f0   : > { %4458 = vmatmul.mubr.bf16.gmra.mrb[104].mxu0 %v2746_v60  ;;  %5038 = vtanh.f32 %v2866_v9 }
 0x3f3   : > { %v4423_v42 = vpop.f32.mrb[68].mxu0 }
 0x3f4   : > { %v2887_v10 = vadd.f32 %v4423_v42, %v6592_v52  ;;  %v2878_v30 = vpop.f32.mrb[69].mxu0 }
 0x3f5   : > { %v2879_v57 = vadd.f32 %v6592_v52, %v2878_v30  ;;  %v4424_v28 = vpop.f32.mrb[70].mxu0 }
 0x3f6   : > { %5040 = vtanh.f32 %v2887_v10  ;;  %v2890_v59 = vadd.f32 %v4424_v28, %v6592_v52  ;;  %v2881_v3 = vpop.f32.mrb[71].mxu0 }
 0x3f7   : > { %5042 = vtanh.f32 %v2879_v57  ;;  %v2882_v53 = vadd.f32 %v6592_v52, %v2881_v3  ;;  %v5033_v34 = vpop.eup %5032 }
 0x3f8   : > { %5044 = vtanh.f32 %v2890_v59  ;;  %v5035_v15 = vpop.eup %5034 }
 0x3f9   : > { %5046 = vtanh.f32 %v2882_v53  ;;  %v5037_v50 = vpop.eup %5036 }
 0x3fa   : > { %v5039_v0 = vpop.eup %5038  ;;  %v3182_v25 = vpack.c.bf16 %v5037_v50, %v5033_v34 }
 0x3fb   : > { %v3181_v33 = vpack.c.bf16 %v5039_v0, %v5035_v15 }
 0x3fd   : > { %v4427_v31 = vpop.f32.mrb[72].mxu0  ;;  %4497 = vmatprep.mubr.bf16.mxu1 %v3181_v33 }
 0x3fe   : > { %v2903_v36 = vadd.f32 %v4427_v31, %v6592_v52  ;;  %v2894_v2 = vpop.f32.mrb[73].mxu0  ;;  %4498 = vmatmul.mubr.bf16.vlgmr.msra.gmra.mrb[64].mxu1 %v3182_v25 }
 0x3ff   : > { %v2895_v11 = vadd.f32 %v6592_v52, %v2894_v2  ;;  %v4428_v23 = vpop.f32.mrb[74].mxu0 }
 0x400   : > { %v5041_v7 = vpop.eup %5040  ;;  %5048 = vtanh.f32 %v2903_v36  ;;  %v2906_v12 = vadd.f32 %v4428_v23, %v6592_v52  ;;  %v4383_v22 = vpop.f32.mrb[44].mxu1 }
 0x401   : > { %v2897_v16 = vpop.f32.mrb[75].mxu0  ;;  %v5043_v38 = vpop.eup %5042  ;;  %5050 = vtanh.f32 %v2895_v11  ;;  %v2591_v14 = vadd.f32 %v4383_v22, %v6494_v32 }
 0x402   : > { %v2898_v49 = vadd.f32 %v6592_v52, %v2897_v16  ;;  %v2582_v40 = vpop.f32.mrb[45].mxu1  ;;  %v5045_v61 = vpop.eup %5044  ;;  %5052 = vtanh.f32 %v2906_v12 }
 0x403   : > { %v2583_v39 = vadd.f32 %v6494_v32, %v2582_v40  ;;  %v4384_v18 = vpop.f32.mrb[46].mxu1  ;;  %v5047_v56 = vpop.eup %5046  ;;  %5054 = vtanh.f32 %v2591_v14  ;;  %v3184_v1 = vpack.c.bf16 %v5045_v61, %v5041_v7 }
 0x404   : > { %v2594_v35 = vadd.f32 %v4384_v18, %v6494_v32  ;;  %v2585_v24 = vpop.f32.mrb[47].mxu1  ;;  %5056 = vtanh.f32 %v2898_v49  ;;  %v3183_v58 = vpack.c.bf16 %v5047_v56, %v5043_v38 }
 0x405   : > { %v2586_v63 = vadd.f32 %v6494_v32, %v2585_v24  ;;  %5058 = vtanh.f32 %v2583_v39  ;;  %v4431_v17 = vpop.f32.mrb[76].mxu0 }
 0x406   : > { %5060 = vtanh.f32 %v2594_v35  ;;  %v2919_v45 = vadd.f32 %v4431_v17, %v6592_v52  ;;  %v2910_v55 = vpop.f32.mrb[77].mxu0  ;;  %4501 = vmatprep.mubr.bf16.mxu1 %v3183_v58 }
 0x407   : > { %5062 = vtanh.f32 %v2586_v63  ;;  %v2911_v48 = vadd.f32 %v6592_v52, %v2910_v55  ;;  %v4432_v20 = vpop.f32.mrb[78].mxu0  ;;  %4502 = vmatmul.mubr.bf16.gmra.mrb[68].mxu1 %v3184_v1 }
 0x408   : > { %5064 = vtanh.f32 %v2919_v45  ;;  %v2922_v13 = vadd.f32 %v4432_v20, %v6592_v52  ;;  %v2913_v26 = vpop.f32.mrb[79].mxu0 }
 0x409   : > { %5066 = vtanh.f32 %v2911_v48  ;;  %v2914_v62 = vadd.f32 %v6592_v52, %v2913_v26 }
 0x40a   : > { %v5049_v46 = vpop.eup %5048  ;;  %5068 = vtanh.f32 %v2922_v13 }
 0x40b   : > { %v5051_v41 = vpop.eup %5050  ;;  %5070 = vtanh.f32 %v2914_v62 }
 0x40c   : > { %v5053_v6 = vpop.eup %5052 }
 0x40d   : > { %v5055_v21 = vpop.eup %5054  ;;  %v4435_v8 = vpop.f32.mrb[80].mxu0  ;;  %v3186_v43 = vpack.c.bf16 %v5053_v6, %v5049_v46 }
 0x40e   : > { %v5057_v4 = vpop.eup %5056  ;;  %v2935_v27 = vadd.f32 %v4435_v8, %v6592_v52  ;;  %v2926_v44 = vpop.f32.mrb[81].mxu0 }
 0x40f   : > { %v5059_v29 = vpop.eup %5058  ;;  %v2927_v37 = vadd.f32 %v6592_v52, %v2926_v44  ;;  %v4436_v60 = vpop.f32.mrb[82].mxu0  ;;  %v3185_v47 = vpack.c.bf16 %v5057_v4, %v5051_v41 }
 0x410   : > { %v5061_v5 = vpop.eup %5060  ;;  %5072 = vtanh.f32 %v2935_v27  ;;  %v2938_v51 = vadd.f32 %v4436_v60, %v6592_v52  ;;  %v2929_v19 = vpop.f32.mrb[83].mxu0  ;;  %v6633_v27 = vld [vmem:[%s7046_s6] ss:$0 sm:$0xff] }
 0x411   : > { %v5063_v54 = vpop.eup %5062  ;;  %5074 = vtanh.f32 %v2927_v37  ;;  %v2930_v9 = vadd.f32 %v6592_v52, %v2929_v19  ;;  %4505 = vmatprep.mubr.bf16.mxu1 %v3185_v47  ;;  %v2748_v42 = vpack.c.bf16 %v5061_v5, %v5055_v21 }
 0x412   : > { %v5065_v10 = vpop.eup %5064  ;;  %5076 = vtanh.f32 %v2938_v51  ;;  %4506 = vmatmul.mubr.bf16.gmra.mrb[72].mxu1 %v3186_v43  ;;  %v2747_v30 = vpack.c.bf16 %v5063_v54, %v5059_v29 }
 0x413   : > { %v5067_v57 = vpop.eup %5066  ;;  %5078 = vtanh.f32 %v2930_v9 }
 0x414   : > { %v5069_v28 = vpop.eup %5068  ;;  %4461 = vmatprep.mubr.bf16.mxu0 %v2747_v30 }
 0x415   : > { %v5071_v59 = vpop.eup %5070  ;;  %4462 = vmatmul.mubr.bf16.gmra.mrb[108].mxu0 %v2748_v42  ;;  %v4439_v3 = vpop.f32.mrb[84].mxu0  ;;  %v3188_v53 = vpack.c.bf16 %v5069_v28, %v5065_v10 }
 0x416   : > { %v2951_v34 = vadd.f32 %v4439_v3, %v6592_v52  ;;  %v2942_v15 = vpop.f32.mrb[85].mxu0  ;;  %v3187_v50 = vpack.c.bf16 %v5071_v59, %v5067_v57 }
 0x417   : > { %v2943_v0 = vadd.f32 %v6592_v52, %v2942_v15  ;;  %v4440_v25 = vpop.f32.mrb[86].mxu0 }
 0x418   : > { %5080 = vtanh.f32 %v2951_v34  ;;  %v2954_v33 = vadd.f32 %v4440_v25, %v6592_v52  ;;  %v2945_v31 = vpop.f32.mrb[87].mxu0  ;;  %4509 = vmatprep.mubr.bf16.mxu1 %v3187_v50 }
 0x419   : > { %5082 = vtanh.f32 %v2943_v0  ;;  %v2946_v36 = vadd.f32 %v6592_v52, %v2945_v31 }
 0x41a   : > { %v5073_v2 = vpop.eup %5072  ;;  %5084 = vtanh.f32 %v2954_v33  ;;  %4510 = vmatmul.mubr.bf16.gmra.mrb[76].mxu1 %v3188_v53 }
 0x41b   : > { %v5075_v11 = vpop.eup %5074  ;;  %5086 = vtanh.f32 %v2946_v36 }
 0x41c   : > { %v5077_v23 = vpop.eup %5076 }
 0x41d   : > { %v5079_v7 = vpop.eup %5078  ;;  %v3190_v12 = vpack.c.bf16 %v5077_v23, %v5073_v2 }
 0x41e   : > { %v3189_v22 = vpack.c.bf16 %v5079_v7, %v5075_v11 }
 0x420   : > { %4513 = vmatprep.mubr.bf16.mxu1 %v3189_v22 }
 0x422   : > { %v5081_v16 = vpop.eup %5080  ;;  %4514 = vmatmul.mubr.bf16.gmra.mrb[80].mxu1 %v3190_v12  ;;  %v4387_v38 = vpop.f32.mrb[48].mxu1 }
 0x423   : > { %v5083_v14 = vpop.eup %5082  ;;  %v2607_v49 = vadd.f32 %v4387_v38, %v6494_v32  ;;  %v2598_v40 = vpop.f32.mrb[49].mxu1 }
 0x424   : > { %v5085_v61 = vpop.eup %5084  ;;  %v2599_v39 = vadd.f32 %v6494_v32, %v2598_v40  ;;  %v4388_v18 = vpop.f32.mrb[50].mxu1 }
 0x425   : > { %v5087_v56 = vpop.eup %5086  ;;  %5088 = vtanh.f32 %v2607_v49  ;;  %v2610_v35 = vadd.f32 %v4388_v18, %v6494_v32  ;;  %v2601_v24 = vpop.f32.mrb[51].mxu1  ;;  %v3192_v1 = vpack.c.bf16 %v5085_v61, %v5081_v16 }
 0x426   : > { %5090 = vtanh.f32 %v2599_v39  ;;  %v2602_v63 = vadd.f32 %v6494_v32, %v2601_v24  ;;  %v3191_v58 = vpack.c.bf16 %v5087_v56, %v5083_v14 }
 0x427   : > { %5092 = vtanh.f32 %v2610_v35 }
 0x428   : > { %5094 = vtanh.f32 %v2602_v63  ;;  %4517 = vmatprep.mubr.bf16.mxu1 %v3191_v58 }
 0x42a   : > { %4518 = vmatmul.mubr.bf16.gmra.mrb[84].mxu1 %v3192_v1 }
 0x42f   : > { %v5089_v17 = vpop.eup %5088 }
 0x430   : > { %v5091_v45 = vpop.eup %5090 }
 0x431   : > { %v5093_v55 = vpop.eup %5092 }
 0x432   : > { %v5095_v48 = vpop.eup %5094  ;;  %v2750_v20 = vpack.c.bf16 %v5093_v55, %v5089_v17 }
 0x433   : > { %v2749_v13 = vpack.c.bf16 %v5095_v48, %v5091_v45 }
 0x435   : > { %4465 = vmatprep.mubr.bf16.mxu0 %v2749_v13 }
 0x436   : > { %4466 = vmatmul.mubr.bf16.gmra.mrb[112].mxu0 %v2750_v20 }
 0x437   : > { %v4443_v26 = vpop.f32.mrb[88].mxu0 }
 0x438   : > { %v2967_v62 = vadd.f32 %v4443_v26, %v6592_v52  ;;  %v2958_v46 = vpop.f32.mrb[89].mxu0 }
 0x439   : > { %v2959_v41 = vadd.f32 %v6592_v52, %v2958_v46  ;;  %v4444_v32 = vpop.f32.mrb[90].mxu0 }
 0x43a   : > { %5096 = vtanh.f32 %v2967_v62  ;;  %v2970_v6 = vadd.f32 %v4444_v32, %v6592_v52  ;;  %v2961_v21 = vpop.f32.mrb[91].mxu0 }
 0x43b   : > { %5098 = vtanh.f32 %v2959_v41  ;;  %v2962_v8 = vadd.f32 %v6592_v52, %v2961_v21 }
 0x43c   : > { %5100 = vtanh.f32 %v2970_v6 }
 0x43d   : > { %5102 = vtanh.f32 %v2962_v8 }
 0x443   : > { %v4391_v43 = vpop.f32.mrb[52].mxu1 }
 0x444   : > { %v5097_v4 = vpop.eup %5096  ;;  %v2623_v44 = vadd.f32 %v6633_v27, %v4391_v43  ;;  %v2614_v29 = vpop.f32.mrb[53].mxu1 }
 0x445   : > { %v5099_v37 = vpop.eup %5098  ;;  %v2615_v60 = vadd.f32 %v6633_v27, %v2614_v29  ;;  %v4392_v47 = vpop.f32.mrb[54].mxu1 }
 0x446   : > { %v5101_v5 = vpop.eup %5100  ;;  %5104 = vtanh.f32 %v2623_v44  ;;  %v2626_v51 = vadd.f32 %v6633_v27, %v4392_v47  ;;  %v2617_v19 = vpop.f32.mrb[55].mxu1 }
 0x447   : > { %v5103_v54 = vpop.eup %5102  ;;  %5106 = vtanh.f32 %v2615_v60  ;;  %v2618_v9 = vadd.f32 %v6633_v27, %v2617_v19  ;;  %v3194_v42 = vpack.c.bf16 %v5101_v5, %v5097_v4 }
 0x448   : > { %5108 = vtanh.f32 %v2626_v51  ;;  %v3193_v10 = vpack.c.bf16 %v5103_v54, %v5099_v37 }
 0x449   : > { %5110 = vtanh.f32 %v2618_v9 }
 0x44a   : > { %4521 = vmatprep.mubr.bf16.mxu1 %v3193_v10 }
 0x44b   : > { %4522 = vmatmul.mubr.bf16.gmra.mrb[88].mxu1 %v3194_v42 }
 0x450   : > { %v5105_v30 = vpop.eup %5104 }
 0x451   : > { %v5107_v57 = vpop.eup %5106 }
 0x452   : > { %v5109_v28 = vpop.eup %5108 }
 0x453   : > { %v5111_v59 = vpop.eup %5110  ;;  %v2752_v3 = vpack.c.bf16 %v5109_v28, %v5105_v30 }
 0x454   : > { %v2751_v53 = vpack.c.bf16 %v5111_v59, %v5107_v57 }
 0x456   : > { %4469 = vmatprep.mubr.bf16.mxu0 %v2751_v53 }
 0x457   : > { %4470 = vmatmul.mubr.bf16.gmra.mrb[116].mxu0 %v2752_v3 }
 0x458   : > { %v4447_v34 = vpop.f32.mrb[92].mxu0 }
 0x459   : > { %v2983_v15 = vadd.f32 %v4447_v34, %v6592_v52  ;;  %v2974_v50 = vpop.f32.mrb[93].mxu0 }
 0x45a   : > { %v2975_v0 = vadd.f32 %v6592_v52, %v2974_v50  ;;  %v4448_v25 = vpop.f32.mrb[94].mxu0 }
 0x45b   : > { %5112 = vtanh.f32 %v2983_v15  ;;  %v2986_v33 = vadd.f32 %v4448_v25, %v6592_v52  ;;  %v2977_v31 = vpop.f32.mrb[95].mxu0 }
 0x45c   : > { %5114 = vtanh.f32 %v2975_v0  ;;  %v2978_v36 = vadd.f32 %v6592_v52, %v2977_v31 }
 0x45d   : > { %5116 = vtanh.f32 %v2986_v33 }
 0x45e   : > { %5118 = vtanh.f32 %v2978_v36 }
 0x465   : > { %v5113_v2 = vpop.eup %5112 }
 0x466   : > { %v5115_v11 = vpop.eup %5114 }
 0x467   : > { %v5117_v23 = vpop.eup %5116 }
 0x468   : > { %v5119_v7 = vpop.eup %5118  ;;  %v4395_v12 = vpop.f32.mrb[56].mxu1  ;;  %v3196_v22 = vpack.c.bf16 %v5117_v23, %v5113_v2 }
 0x469   : > { %v2639_v16 = vadd.f32 %v6633_v27, %v4395_v12  ;;  %v2630_v38 = vpop.f32.mrb[57].mxu1  ;;  %v3195_v14 = vpack.c.bf16 %v5119_v7, %v5115_v11 }
 0x46a   : > { %v2631_v49 = vadd.f32 %v6633_v27, %v2630_v38  ;;  %v4396_v40 = vpop.f32.mrb[58].mxu1 }
 0x46b   : > { %5120 = vtanh.f32 %v2639_v16  ;;  %v2642_v61 = vadd.f32 %v6633_v27, %v4396_v40  ;;  %v2633_v39 = vpop.f32.mrb[59].mxu1  ;;  %4525 = vmatprep.mubr.bf16.mxu1 %v3195_v14  ;;  %v6666_v14 = vld [vmem:[%s7050_s10] ss:$0 sm:$0xff] }
 0x46c   : > { %5122 = vtanh.f32 %v2631_v49  ;;  %v2634_v18 = vadd.f32 %v6633_v27, %v2633_v39  ;;  %4526 = vmatmul.mubr.bf16.gmra.mrb[92].mxu1 %v3196_v22 }
 0x46d   : > { %5124 = vtanh.f32 %v2642_v61 }
 0x46e   : > { %5126 = vtanh.f32 %v2634_v18 }
 0x475   : > { %v5121_v56 = vpop.eup %5120 }
 0x476   : > { %v5123_v35 = vpop.eup %5122 }
 0x477   : > { %v5125_v24 = vpop.eup %5124 }
 0x478   : > { %v5127_v1 = vpop.eup %5126  ;;  %v2754_v63 = vpack.c.bf16 %v5125_v24, %v5121_v56 }
 0x479   : > { %v2753_v58 = vpack.c.bf16 %v5127_v1, %v5123_v35 }
 0x47b   : > { %4473 = vmatprep.mubr.bf16.mxu0 %v2753_v58 }
 0x47c   : > { %4474 = vmatmul.mubr.bf16.gmra.mrb[120].mxu0 %v2754_v63 }
 0x47d   : > { %v4451_v17 = vpop.f32.mrb[96].mxu0 }
 0x47e   : > { %v2999_v45 = vadd.f32 %v4451_v17, %v6592_v52  ;;  %v2990_v55 = vpop.f32.mrb[97].mxu0 }
 0x47f   : > { %v2991_v48 = vadd.f32 %v6592_v52, %v2990_v55  ;;  %v4452_v20 = vpop.f32.mrb[98].mxu0 }
 0x480   : > { %5128 = vtanh.f32 %v2999_v45  ;;  %v3002_v13 = vadd.f32 %v4452_v20, %v6592_v52  ;;  %v2993_v26 = vpop.f32.mrb[99].mxu0 }
 0x481   : > { %5130 = vtanh.f32 %v2991_v48  ;;  %v2994_v62 = vadd.f32 %v6592_v52, %v2993_v26 }
 0x482   : > { %5132 = vtanh.f32 %v3002_v13 }
 0x483   : > { %5134 = vtanh.f32 %v2994_v62 }
 0x489   : > { %v4399_v46 = vpop.f32.mrb[60].mxu1 }
 0x48a   : > { %v5129_v41 = vpop.eup %5128  ;;  %v2655_v32 = vadd.f32 %v6633_v27, %v4399_v46  ;;  %v2646_v6 = vpop.f32.mrb[61].mxu1 }
 0x48b   : > { %v5131_v21 = vpop.eup %5130  ;;  %v2647_v8 = vadd.f32 %v6633_v27, %v2646_v6  ;;  %v4400_v43 = vpop.f32.mrb[62].mxu1 }
 0x48c   : > { %v5133_v4 = vpop.eup %5132  ;;  %5136 = vtanh.f32 %v2655_v32  ;;  %v2658_v44 = vadd.f32 %v6633_v27, %v4400_v43  ;;  %v2649_v29 = vpop.f32.mrb[63].mxu1 }
 0x48d   : > { %v5135_v37 = vpop.eup %5134  ;;  %5138 = vtanh.f32 %v2647_v8  ;;  %v2650_v60 = vadd.f32 %v6633_v27, %v2649_v29  ;;  %v3198_v47 = vpack.c.bf16 %v5133_v4, %v5129_v41  ;;  %v6678_v41 = vld [vmem:[%s7051_s11] ss:$0 sm:$0xff] }
 0x48e   : > { %5140 = vtanh.f32 %v2658_v44  ;;  %v3197_v5 = vpack.c.bf16 %v5135_v37, %v5131_v21 }
 0x48f   : > { %5142 = vtanh.f32 %v2650_v60 }
 0x490   : > { %4529 = vmatprep.mubr.bf16.mxu1 %v3197_v5 }
 0x491   : > { %4530 = vmatmul.mubr.bf16.gmra.mrb[96].mxu1 %v3198_v47 }
 0x496   : > { %v5137_v51 = vpop.eup %5136 }
 0x497   : > { %v5139_v19 = vpop.eup %5138 }
 0x498   : > { %v5141_v54 = vpop.eup %5140 }
 0x499   : > { %v5143_v9 = vpop.eup %5142  ;;  %v2756_v42 = vpack.c.bf16 %v5141_v54, %v5137_v51 }
 0x49a   : > { %v2755_v10 = vpack.c.bf16 %v5143_v9, %v5139_v19 }
 0x49c   : > { %4477 = vmatprep.mubr.bf16.mxu0 %v2755_v10 }
 0x49d   : > { %4478 = vmatmul.mubr.bf16.gmra.mrb[124].mxu0 %v2756_v42 }
 0x49e   : > { %v4455_v30 = vpop.f32.mrb[100].mxu0 }
 0x49f   : > { %v3015_v57 = vadd.f32 %v4455_v30, %v6592_v52  ;;  %v3006_v28 = vpop.f32.mrb[101].mxu0 }
 0x4a0   : > { %v3007_v27 = vadd.f32 %v6592_v52, %v3006_v28  ;;  %v4456_v59 = vpop.f32.mrb[102].mxu0 }
 0x4a1   : > { %5144 = vtanh.f32 %v3015_v57  ;;  %v3018_v3 = vadd.f32 %v4456_v59, %v6592_v52  ;;  %v3009_v53 = vpop.f32.mrb[103].mxu0 }
 0x4a2   : > { %5146 = vtanh.f32 %v3007_v27  ;;  %v3010_v34 = vadd.f32 %v6592_v52, %v3009_v53 }
 0x4a3   : > { %5148 = vtanh.f32 %v3018_v3 }
 0x4a4   : > { %5150 = vtanh.f32 %v3010_v34 }
 0x4ab   : > { %v5145_v15 = vpop.eup %5144 }
 0x4ac   : > { %v5147_v50 = vpop.eup %5146 }
 0x4ad   : > { %v5149_v0 = vpop.eup %5148 }
 0x4ae   : > { %v5151_v25 = vpop.eup %5150  ;;  %v3200_v33 = vpack.c.bf16 %v5149_v0, %v5145_v15 }
 0x4af   : > { %v3199_v31 = vpack.c.bf16 %v5151_v25, %v5147_v50 }
 0x4b1   : > { %4533 = vmatprep.mubr.bf16.mxu1 %v3199_v31 }
 0x4b2   : > { %4534 = vmatmul.mubr.bf16.gmra.mrb[100].mxu1 %v3200_v33 }
 0x4c3   : > { %v4459_v36 = vpop.f32.mrb[104].mxu0 }
 0x4c4   : > { %v3031_v2 = vadd.f32 %v4459_v36, %v6592_v52  ;;  %v3022_v11 = vpop.f32.mrb[105].mxu0 }
 0x4c5   : > { %v3023_v23 = vadd.f32 %v6592_v52, %v3022_v11  ;;  %v4460_v7 = vpop.f32.mrb[106].mxu0 }
 0x4c6   : > { %5152 = vtanh.f32 %v3031_v2  ;;  %v3034_v12 = vadd.f32 %v4460_v7, %v6592_v52  ;;  %v3025_v22 = vpop.f32.mrb[107].mxu0 }
 0x4c7   : > { %5154 = vtanh.f32 %v3023_v23  ;;  %v3026_v16 = vadd.f32 %v6592_v52, %v3025_v22 }
 0x4c8   : > { %5156 = vtanh.f32 %v3034_v12 }
 0x4c9   : > { %5158 = vtanh.f32 %v3026_v16 }
 0x4d0   : > { %v5153_v38 = vpop.eup %5152 }
 0x4d1   : > { %v5155_v49 = vpop.eup %5154  ;;  %v4499_v61 = vpop.f32.mrb[64].mxu1 }
 0x4d2   : > { %v5157_v40 = vpop.eup %5156  ;;  %v3327_v18 = vadd.f32 %v4499_v61, %v6666_v14  ;;  %v3318_v56 = vpop.f32.mrb[65].mxu1 }
 0x4d3   : > { %v5159_v39 = vpop.eup %5158  ;;  %v3202_v35 = vpack.c.bf16 %v5157_v40, %v5153_v38  ;;  %v3319_v24 = vadd.f32 %v6666_v14, %v3318_v56  ;;  %v4500_v1 = vpop.f32.mrb[66].mxu1 }
 0x4d4   : > { %v3201_v63 = vpack.c.bf16 %v5159_v39, %v5155_v49  ;;  %5160 = vtanh.f32 %v3327_v18  ;;  %v3330_v58 = vadd.f32 %v4500_v1, %v6666_v14  ;;  %v3321_v17 = vpop.f32.mrb[67].mxu1 }
 0x4d5   : > { %5162 = vtanh.f32 %v3319_v24  ;;  %v3322_v45 = vadd.f32 %v6666_v14, %v3321_v17 }
 0x4d6   : > { %4537 = vmatprep.mubr.bf16.mxu1 %v3201_v63  ;;  %5164 = vtanh.f32 %v3330_v58 }
 0x4d7   : > { %4538 = vmatmul.mubr.bf16.gmra.mrb[104].mxu1 %v3202_v35  ;;  %5166 = vtanh.f32 %v3322_v45 }
 0x4da   : > { %v4503_v55 = vpop.f32.mrb[68].mxu1 }
 0x4db   : > { %v3343_v48 = vadd.f32 %v4503_v55, %v6666_v14  ;;  %v3334_v20 = vpop.f32.mrb[69].mxu1 }
 0x4dc   : > { %v3335_v13 = vadd.f32 %v6666_v14, %v3334_v20  ;;  %v4504_v26 = vpop.f32.mrb[70].mxu1 }
 0x4dd   : > { %5168 = vtanh.f32 %v3343_v48  ;;  %v3346_v62 = vadd.f32 %v4504_v26, %v6666_v14  ;;  %v3337_v46 = vpop.f32.mrb[71].mxu1 }
 0x4de   : > { %5170 = vtanh.f32 %v3335_v13  ;;  %v3338_v32 = vadd.f32 %v6666_v14, %v3337_v46  ;;  %v5161_v6 = vpop.eup %5160 }
 0x4df   : > { %5172 = vtanh.f32 %v3346_v62  ;;  %v5163_v21 = vpop.eup %5162  ;;  %v3646_v8 = vmul.f32 %v5161_v6, %v6678_v41 }
 0x4e0   : > { %v5165_v43 = vpop.eup %5164  ;;  %5174 = vtanh.f32 %v3338_v32  ;;  %v3644_v4 = vmul.f32 %v5163_v21, %v6678_v41 }
 0x4e1   : > { %v5167_v44 = vpop.eup %5166  ;;  %3712 = vadd.xlane.f32.xlu0 %v3646_v8  ;;  %v3647_v60 = vmul.f32 %v5165_v43, %v6678_v41 }
 0x4e2   : > { %3708 = vadd.xlane.f32.xlu1 %v3644_v4  ;;  %v3645_v29 = vmul.f32 %v5167_v44, %v6678_v41 }
 0x4e5   : > { %v4507_v37 = vpop.f32.mrb[72].mxu1  ;;  %3710 = vadd.xlane.f32.xlu0 %v3645_v29 }
 0x4e6   : > { %v3359_v47 = vadd.f32 %v4507_v37, %v6666_v14  ;;  %v3350_v5 = vpop.f32.mrb[73].mxu1  ;;  %3714 = vadd.xlane.f32.xlu1 %v3647_v60 }
 0x4e7   : > { %v5169_v51 = vpop.eup %5168  ;;  %v3351_v19 = vadd.f32 %v6666_v14, %v3350_v5  ;;  %v4508_v54 = vpop.f32.mrb[74].mxu1 }
 0x4e8   : > { %v5171_v9 = vpop.eup %5170  ;;  %5176 = vtanh.f32 %v3359_v47  ;;  %v3362_v42 = vadd.f32 %v4508_v54, %v6666_v14  ;;  %v4463_v10 = vpop.f32.mrb[108].mxu0  ;;  %v3650_v57 = vmul.f32 %v5169_v51, %v6678_v41 }
 0x4e9   : > { %v3353_v30 = vpop.f32.mrb[75].mxu1  ;;  %v5173_v28 = vpop.eup %5172  ;;  %5178 = vtanh.f32 %v3351_v19  ;;  %v3047_v27 = vadd.f32 %v4463_v10, %v6592_v52  ;;  %v3648_v31 = vmul.f32 %v5171_v9, %v6678_v41 }
 0x4ea   : > { %v3354_v59 = vadd.f32 %v6666_v14, %v3353_v30  ;;  %v3038_v3 = vpop.f32.mrb[109].mxu0  ;;  %5180 = vtanh.f32 %v3362_v42  ;;  %3720 = vadd.xlane.f32.xlu0 %v3650_v57  ;;  %v3651_v15 = vmul.f32 %v5173_v28, %v6678_v41  ;;  %v5175_v50 = vpop.eup %5174 }
 0x4eb   : > { %v3039_v53 = vadd.f32 %v6592_v52, %v3038_v3  ;;  %v4464_v34 = vpop.f32.mrb[110].mxu0  ;;  %5182 = vtanh.f32 %v3047_v27  ;;  %v3649_v23 = vmul.f32 %v5175_v50, %v6678_v41 }
 0x4ec   : > { %v3050_v0 = vadd.f32 %v4464_v34, %v6592_v52  ;;  %v3041_v25 = vpop.f32.mrb[111].mxu0  ;;  %5184 = vtanh.f32 %v3354_v59  ;;  %3722 = vadd.xlane.f32.xlu1 %v3651_v15 }
 0x4ed   : > { %v3042_v33 = vadd.f32 %v6592_v52, %v3041_v25  ;;  %5186 = vtanh.f32 %v3039_v53  ;;  %v4511_v36 = vpop.f32.mrb[76].mxu1 }
 0x4ee   : > { %5188 = vtanh.f32 %v3050_v0  ;;  %v3375_v2 = vadd.f32 %v4511_v36, %v6666_v14  ;;  %v3366_v11 = vpop.f32.mrb[77].mxu1  ;;  %3716 = vadd.xlane.f32.xlu0 %v3648_v31 }
 0x4ef   : > { %5190 = vtanh.f32 %v3042_v33  ;;  %v3367_v7 = vadd.f32 %v6666_v14, %v3366_v11  ;;  %v4512_v12 = vpop.f32.mrb[78].mxu1 }
 0x4f0   : > { %5192 = vtanh.f32 %v3375_v2  ;;  %v3378_v22 = vadd.f32 %v4512_v12, %v6666_v14  ;;  %v3369_v16 = vpop.f32.mrb[79].mxu1  ;;  %3718 = vadd.xlane.f32.xlu1 %v3649_v23 }
 0x4f1   : > { %5194 = vtanh.f32 %v3367_v7  ;;  %v3370_v38 = vadd.f32 %v6666_v14, %v3369_v16 }
 0x4f2   : > { %v5177_v49 = vpop.eup %5176  ;;  %5196 = vtanh.f32 %v3378_v22 }
 0x4f3   : > { %v5179_v40 = vpop.eup %5178  ;;  %v3654_v61 = vmul.f32 %v5177_v49, %v6678_v41  ;;  %5198 = vtanh.f32 %v3370_v38 }
 0x4f4   : > { %v5181_v39 = vpop.eup %5180  ;;  %v3652_v55 = vmul.f32 %v5179_v40, %v6678_v41 }
 0x4f5   : > { %v5183_v18 = vpop.eup %5182  ;;  %v4515_v56 = vpop.f32.mrb[80].mxu1  ;;  %3728 = vadd.xlane.f32.xlu0 %v3654_v61  ;;  %v3655_v35 = vmul.f32 %v5181_v39, %v6678_v41 }
 0x4f6   : > { %v5185_v24 = vpop.eup %5184  ;;  %v3391_v1 = vadd.f32 %v4515_v56, %v6666_v14  ;;  %v3382_v63 = vpop.f32.mrb[81].mxu1 }
 0x4f7   : > { %v5187_v58 = vpop.eup %5186  ;;  %v3383_v17 = vadd.f32 %v6666_v14, %v3382_v63  ;;  %v4516_v45 = vpop.f32.mrb[82].mxu1  ;;  %3730 = vadd.xlane.f32.xlu1 %v3655_v35  ;;  %v3653_v46 = vmul.f32 %v5185_v24, %v6678_v41 }
 0x4f8   : > { %v5189_v48 = vpop.eup %5188  ;;  %5200 = vtanh.f32 %v3391_v1  ;;  %v3394_v20 = vadd.f32 %v4516_v45, %v6666_v14  ;;  %v3385_v13 = vpop.f32.mrb[83].mxu1 }
 0x4f9   : > { %v5191_v26 = vpop.eup %5190  ;;  %5202 = vtanh.f32 %v3383_v17  ;;  %v3386_v62 = vadd.f32 %v6666_v14, %v3385_v13  ;;  %3724 = vadd.xlane.f32.xlu0 %v3652_v55  ;;  %v3204_v32 = vpack.c.bf16 %v5189_v48, %v5183_v18  ;;  %v6736_v13 = vld [vmem:[%s7048_s8] ss:$0 sm:$0xff] }
 0x4fa   : > { %v5193_v6 = vpop.eup %5192  ;;  %5204 = vtanh.f32 %v3394_v20  ;;  %v3203_v21 = vpack.c.bf16 %v5191_v26, %v5187_v58 }
 0x4fb   : > { %v5195_v8 = vpop.eup %5194  ;;  %3726 = vadd.xlane.f32.xlu1 %v3653_v46  ;;  %v3658_v43 = vmul.f32 %v5193_v6, %v6678_v41  ;;  %5206 = vtanh.f32 %v3386_v62 }
 0x4fc   : > { %v5197_v4 = vpop.eup %5196  ;;  %4541 = vmatprep.mubr.bf16.mxu1 %v3203_v21  ;;  %v3656_v19 = vmul.f32 %v5195_v8, %v6678_v41 }
 0x4fd   : > { %4542 = vmatmul.mubr.bf16.gmra.mrb[108].mxu1 %v3204_v32  ;;  %v4519_v44 = vpop.f32.mrb[84].mxu1  ;;  %3736 = vadd.xlane.f32.xlu0 %v3658_v43  ;;  %v3659_v29 = vmul.f32 %v5197_v4, %v6678_v41  ;;  %v5199_v37 = vpop.eup %5198 }
 0x4fe   : > { %v3407_v60 = vadd.f32 %v4519_v44, %v6666_v14  ;;  %v3398_v47 = vpop.f32.mrb[85].mxu1  ;;  %v3657_v10 = vmul.f32 %v5199_v37, %v6678_v41 }
 0x4ff   : > { %v3399_v5 = vadd.f32 %v6666_v14, %v3398_v47  ;;  %v4520_v51 = vpop.f32.mrb[86].mxu1  ;;  %3738 = vadd.xlane.f32.xlu1 %v3659_v29 }
 0x500   : > { %5208 = vtanh.f32 %v3407_v60  ;;  %v3410_v54 = vadd.f32 %v4520_v51, %v6666_v14  ;;  %v3401_v9 = vpop.f32.mrb[87].mxu1 }
 0x501   : > { %5210 = vtanh.f32 %v3399_v5  ;;  %v3402_v42 = vadd.f32 %v6666_v14, %v3401_v9  ;;  %3732 = vadd.xlane.f32.xlu0 %v3656_v19 }
 0x502   : > { %v5201_v30 = vpop.eup %5200  ;;  %5212 = vtanh.f32 %v3410_v54 }
 0x503   : > { %v5203_v57 = vpop.eup %5202  ;;  %3734 = vadd.xlane.f32.xlu1 %v3657_v10  ;;  %v3662_v28 = vmul.f32 %v5201_v30, %v6678_v41  ;;  %5214 = vtanh.f32 %v3402_v42 }
 0x504   : > { %v5205_v27 = vpop.eup %5204  ;;  %v3660_v53 = vmul.f32 %v5203_v57, %v6678_v41 }
 0x505   : > { %3744 = vadd.xlane.f32.xlu0 %v3662_v28  ;;  %v3663_v59 = vmul.f32 %v5205_v27, %v6678_v41  ;;  %v5207_v3 = vpop.eup %5206 }
 0x506   : > { %v3661_v34 = vmul.f32 %v5207_v3, %v6678_v41 }
 0x507   : > { %3746 = vadd.xlane.f32.xlu1 %v3663_v59 }
 0x509   : > { %3740 = vadd.xlane.f32.xlu0 %v3660_v53  ;;  %v4467_v15 = vpop.f32.mrb[112].mxu0 }
 0x50a   : > { %v5209_v50 = vpop.eup %5208  ;;  %v3063_v0 = vadd.f32 %v4467_v15, %v6592_v52  ;;  %v3054_v25 = vpop.f32.mrb[113].mxu0 }
 0x50b   : > { %v5211_v33 = vpop.eup %5210  ;;  %3742 = vadd.xlane.f32.xlu1 %v3661_v34  ;;  %v3666_v31 = vmul.f32 %v5209_v50, %v6678_v41  ;;  %v3055_v36 = vadd.f32 %v6592_v52, %v3054_v25  ;;  %v4468_v2 = vpop.f32.mrb[114].mxu0 }
 0x50c   : > { %v5213_v11 = vpop.eup %5212  ;;  %5216 = vtanh.f32 %v3063_v0  ;;  %v3066_v23 = vadd.f32 %v4468_v2, %v6592_v52  ;;  %v3057_v7 = vpop.f32.mrb[115].mxu0  ;;  %v3664_v38 = vmul.f32 %v5211_v33, %v6678_v41 }
 0x50d   : > { %3752 = vadd.xlane.f32.xlu0 %v3666_v31  ;;  %5218 = vtanh.f32 %v3055_v36  ;;  %v3667_v12 = vmul.f32 %v5213_v11, %v6678_v41  ;;  %v3058_v22 = vadd.f32 %v6592_v52, %v3057_v7  ;;  %v5215_v16 = vpop.eup %5214 }
 0x50e   : > { %5220 = vtanh.f32 %v3066_v23  ;;  %v3665_v49 = vmul.f32 %v5215_v16, %v6678_v41 }
 0x50f   : > { %3754 = vadd.xlane.f32.xlu1 %v3667_v12  ;;  %5222 = vtanh.f32 %v3058_v22 }
 0x511   : > { %3748 = vadd.xlane.f32.xlu0 %v3664_v38 }
 0x513   : > { %3750 = vadd.xlane.f32.xlu1 %v3665_v49 }
 0x516   : > { %v5217_v40 = vpop.eup %5216 }
 0x517   : > { %v5219_v61 = vpop.eup %5218 }
 0x518   : > { %v5221_v39 = vpop.eup %5220 }
 0x519   : > { %v5223_v18 = vpop.eup %5222  ;;  %v3206_v56 = vpack.c.bf16 %v5221_v39, %v5217_v40 }
 0x51a   : > { %v3205_v35 = vpack.c.bf16 %v5223_v18, %v5219_v61 }
 0x51c   : > { %4545 = vmatprep.mubr.bf16.mxu1 %v3205_v35 }
 0x51d   : > { %4546 = vmatmul.mubr.bf16.gmra.mrb[112].mxu1 %v3206_v56 }
 0x51e   : > { %v4523_v24 = vpop.f32.mrb[88].mxu1 }
 0x51f   : > { %v3423_v52 = vadd.f32 %v4523_v24, %v6666_v14  ;;  %v3414_v1 = vpop.f32.mrb[89].mxu1 }
 0x520   : > { %v3415_v63 = vadd.f32 %v6666_v14, %v3414_v1  ;;  %v4524_v58 = vpop.f32.mrb[90].mxu1 }
 0x521   : > { %5224 = vtanh.f32 %v3423_v52  ;;  %v3426_v17 = vadd.f32 %v4524_v58, %v6666_v14  ;;  %v3417_v45 = vpop.f32.mrb[91].mxu1 }
 0x522   : > { %5226 = vtanh.f32 %v3415_v63  ;;  %v3418_v55 = vadd.f32 %v6666_v14, %v3417_v45 }
 0x523   : > { %5228 = vtanh.f32 %v3426_v17 }
 0x524   : > { %5230 = vtanh.f32 %v3418_v55  ;;  %v6762_v55 = vld [vmem:[#allocation2] ss:$0 sm:$0xff] }
 0x52a   : > { %v4471_v48 = vpop.f32.mrb[116].mxu0 }
 0x52b   : > { %v5225_v20 = vpop.eup %5224  ;;  %v3079_v26 = vadd.f32 %v6736_v13, %v4471_v48  ;;  %v3070_v62 = vpop.f32.mrb[117].mxu0 }
 0x52c   : > { %v5227_v46 = vpop.eup %5226  ;;  %v3071_v32 = vadd.f32 %v6736_v13, %v3070_v62  ;;  %v4472_v6 = vpop.f32.mrb[118].mxu0  ;;  %v3670_v21 = vmul.f32 %v5225_v20, %v6678_v41 }
 0x52d   : > { %v5229_v8 = vpop.eup %5228  ;;  %5232 = vtanh.f32 %v3079_v26  ;;  %v3082_v43 = vadd.f32 %v6736_v13, %v4472_v6  ;;  %v3073_v4 = vpop.f32.mrb[119].mxu0  ;;  %v3668_v60 = vmul.f32 %v5227_v46, %v6678_v41 }
 0x52e   : > { %5234 = vtanh.f32 %v3071_v32  ;;  %v3074_v44 = vadd.f32 %v6736_v13, %v3073_v4  ;;  %3760 = vadd.xlane.f32.xlu0 %v3670_v21  ;;  %v3671_v29 = vmul.f32 %v5229_v8, %v6678_v41  ;;  %v5231_v37 = vpop.eup %5230 }
 0x52f   : > { %5236 = vtanh.f32 %v3082_v43  ;;  %v3669_v47 = vmul.f32 %v5231_v37, %v6678_v41 }
 0x530   : > { %5238 = vtanh.f32 %v3074_v44  ;;  %3762 = vadd.xlane.f32.xlu1 %v3671_v29 }
 0x532   : > { %3756 = vadd.xlane.f32.xlu0 %v3668_v60 }
 0x534   : > { %3758 = vadd.xlane.f32.xlu1 %v3669_v47 }
 0x537   : > { %v5233_v5 = vpop.eup %5232 }
 0x538   : > { %v5235_v51 = vpop.eup %5234 }
 0x539   : > { %v5237_v19 = vpop.eup %5236 }
 0x53a   : > { %v5239_v54 = vpop.eup %5238  ;;  %v3208_v9 = vpack.c.bf16 %v5237_v19, %v5233_v5 }
 0x53b   : > { %v3207_v42 = vpack.c.bf16 %v5239_v54, %v5235_v51 }
 0x53d   : > { %4549 = vmatprep.mubr.bf16.mxu1 %v3207_v42 }
 0x53e   : > { %4550 = vmatmul.mubr.bf16.gmra.mrb[116].mxu1 %v3208_v9 }
 0x53f   : > { %v4527_v10 = vpop.f32.mrb[92].mxu1 }
 0x540   : > { %v3439_v30 = vadd.f32 %v4527_v10, %v6666_v14  ;;  %v3430_v57 = vpop.f32.mrb[93].mxu1 }
 0x541   : > { %v3431_v28 = vadd.f32 %v6666_v14, %v3430_v57  ;;  %v4528_v27 = vpop.f32.mrb[94].mxu1 }
 0x542   : > { %5240 = vtanh.f32 %v3439_v30  ;;  %v3442_v59 = vadd.f32 %v4528_v27, %v6666_v14  ;;  %v3433_v3 = vpop.f32.mrb[95].mxu1 }
 0x543   : > { %5242 = vtanh.f32 %v3431_v28  ;;  %v3434_v53 = vadd.f32 %v6666_v14, %v3433_v3 }
 0x544   : > { %5244 = vtanh.f32 %v3442_v59 }
 0x545   : > { %5246 = vtanh.f32 %v3434_v53 }
 0x54c   : > { %v5241_v34 = vpop.eup %5240 }
 0x54d   : > { %v5243_v15 = vpop.eup %5242  ;;  %v3674_v50 = vmul.f32 %v5241_v34, %v6678_v41 }
 0x54e   : > { %v5245_v0 = vpop.eup %5244  ;;  %v3672_v7 = vmul.f32 %v5243_v15, %v6678_v41 }
 0x54f   : > { %v4475_v25 = vpop.f32.mrb[120].mxu0  ;;  %3768 = vadd.xlane.f32.xlu0 %v3674_v50  ;;  %v3675_v33 = vmul.f32 %v5245_v0, %v6678_v41  ;;  %v5247_v31 = vpop.eup %5246 }
 0x550   : > { %v3095_v36 = vadd.f32 %v6736_v13, %v4475_v25  ;;  %v3086_v2 = vpop.f32.mrb[121].mxu0  ;;  %v3673_v38 = vmul.f32 %v5247_v31, %v6678_v41 }
 0x551   : > { %v3087_v11 = vadd.f32 %v6736_v13, %v3086_v2  ;;  %v4476_v23 = vpop.f32.mrb[122].mxu0  ;;  %3770 = vadd.xlane.f32.xlu1 %v3675_v33 }
 0x552   : > { %5248 = vtanh.f32 %v3095_v36  ;;  %v3098_v12 = vadd.f32 %v6736_v13, %v4476_v23  ;;  %v3089_v22 = vpop.f32.mrb[123].mxu0 }
 0x553   : > { %5250 = vtanh.f32 %v3087_v11  ;;  %v3090_v16 = vadd.f32 %v6736_v13, %v3089_v22  ;;  %3764 = vadd.xlane.f32.xlu0 %v3672_v7 }
 0x554   : > { %5252 = vtanh.f32 %v3098_v12 }
 0x555   : > { %5254 = vtanh.f32 %v3090_v16  ;;  %3766 = vadd.xlane.f32.xlu1 %v3673_v38 }
 0x55c   : > { %v5249_v49 = vpop.eup %5248 }
 0x55d   : > { %v5251_v40 = vpop.eup %5250 }
 0x55e   : > { %v5253_v61 = vpop.eup %5252 }
 0x55f   : > { %v5255_v39 = vpop.eup %5254  ;;  %v3210_v18 = vpack.c.bf16 %v5253_v61, %v5249_v49 }
 0x560   : > { %v3209_v56 = vpack.c.bf16 %v5255_v39, %v5251_v40 }
 0x562   : > { %4553 = vmatprep.mubr.bf16.mxu1 %v3209_v56 }
 0x563   : > { %4554 = vmatmul.mubr.bf16.gmra.mrb[120].mxu1 %v3210_v18 }
 0x564   : > { %v4531_v35 = vpop.f32.mrb[96].mxu1 }
 0x565   : > { %v3455_v24 = vadd.f32 %v4531_v35, %v6666_v14  ;;  %v3446_v52 = vpop.f32.mrb[97].mxu1 }
 0x566   : > { %v3447_v1 = vadd.f32 %v6666_v14, %v3446_v52  ;;  %v4532_v63 = vpop.f32.mrb[98].mxu1 }
 0x567   : > { %5256 = vtanh.f32 %v3455_v24  ;;  %v3458_v58 = vadd.f32 %v4532_v63, %v6666_v14  ;;  %v3449_v17 = vpop.f32.mrb[99].mxu1 }
 0x568   : > { %5258 = vtanh.f32 %v3447_v1  ;;  %v3450_v45 = vadd.f32 %v6666_v14, %v3449_v17 }
 0x569   : > { %5260 = vtanh.f32 %v3458_v58 }
 0x56a   : > { %5262 = vtanh.f32 %v3450_v45 }
 0x56e   : > { %v3713_v48 = vpop.xlane.xlu0 %3712 }
 0x56f   : > { %v3845_v20 = vadd.f32 %v6762_v55, %v3713_v48  ;;  %v3709_v26 = vpop.xlane.xlu1 %3708 }
 0x570   : > { %v4479_v62 = vpop.f32.mrb[124].mxu0  ;;  %v3843_v32 = vadd.f32 %v6762_v55, %v3709_v26 }
 0x571   : > { %v5257_v46 = vpop.eup %5256  ;;  %v3111_v6 = vadd.f32 %v6736_v13, %v4479_v62  ;;  %v3102_v21 = vpop.f32.mrb[125].mxu0  ;;  %3910 = vst.msk [vmem:[%s6769_s26 + $0x10] sm:$0xff] %vm3907_vm0, %v3845_v20 }
 0x572   : > { %v5259_v8 = vpop.eup %5258  ;;  %v3103_v43 = vadd.f32 %v6736_v13, %v3102_v21  ;;  %v4480_v4 = vpop.f32.mrb[126].mxu0  ;;  %v3678_v44 = vmul.f32 %v5257_v46, %v6678_v41  ;;  %3908 = vst.msk [vmem:[%s6769_s26] sm:$0xff] %vm3907_vm0, %v3843_v32 }
 0x573   : > { %v5261_v29 = vpop.eup %5260  ;;  %5264 = vtanh.f32 %v3111_v6  ;;  %v3711_v37 = vpop.xlane.xlu0 %3710  ;;  %v3114_v60 = vadd.f32 %v6736_v13, %v4480_v4  ;;  %v3676_v10 = vmul.f32 %v5259_v8, %v6678_v41 }
 0x574   : > { %v3105_v47 = vpop.f32.mrb[127].mxu0  ;;  %5266 = vtanh.f32 %v3103_v43  ;;  %v3844_v5 = vadd.f32 %v6762_v55, %v3711_v37  ;;  %v3715_v51 = vpop.xlane.xlu1 %3714  ;;  %3776 = vadd.xlane.f32.xlu0 %v3678_v44  ;;  %v3679_v54 = vmul.f32 %v5261_v29, %v6678_v41 }
 0x575   : > { %v3106_v19 = vadd.f32 %v6736_v13, %v3105_v47  ;;  %v5263_v9 = vpop.eup %5262  ;;  %5268 = vtanh.f32 %v3114_v60  ;;  %v3846_v42 = vadd.f32 %v6762_v55, %v3715_v51 }
 0x576   : > { %3909 = vst.msk [vmem:[%s6769_s26 + $0x8] sm:$0xff] %vm3907_vm0, %v3844_v5  ;;  %3778 = vadd.xlane.f32.xlu1 %v3679_v54  ;;  %v3677_v57 = vmul.f32 %v5263_v9, %v6678_v41 }
 0x577   : > { %5270 = vtanh.f32 %v3106_v19  ;;  %3911 = vst.msk [vmem:[%s6769_s26 + $0x18] sm:$0xff] %vm3907_vm0, %v3846_v42  ;;  %v3721_v30 = vpop.xlane.xlu0 %3720 }
 0x578   : > { %v3849_v13 = vadd.f32 %v6762_v55, %v3721_v30  ;;  %3772 = vadd.xlane.f32.xlu0 %v3676_v10 }
 0x579   : > { %v3723_v28 = vpop.xlane.xlu1 %3722 }
 0x57a   : > { %3914 = vst.msk [vmem:[%s6769_s26 + $0x30] sm:$0xff] %vm3907_vm0, %v3849_v13  ;;  %v3850_v27 = vadd.f32 %v6762_v55, %v3723_v28  ;;  %3774 = vadd.xlane.f32.xlu1 %v3677_v57 }
 0x57b   : > { %v3717_v59 = vpop.xlane.xlu0 %3716 }
 0x57c   : > { %3915 = vst.msk [vmem:[%s6769_s26 + $0x38] sm:$0xff] %vm3907_vm0, %v3850_v27  ;;  %v3847_v3 = vadd.f32 %v6762_v55, %v3717_v59 }
 0x57d   : > { %v5265_v53 = vpop.eup %5264  ;;  %v3719_v34 = vpop.xlane.xlu1 %3718 }
 0x57e   : > { %v5267_v15 = vpop.eup %5266  ;;  %3912 = vst.msk [vmem:[%s6769_s26 + $0x20] sm:$0xff] %vm3907_vm0, %v3847_v3  ;;  %v3848_v50 = vadd.f32 %v6762_v55, %v3719_v34 }
 0x57f   : > { %v5269_v0 = vpop.eup %5268 }
 0x580   : > { %3913 = vst.msk [vmem:[%s6769_s26 + $0x28] sm:$0xff] %vm3907_vm0, %v3848_v50  ;;  %v3212_v33 = vpack.c.bf16 %v5269_v0, %v5265_v53 }
 0x581   : > { %v5271_v25 = vpop.eup %5270 }
 0x582   : > { %v3211_v31 = vpack.c.bf16 %v5271_v25, %v5267_v15  ;;  %v3729_v36 = vpop.xlane.xlu0 %3728 }
 0x583   : > { %v3853_v2 = vadd.f32 %v6762_v55, %v3729_v36 }
 0x584   : > { %4557 = vmatprep.mubr.bf16.mxu1 %v3211_v31  ;;  %v3731_v11 = vpop.xlane.xlu1 %3730 }
 0x585   : > { %4558 = vmatmul.mubr.bf16.gmra.mrb[124].mxu1 %v3212_v33  ;;  %3918 = vst.msk [vmem:[%s6769_s26 + $0x50] sm:$0xff] %vm3907_vm0, %v3853_v2  ;;  %v3854_v23 = vadd.f32 %v6762_v55, %v3731_v11  ;;  %v4535_v7 = vpop.f32.mrb[100].mxu1 }
 0x586   : > { %v3725_v12 = vpop.xlane.xlu0 %3724  ;;  %v3471_v22 = vadd.f32 %v4535_v7, %v6666_v14  ;;  %v3462_v16 = vpop.f32.mrb[101].mxu1 }
 0x587   : > { %3919 = vst.msk [vmem:[%s6769_s26 + $0x58] sm:$0xff] %vm3907_vm0, %v3854_v23  ;;  %v3851_v38 = vadd.f32 %v6762_v55, %v3725_v12  ;;  %v3463_v49 = vadd.f32 %v6666_v14, %v3462_v16  ;;  %v4536_v40 = vpop.f32.mrb[102].mxu1 }
 0x588   : > { %v3727_v61 = vpop.xlane.xlu1 %3726  ;;  %5272 = vtanh.f32 %v3471_v22  ;;  %v3474_v39 = vadd.f32 %v4536_v40, %v6666_v14  ;;  %v3465_v18 = vpop.f32.mrb[103].mxu1 }
 0x589   : > { %3916 = vst.msk [vmem:[%s6769_s26 + $0x40] sm:$0xff] %vm3907_vm0, %v3851_v38  ;;  %v3852_v56 = vadd.f32 %v6762_v55, %v3727_v61  ;;  %5274 = vtanh.f32 %v3463_v49  ;;  %v3466_v35 = vadd.f32 %v6666_v14, %v3465_v18 }
 0x58a   : > { %v3737_v24 = vpop.xlane.xlu0 %3736  ;;  %5276 = vtanh.f32 %v3474_v39 }
 0x58b   : > { %3917 = vst.msk [vmem:[%s6769_s26 + $0x48] sm:$0xff] %vm3907_vm0, %v3852_v56  ;;  %v3857_v52 = vadd.f32 %v6762_v55, %v3737_v24  ;;  %5278 = vtanh.f32 %v3466_v35 }
 0x58c   : > { %v3739_v1 = vpop.xlane.xlu1 %3738 }
 0x58d   : > { %3922 = vst.msk [vmem:[%s6769_s26 + $0x70] sm:$0xff] %vm3907_vm0, %v3857_v52  ;;  %v3858_v63 = vadd.f32 %v6762_v55, %v3739_v1 }
 0x58e   : > { %v3733_v58 = vpop.xlane.xlu0 %3732 }
 0x58f   : > { %3923 = vst.msk [vmem:[%s6769_s26 + $0x78] sm:$0xff] %vm3907_vm0, %v3858_v63  ;;  %v3855_v17 = vadd.f32 %v6762_v55, %v3733_v58 }
 0x590   : > { %v3735_v45 = vpop.xlane.xlu1 %3734 }
 0x591   : > { %3920 = vst.msk [vmem:[%s6769_s26 + $0x60] sm:$0xff] %vm3907_vm0, %v3855_v17  ;;  %v3856_v48 = vadd.f32 %v6762_v55, %v3735_v45 }
 0x592   : > { %v5273_v20 = vpop.eup %5272  ;;  %v3745_v26 = vpop.xlane.xlu0 %3744 }
 0x593   : > { %v5275_v62 = vpop.eup %5274  ;;  %3921 = vst.msk [vmem:[%s6769_s26 + $0x68] sm:$0xff] %vm3907_vm0, %v3856_v48  ;;  %v3861_v46 = vadd.f32 %v6762_v55, %v3745_v26  ;;  %v3682_v32 = vmul.f32 %v5273_v20, %v6678_v41 }
 0x594   : > { %v5277_v6 = vpop.eup %5276  ;;  %v3747_v21 = vpop.xlane.xlu1 %3746  ;;  %v3680_v37 = vmul.f32 %v5275_v62, %v6678_v41 }
 0x595   : > { %3926 = vst.msk [vmem:[%s6769_s26 + $0x90] sm:$0xff] %vm3907_vm0, %v3861_v46  ;;  %v3862_v8 = vadd.f32 %v6762_v55, %v3747_v21  ;;  %3784 = vadd.xlane.f32.xlu0 %v3682_v32  ;;  %v3683_v43 = vmul.f32 %v5277_v6, %v6678_v41  ;;  %v5279_v4 = vpop.eup %5278 }
 0x596   : > { %v3741_v44 = vpop.xlane.xlu0 %3740  ;;  %v3681_v5 = vmul.f32 %v5279_v4, %v6678_v41 }
 0x597   : > { %3927 = vst.msk [vmem:[%s6769_s26 + $0x98] sm:$0xff] %vm3907_vm0, %v3862_v8  ;;  %v3859_v29 = vadd.f32 %v6762_v55, %v3741_v44  ;;  %3786 = vadd.xlane.f32.xlu1 %v3683_v43 }
 0x598   : > { %v3743_v60 = vpop.xlane.xlu1 %3742 }
 0x599   : > { %3924 = vst.msk [vmem:[%s6769_s26 + $0x80] sm:$0xff] %vm3907_vm0, %v3859_v29  ;;  %v3860_v47 = vadd.f32 %v6762_v55, %v3743_v60  ;;  %3780 = vadd.xlane.f32.xlu0 %v3680_v37 }
 0x59a   : > { %v3753_v51 = vpop.xlane.xlu0 %3752 }
 0x59b   : > { %3925 = vst.msk [vmem:[%s6769_s26 + $0x88] sm:$0xff] %vm3907_vm0, %v3860_v47  ;;  %v3865_v19 = vadd.f32 %v6762_v55, %v3753_v51  ;;  %3782 = vadd.xlane.f32.xlu1 %v3681_v5 }
 0x59c   : > { %v3755_v54 = vpop.xlane.xlu1 %3754 }
 0x59d   : > { %3930 = vst.msk [vmem:[%s6769_s26 + $0xb0] sm:$0xff] %vm3907_vm0, %v3865_v19  ;;  %v3866_v9 = vadd.f32 %v6762_v55, %v3755_v54 }
 0x59e   : > { %v3749_v42 = vpop.xlane.xlu0 %3748 }
 0x59f   : > { %3931 = vst.msk [vmem:[%s6769_s26 + $0xb8] sm:$0xff] %vm3907_vm0, %v3866_v9  ;;  %v3863_v10 = vadd.f32 %v6762_v55, %v3749_v42 }
 0x5a0   : > { %v3751_v30 = vpop.xlane.xlu1 %3750 }
 0x5a1   : > { %3928 = vst.msk [vmem:[%s6769_s26 + $0xa0] sm:$0xff] %vm3907_vm0, %v3863_v10  ;;  %v3864_v13 = vadd.f32 %v6762_v55, %v3751_v30 }
 0x5a3   : > { %3929 = vst.msk [vmem:[%s6769_s26 + $0xa8] sm:$0xff] %vm3907_vm0, %v3864_v13 }
 0x5aa   : > { %v4539_v57 = vpop.f32.mrb[104].mxu1 }
 0x5ab   : > { %v3487_v28 = vadd.f32 %v4539_v57, %v6666_v14  ;;  %v3478_v27 = vpop.f32.mrb[105].mxu1 }
 0x5ac   : > { %v3479_v59 = vadd.f32 %v6666_v14, %v3478_v27  ;;  %v4540_v3 = vpop.f32.mrb[106].mxu1 }
 0x5ad   : > { %5280 = vtanh.f32 %v3487_v28  ;;  %v3490_v53 = vadd.f32 %v4540_v3, %v6666_v14  ;;  %v3481_v34 = vpop.f32.mrb[107].mxu1 }
 0x5ae   : > { %5282 = vtanh.f32 %v3479_v59  ;;  %v3482_v15 = vadd.f32 %v6666_v14, %v3481_v34 }
 0x5af   : > { %5284 = vtanh.f32 %v3490_v53 }
 0x5b0   : > { %5286 = vtanh.f32 %v3482_v15 }
 0x5b7   : > { %v5281_v50 = vpop.eup %5280 }
 0x5b8   : > { %v5283_v0 = vpop.eup %5282  ;;  %v3686_v25 = vmul.f32 %v5281_v50, %v6678_v41 }
 0x5b9   : > { %v5285_v33 = vpop.eup %5284  ;;  %v3684_v23 = vmul.f32 %v5283_v0, %v6678_v41 }
 0x5ba   : > { %3792 = vadd.xlane.f32.xlu0 %v3686_v25  ;;  %v3687_v31 = vmul.f32 %v5285_v33, %v6678_v41  ;;  %v5287_v36 = vpop.eup %5286  ;;  %v6922_v33 = vld [vmem:[%s7050_s10] ss:$0 sm:$0xff] }
 0x5bb   : > { %v3761_v2 = vpop.xlane.xlu0 %3760  ;;  %v3685_v22 = vmul.f32 %v5287_v36, %v6678_v41 }
 0x5bc   : > { %v3869_v11 = vadd.f32 %v6762_v55, %v3761_v2  ;;  %3794 = vadd.xlane.f32.xlu1 %v3687_v31 }
 0x5bd   : > { %v3763_v7 = vpop.xlane.xlu1 %3762 }
 0x5be   : > { %3934 = vst.msk [vmem:[%s6769_s26 + $0xd0] sm:$0xff] %vm3907_vm0, %v3869_v11  ;;  %v3870_v12 = vadd.f32 %v6762_v55, %v3763_v7  ;;  %3788 = vadd.xlane.f32.xlu0 %v3684_v23 }
 0x5bf   : > { %v3757_v16 = vpop.xlane.xlu0 %3756 }
 0x5c0   : > { %3935 = vst.msk [vmem:[%s6769_s26 + $0xd8] sm:$0xff] %vm3907_vm0, %v3870_v12  ;;  %v3867_v38 = vadd.f32 %v6762_v55, %v3757_v16  ;;  %3790 = vadd.xlane.f32.xlu1 %v3685_v22  ;;  %v6931_v16 = vld [vmem:[%s7051_s11] ss:$0 sm:$0xff] }
 0x5c1   : > { %v3759_v49 = vpop.xlane.xlu1 %3758 }
 0x5c2   : > { %3932 = vst.msk [vmem:[%s6769_s26 + $0xc0] sm:$0xff] %vm3907_vm0, %v3867_v38  ;;  %v3868_v40 = vadd.f32 %v6762_v55, %v3759_v49 }
 0x5c4   : > { %3933 = vst.msk [vmem:[%s6769_s26 + $0xc8] sm:$0xff] %vm3907_vm0, %v3868_v40 }
 0x5d0   : > { %v4543_v61 = vpop.f32.mrb[108].mxu1 }
 0x5d1   : > { %v3503_v39 = vadd.f32 %v4543_v61, %v6666_v14  ;;  %v3494_v18 = vpop.f32.mrb[109].mxu1 }
 0x5d2   : > { %v3495_v56 = vadd.f32 %v6666_v14, %v3494_v18  ;;  %v4544_v35 = vpop.f32.mrb[110].mxu1 }
 0x5d3   : > { %5288 = vtanh.f32 %v3503_v39  ;;  %v3506_v24 = vadd.f32 %v4544_v35, %v6666_v14  ;;  %v3497_v52 = vpop.f32.mrb[111].mxu1 }
 0x5d4   : > { %5290 = vtanh.f32 %v3495_v56  ;;  %v3498_v1 = vadd.f32 %v6666_v14, %v3497_v52 }
 0x5d5   : > { %5292 = vtanh.f32 %v3506_v24 }
 0x5d6   : > { %5294 = vtanh.f32 %v3498_v1 }
 0x5dc   : > { %v3769_v63 = vpop.xlane.xlu0 %3768 }
 0x5dd   : > { %v5289_v58 = vpop.eup %5288  ;;  %v3873_v17 = vadd.f32 %v6762_v55, %v3769_v63 }
 0x5de   : > { %v5291_v45 = vpop.eup %5290  ;;  %v3690_v48 = vmul.f32 %v5289_v58, %v6678_v41  ;;  %v3771_v20 = vpop.xlane.xlu1 %3770 }
 0x5df   : > { %v5293_v26 = vpop.eup %5292  ;;  %3938 = vst.msk [vmem:[%s6769_s26 + $0xf0] sm:$0xff] %vm3907_vm0, %v3873_v17  ;;  %v3874_v62 = vadd.f32 %v6762_v55, %v3771_v20  ;;  %v3688_v8 = vmul.f32 %v5291_v45, %v6678_v41 }
 0x5e0   : > { %3800 = vadd.xlane.f32.xlu0 %v3690_v48  ;;  %v3691_v46 = vmul.f32 %v5293_v26, %v6678_v41  ;;  %v3765_v32 = vpop.xlane.xlu0 %3764  ;;  %v5295_v6 = vpop.eup %5294 }
 0x5e1   : > { %3939 = vst.msk [vmem:[%s6769_s26 + $0xf8] sm:$0xff] %vm3907_vm0, %v3874_v62  ;;  %v3871_v21 = vadd.f32 %v6762_v55, %v3765_v32  ;;  %v3689_v44 = vmul.f32 %v5295_v6, %v6678_v41 }
 0x5e2   : > { %3802 = vadd.xlane.f32.xlu1 %v3691_v46  ;;  %v3767_v43 = vpop.xlane.xlu1 %3766 }
 0x5e3   : > { %3936 = vst.msk [vmem:[%s6769_s26 + $0xe0] sm:$0xff] %vm3907_vm0, %v3871_v21  ;;  %v3872_v4 = vadd.f32 %v6762_v55, %v3767_v43 }
 0x5e4   : > { %3796 = vadd.xlane.f32.xlu0 %v3688_v8 }
 0x5e5   : > { %3937 = vst.msk [vmem:[%s6769_s26 + $0xe8] sm:$0xff] %vm3907_vm0, %v3872_v4 }
 0x5e6   : > { %3798 = vadd.xlane.f32.xlu1 %v3689_v44 }
 0x5f0   : > { %v4547_v29 = vpop.f32.mrb[112].mxu1 }
 0x5f1   : > { %v3519_v37 = vadd.f32 %v4547_v29, %v6666_v14  ;;  %v3510_v60 = vpop.f32.mrb[113].mxu1 }
 0x5f2   : > { %v3511_v47 = vadd.f32 %v6666_v14, %v3510_v60  ;;  %v4548_v5 = vpop.f32.mrb[114].mxu1 }
 0x5f3   : > { %5296 = vtanh.f32 %v3519_v37  ;;  %v3522_v51 = vadd.f32 %v4548_v5, %v6666_v14  ;;  %v3513_v19 = vpop.f32.mrb[115].mxu1 }
 0x5f4   : > { %5298 = vtanh.f32 %v3511_v47  ;;  %v3514_v54 = vadd.f32 %v6666_v14, %v3513_v19 }
 0x5f5   : > { %5300 = vtanh.f32 %v3522_v51 }
 0x5f6   : > { %5302 = vtanh.f32 %v3514_v54 }
 0x5fd   : > { %v5297_v9 = vpop.eup %5296 }
 0x5fe   : > { %v5299_v42 = vpop.eup %5298  ;;  %v3694_v10 = vmul.f32 %v5297_v9, %v6678_v41 }
 0x5ff   : > { %v5301_v30 = vpop.eup %5300  ;;  %v3692_v14 = vmul.f32 %v5299_v42, %v6678_v41 }
 0x600   : > { %3808 = vadd.xlane.f32.xlu0 %v3694_v10  ;;  %v3695_v13 = vmul.f32 %v5301_v30, %v6678_v41  ;;  %v5303_v57 = vpop.eup %5302 }
 0x601   : > { %v3777_v28 = vpop.xlane.xlu0 %3776  ;;  %v3693_v53 = vmul.f32 %v5303_v57, %v6678_v41 }
 0x602   : > { %v3877_v27 = vadd.f32 %v6762_v55, %v3777_v28  ;;  %3810 = vadd.xlane.f32.xlu1 %v3695_v13 }
 0x603   : > { %v3779_v59 = vpop.xlane.xlu1 %3778 }
 0x604   : > { %3942 = vst.msk [vmem:[%s6769_s26 + $0x110] sm:$0xff] %vm3907_vm0, %v3877_v27  ;;  %v3878_v3 = vadd.f32 %v6762_v55, %v3779_v59  ;;  %3804 = vadd.xlane.f32.xlu0 %v3692_v14 }
 0x605   : > { %v3773_v34 = vpop.xlane.xlu0 %3772 }
 0x606   : > { %3943 = vst.msk [vmem:[%s6769_s26 + $0x118] sm:$0xff] %vm3907_vm0, %v3878_v3  ;;  %v3875_v15 = vadd.f32 %v6762_v55, %v3773_v34  ;;  %3806 = vadd.xlane.f32.xlu1 %v3693_v53 }
 0x607   : > { %v3775_v50 = vpop.xlane.xlu1 %3774 }
 0x608   : > { %3940 = vst.msk [vmem:[%s6769_s26 + $0x100] sm:$0xff] %vm3907_vm0, %v3875_v15  ;;  %v3876_v0 = vadd.f32 %v6762_v55, %v3775_v50 }
 0x60a   : > { %3941 = vst.msk [vmem:[%s6769_s26 + $0x108] sm:$0xff] %vm3907_vm0, %v3876_v0 }
 0x611   : > { %v4551_v25 = vpop.f32.mrb[116].mxu1 }
 0x612   : > { %v3535_v41 = vadd.f32 %v6922_v33, %v4551_v25  ;;  %v3526_v31 = vpop.f32.mrb[117].mxu1 }
 0x613   : > { %v3527_v36 = vadd.f32 %v6922_v33, %v3526_v31  ;;  %v4552_v2 = vpop.f32.mrb[118].mxu1 }
 0x614   : > { %5304 = vtanh.f32 %v3535_v41  ;;  %v3538_v11 = vadd.f32 %v6922_v33, %v4552_v2  ;;  %v3529_v23 = vpop.f32.mrb[119].mxu1 }
 0x615   : > { %5306 = vtanh.f32 %v3527_v36  ;;  %v3530_v7 = vadd.f32 %v6922_v33, %v3529_v23 }
 0x616   : > { %5308 = vtanh.f32 %v3538_v11 }
 0x617   : > { %5310 = vtanh.f32 %v3530_v7 }
 0x61e   : > { %v5305_v12 = vpop.eup %5304 }
 0x61f   : > { %v5307_v22 = vpop.eup %5306  ;;  %v3698_v38 = vmul.f32 %v6931_v16, %v5305_v12 }
 0x620   : > { %v5309_v49 = vpop.eup %5308  ;;  %v3696_v56 = vmul.f32 %v6931_v16, %v5307_v22 }
 0x621   : > { %3816 = vadd.xlane.f32.xlu0 %v3698_v38  ;;  %v3699_v40 = vmul.f32 %v6931_v16, %v5309_v49  ;;  %v5311_v61 = vpop.eup %5310 }
 0x622   : > { %v3785_v39 = vpop.xlane.xlu0 %3784  ;;  %v3697_v52 = vmul.f32 %v6931_v16, %v5311_v61 }
 0x623   : > { %v3881_v18 = vadd.f32 %v6762_v55, %v3785_v39  ;;  %3818 = vadd.xlane.f32.xlu1 %v3699_v40 }
 0x624   : > { %v3787_v35 = vpop.xlane.xlu1 %3786 }
 0x625   : > { %3946 = vst.msk [vmem:[%s6769_s26 + $0x130] sm:$0xff] %vm3907_vm0, %v3881_v18  ;;  %v3882_v24 = vadd.f32 %v6762_v55, %v3787_v35  ;;  %3812 = vadd.xlane.f32.xlu0 %v3696_v56 }
 0x626   : > { %v3781_v1 = vpop.xlane.xlu0 %3780 }
 0x627   : > { %3947 = vst.msk [vmem:[%s6769_s26 + $0x138] sm:$0xff] %vm3907_vm0, %v3882_v24  ;;  %v3879_v63 = vadd.f32 %v6762_v55, %v3781_v1  ;;  %3814 = vadd.xlane.f32.xlu1 %v3697_v52 }
 0x628   : > { %v3783_v58 = vpop.xlane.xlu1 %3782 }
 0x629   : > { %3944 = vst.msk [vmem:[%s6769_s26 + $0x120] sm:$0xff] %vm3907_vm0, %v3879_v63  ;;  %v3880_v17 = vadd.f32 %v6762_v55, %v3783_v58 }
 0x62b   : > { %3945 = vst.msk [vmem:[%s6769_s26 + $0x128] sm:$0xff] %vm3907_vm0, %v3880_v17 }
 0x636   : > { %v4555_v45 = vpop.f32.mrb[120].mxu1 }
 0x637   : > { %v3551_v48 = vadd.f32 %v6922_v33, %v4555_v45  ;;  %v3542_v20 = vpop.f32.mrb[121].mxu1 }
 0x638   : > { %v3543_v26 = vadd.f32 %v6922_v33, %v3542_v20  ;;  %v4556_v62 = vpop.f32.mrb[122].mxu1 }
 0x639   : > { %5312 = vtanh.f32 %v3551_v48  ;;  %v3554_v46 = vadd.f32 %v6922_v33, %v4556_v62  ;;  %v3545_v32 = vpop.f32.mrb[123].mxu1 }
 0x63a   : > { %5314 = vtanh.f32 %v3543_v26  ;;  %v3546_v6 = vadd.f32 %v6922_v33, %v3545_v32 }
 0x63b   : > { %5316 = vtanh.f32 %v3554_v46 }
 0x63c   : > { %5318 = vtanh.f32 %v3546_v6 }
 0x643   : > { %v5313_v21 = vpop.eup %5312 }
 0x644   : > { %v5315_v8 = vpop.eup %5314  ;;  %v3702_v43 = vmul.f32 %v6931_v16, %v5313_v21 }
 0x645   : > { %v5317_v4 = vpop.eup %5316  ;;  %v3700_v47 = vmul.f32 %v6931_v16, %v5315_v8 }
 0x646   : > { %3824 = vadd.xlane.f32.xlu0 %v3702_v43  ;;  %v3703_v44 = vmul.f32 %v6931_v16, %v5317_v4  ;;  %v5319_v29 = vpop.eup %5318 }
 0x647   : > { %v3793_v37 = vpop.xlane.xlu0 %3792  ;;  %v3701_v19 = vmul.f32 %v6931_v16, %v5319_v29 }
 0x648   : > { %v3885_v60 = vadd.f32 %v6762_v55, %v3793_v37  ;;  %3826 = vadd.xlane.f32.xlu1 %v3703_v44 }
 0x649   : > { %v3795_v5 = vpop.xlane.xlu1 %3794 }
 0x64a   : > { %3950 = vst.msk [vmem:[%s6769_s26 + $0x150] sm:$0xff] %vm3907_vm0, %v3885_v60  ;;  %v3886_v51 = vadd.f32 %v6762_v55, %v3795_v5  ;;  %3820 = vadd.xlane.f32.xlu0 %v3700_v47 }
 0x64b   : > { %v3789_v54 = vpop.xlane.xlu0 %3788 }
 0x64c   : > { %3951 = vst.msk [vmem:[%s6769_s26 + $0x158] sm:$0xff] %vm3907_vm0, %v3886_v51  ;;  %v3883_v9 = vadd.f32 %v6762_v55, %v3789_v54  ;;  %3822 = vadd.xlane.f32.xlu1 %v3701_v19 }
 0x64d   : > { %v3791_v42 = vpop.xlane.xlu1 %3790 }
 0x64e   : > { %3948 = vst.msk [vmem:[%s6769_s26 + $0x140] sm:$0xff] %vm3907_vm0, %v3883_v9  ;;  %v3884_v10 = vadd.f32 %v6762_v55, %v3791_v42 }
 0x650   : > { %3949 = vst.msk [vmem:[%s6769_s26 + $0x148] sm:$0xff] %vm3907_vm0, %v3884_v10 }
 0x658   : > { %v4559_v30 = vpop.f32.mrb[124].mxu1 }
 0x659   : > { %v3567_v13 = vadd.f32 %v6922_v33, %v4559_v30  ;;  %v3558_v57 = vpop.f32.mrb[125].mxu1 }
 0x65a   : > { %v3559_v28 = vadd.f32 %v6922_v33, %v3558_v57  ;;  %v4560_v27 = vpop.f32.mrb[126].mxu1 }
 0x65b   : > { %v3561_v14 = vpop.f32.mrb[127].mxu1  ;;  %v3570_v59 = vadd.f32 %v6922_v33, %v4560_v27 }
 0x65c   : > { %5320 = vtanh.f32 %v3559_v28  ;;  %v3562_v3 = vadd.f32 %v6922_v33, %v3561_v14 }
 0x65d   : > { %5322 = vtanh.f32 %v3567_v13 }
 0x65e   : > { %5324 = vtanh.f32 %v3562_v3 }
 0x65f   : > { %5326 = vtanh.f32 %v3570_v59 }
 0x666   : > { %v5321_v53 = vpop.eup %5320 }
 0x667   : > { %v5323_v34 = vpop.eup %5322  ;;  %v3704_v15 = vmul.f32 %v6931_v16, %v5321_v53 }
 0x668   : > { %v5325_v50 = vpop.eup %5324  ;;  %v3706_v41 = vmul.f32 %v6931_v16, %v5323_v34 }
 0x669   : > { %3828 = vadd.xlane.f32.xlu0 %v3704_v15  ;;  %v3705_v0 = vmul.f32 %v6931_v16, %v5325_v50  ;;  %v5327_v25 = vpop.eup %5326 }
 0x66a   : > { %v3707_v33 = vmul.f32 %v6931_v16, %v5327_v25 }
 0x66b   : > { %3830 = vadd.xlane.f32.xlu1 %v3705_v0 }
 0x66d   : > { %3832 = vadd.xlane.f32.xlu0 %v3706_v41  ;;  %v3801_v31 = vpop.xlane.xlu0 %3800 }
 0x66e   : > { %v3889_v36 = vadd.f32 %v6762_v55, %v3801_v31 }
 0x66f   : > { %3834 = vadd.xlane.f32.xlu1 %v3707_v33  ;;  %v3803_v2 = vpop.xlane.xlu1 %3802 }
 0x670   : > { %3954 = vst.msk [vmem:[%s6769_s26 + $0x170] sm:$0xff] %vm3907_vm0, %v3889_v36  ;;  %v3890_v11 = vadd.f32 %v6762_v55, %v3803_v2 }
 0x671   : > { %v3797_v23 = vpop.xlane.xlu0 %3796 }
 0x672   : > { %3955 = vst.msk [vmem:[%s6769_s26 + $0x178] sm:$0xff] %vm3907_vm0, %v3890_v11  ;;  %v3887_v7 = vadd.f32 %v6762_v55, %v3797_v23 }
 0x673   : > { %v3799_v12 = vpop.xlane.xlu1 %3798 }
 0x674   : > { %3952 = vst.msk [vmem:[%s6769_s26 + $0x160] sm:$0xff] %vm3907_vm0, %v3887_v7  ;;  %v3888_v22 = vadd.f32 %v6762_v55, %v3799_v12 }
 0x676   : > { %3953 = vst.msk [vmem:[%s6769_s26 + $0x168] sm:$0xff] %vm3907_vm0, %v3888_v22 }
 0x68d   : > { %v3809_v16 = vpop.xlane.xlu0 %3808 }
 0x68e   : > { %v3893_v38 = vadd.f32 %v6762_v55, %v3809_v16 }
 0x68f   : > { %v3811_v49 = vpop.xlane.xlu1 %3810 }
 0x690   : > { %3958 = vst.msk [vmem:[%s6769_s26 + $0x190] sm:$0xff] %vm3907_vm0, %v3893_v38  ;;  %v3894_v40 = vadd.f32 %v6762_v55, %v3811_v49 }
 0x691   : > { %v3805_v61 = vpop.xlane.xlu0 %3804 }
 0x692   : > { %3959 = vst.msk [vmem:[%s6769_s26 + $0x198] sm:$0xff] %vm3907_vm0, %v3894_v40  ;;  %v3891_v39 = vadd.f32 %v6762_v55, %v3805_v61 }
 0x693   : > { %v3807_v18 = vpop.xlane.xlu1 %3806 }
 0x694   : > { %3956 = vst.msk [vmem:[%s6769_s26 + $0x180] sm:$0xff] %vm3907_vm0, %v3891_v39  ;;  %v3892_v56 = vadd.f32 %v6762_v55, %v3807_v18 }
 0x696   : > { %3957 = vst.msk [vmem:[%s6769_s26 + $0x188] sm:$0xff] %vm3907_vm0, %v3892_v56 }
 0x6ae   : > { %v3817_v35 = vpop.xlane.xlu0 %3816 }
 0x6af   : > { %v3897_v24 = vadd.f32 %v6762_v55, %v3817_v35 }
 0x6b0   : > { %v3819_v52 = vpop.xlane.xlu1 %3818 }
 0x6b1   : > { %3962 = vst.msk [vmem:[%s6769_s26 + $0x1b0] sm:$0xff] %vm3907_vm0, %v3897_v24  ;;  %v3898_v1 = vadd.f32 %v6762_v55, %v3819_v52 }
 0x6b2   : > { %v3813_v63 = vpop.xlane.xlu0 %3812 }
 0x6b3   : > { %3963 = vst.msk [vmem:[%s6769_s26 + $0x1b8] sm:$0xff] %vm3907_vm0, %v3898_v1  ;;  %v3895_v58 = vadd.f32 %v6762_v55, %v3813_v63 }
 0x6b4   : > { %v3815_v17 = vpop.xlane.xlu1 %3814 }
 0x6b5   : > { %3960 = vst.msk [vmem:[%s6769_s26 + $0x1a0] sm:$0xff] %vm3907_vm0, %v3895_v58  ;;  %v3896_v45 = vadd.f32 %v6762_v55, %v3815_v17 }
 0x6b7   : > { %3961 = vst.msk [vmem:[%s6769_s26 + $0x1a8] sm:$0xff] %vm3907_vm0, %v3896_v45 }
 0x6d3   : > { %v3825_v48 = vpop.xlane.xlu0 %3824 }
 0x6d4   : > { %v3901_v20 = vadd.f32 %v6762_v55, %v3825_v48 }
 0x6d5   : > { %v3827_v26 = vpop.xlane.xlu1 %3826 }
 0x6d6   : > { %3966 = vst.msk [vmem:[%s6769_s26 + $0x1d0] sm:$0xff] %vm3907_vm0, %v3901_v20  ;;  %v3902_v62 = vadd.f32 %v6762_v55, %v3827_v26 }
 0x6d7   : > { %v3821_v46 = vpop.xlane.xlu0 %3820 }
 0x6d8   : > { %3967 = vst.msk [vmem:[%s6769_s26 + $0x1d8] sm:$0xff] %vm3907_vm0, %v3902_v62  ;;  %v3899_v32 = vadd.f32 %v6762_v55, %v3821_v46 }
 0x6d9   : > { %v3823_v6 = vpop.xlane.xlu1 %3822 }
 0x6da   : > { %3964 = vst.msk [vmem:[%s6769_s26 + $0x1c0] sm:$0xff] %vm3907_vm0, %v3899_v32  ;;  %v3900_v21 = vadd.f32 %v6762_v55, %v3823_v6 }
 0x6dc   : > { %3965 = vst.msk [vmem:[%s6769_s26 + $0x1c8] sm:$0xff] %vm3907_vm0, %v3900_v21 }
 0x6f6   : > { %v3829_v8 = vpop.xlane.xlu0 %3828 }
 0x6f7   : > { %v3903_v43 = vadd.f32 %v6762_v55, %v3829_v8 }
 0x6f8   : > { %v3831_v4 = vpop.xlane.xlu1 %3830 }
 0x6f9   : > { %3968 = vst.msk [vmem:[%s6769_s26 + $0x1e0] sm:$0xff] %vm3907_vm0, %v3903_v43  ;;  %v3904_v44 = vadd.f32 %v6762_v55, %v3831_v4 }
 0x6fa   : > { %v3833_v29 = vpop.xlane.xlu0 %3832 }
 0x6fb   : > { %3969 = vst.msk [vmem:[%s6769_s26 + $0x1e8] sm:$0xff] %vm3907_vm0, %v3904_v44  ;;  %v3905_v37 = vadd.f32 %v6762_v55, %v3833_v29 }
 0x6fc   : > { %v3835_v60 = vpop.xlane.xlu1 %3834 }
 0x6fd   : > { %3970 = vst.msk [vmem:[%s6769_s26 + $0x1f0] sm:$0xff] %vm3907_vm0, %v3905_v37  ;;  %v3906_v47 = vadd.f32 %v6762_v55, %v3835_v60 }
 0x6ff   : > { %3971 = vst.msk [vmem:[%s6769_s26 + $0x1f8] sm:$0xff] %vm3907_vm0, %v3906_v47 }
 0x700 PF: > { %s25_s27 = sadd.s32 1, %s5356_s27  }
 0x701   : > { %p22_p4 = scmp.ge.s32.totalorder %s25_s27, 4  }
 0x703   :  { %24 = sbr.rel (!%p22_p4) target bundleno = 3 (0x3), region = 102 }

</bundles_post_ra>
